<compile_context>
chip_gen: v6e
topology: v6e:2x2x1
jax: 0.10.0
libtpu: 0.0.40
codegen_flags: <defaults>
</compile_context>

<pallas_src>
import functools

import jax
import jax.numpy as jnp
from jax.experimental import pallas as pl
from jax.experimental.pallas import tpu as pltpu


def _softmax_over_keys(s):
    """s: (N_keys, N_queries). Softmax over the key axis (axis 0, sublanes)."""
    s = s - jnp.max(s, axis=0, keepdims=True)
    e = jnp.exp(s)
    return e * pl.reciprocal(jnp.sum(e, axis=0, keepdims=True), approx=True)


def sam_kernel(h_ref, m_ref,
               w_hproj_ref, b_hproj_ref, w_mproj_ref, b_mproj_ref,
               b_z_ref, w_gate_z_ref, w_gate_h_ref, b_gate_ref,
               new_h_ref, new_m_ref, *, input_dim, hidden_dim):
    C, Hd = input_dim, hidden_dim
    bf16, f32 = jnp.bfloat16, jnp.float32

    h = h_ref[0].astype(f32)          # (C, N)  channels on sublanes, positions on lanes
    m = m_ref[0].astype(f32)          # (C, N)

    # Fused 1x1-conv projections: (rows, C) @ (C, N) -> (rows, N). Row slices are
    # at sublane-aligned offsets (0, Hd, 2*Hd).
    proj_h = (jnp.dot(w_hproj_ref[...], h, preferred_element_type=f32)
              + b_hproj_ref[...])                          # (2*Hd + 2C, N)
    proj_m = (jnp.dot(w_mproj_ref[...], m, preferred_element_type=f32)
              + b_mproj_ref[...])                          # (Hd + 2C, N)

    q_h = proj_h[0 * Hd:1 * Hd, :]                         # (Hd, N)
    k_h = proj_h[1 * Hd:2 * Hd, :]                         # (Hd, N)
    vz_h = proj_h[2 * Hd:, :]                              # (2C, N) == wz[:, :C] @ wv @ h
    k_m = proj_m[:Hd, :]                                   # (Hd, N)
    vz_m = proj_m[Hd:, :]                                  # (2C, N) == wz[:, C:] @ wv2 @ m

    # Attention over the N spatial positions, computed transposed (keys on
    # sublanes, queries on lanes) so all matmuls are MXU-natural.
    q_bf = q_h.astype(bf16)                                # (Hd, N)
    k_h_tb = jnp.transpose(k_h).astype(bf16)               # (N, Hd)  cheap (Hd x N) transpose
    k_m_tb = jnp.transpose(k_m).astype(bf16)               # (N, Hd)

    s_h = jnp.dot(k_h_tb, q_bf, preferred_element_type=f32)   # (N_k, N_q) f32 accumulate
    s_m = jnp.dot(k_m_tb, q_bf, preferred_element_type=f32)   # (N_k, N_q)
    a_h = _softmax_over_keys(s_h).astype(bf16)                 # == A_h^T
    a_m = _softmax_over_keys(s_m).astype(bf16)                 # == A_m^T

    # Z = layer_z(cat[Z_h, Z_m]) with layer_v / layer_v2 pre-folded into layer_z
    # (b_z carries wz_top@bv + wz_bot@bv2 + bz).
    z = (jnp.dot(vz_h.astype(bf16), a_h, preferred_element_type=f32)
         + jnp.dot(vz_m.astype(bf16), a_m, preferred_element_type=f32)
         + b_z_ref[...])                                   # (2C, N)

    # layer_m(cat[Z, h]) with the concat replaced by split weights.
    comb = (jnp.dot(w_gate_z_ref[...], z, preferred_element_type=f32)
            + jnp.dot(w_gate_h_ref[...], h, preferred_element_type=f32)
            + b_gate_ref[...])                             # (3C, N)

    mo = comb[0 * C:1 * C, :]
    mg = comb[1 * C:2 * C, :]
    mi = comb[2 * C:3 * C, :]

    mi_s = jax.nn.sigmoid(mi)
    new_m = (1.0 - mi_s) * m + mi_s * jnp.tanh(mg)
    new_h = jax.nn.sigmoid(mo) * new_m

    new_h_ref[0] = new_h.astype(new_h_ref.dtype)
    new_m_ref[0] = new_m.astype(new_m_ref.dtype)


def self_attention_memory_forward(h_nchw, m_nchw, params):
    """h_nchw, m_nchw: (B, C, H, W) float32. Returns (new_h, new_m) in NCHW."""
    B, C, H, W = h_nchw.shape
    N = H * W
    hid = params["wq"].shape[0]
    f32 = jnp.float32

    # NCHW -> (B, C, N): pure reshape, zero data movement (no transposes).
    h = h_nchw.reshape(B, C, N)
    m = m_nchw.reshape(B, C, N)

    # ---- offline weight algebra (tiny, outside the kernel) -------------------
    wz = params["wz"].astype(f32)                       # (2C, 2C)
    wz_h, wz_m = wz[:, :C], wz[:, C:]                   # (2C, C) each
    wvz_h = wz_h @ params["wv"].astype(f32)             # fold layer_v  into layer_z
    wvz_m = wz_m @ params["wv2"].astype(f32)            # fold layer_v2 into layer_z
    b_z = (wz_h @ params["bv"].astype(f32)
           + wz_m @ params["bv2"].astype(f32)
           + params["bz"].astype(f32)).reshape(2 * C, 1)

    w_hproj = jnp.concatenate(
        [params["wq"], params["wk"], wvz_h], axis=0).astype(f32)        # (2*hid+2C, C)
    b_hproj = jnp.concatenate(
        [params["bq"], params["bk"], jnp.zeros((2 * C,), f32)], axis=0).reshape(-1, 1)
    w_mproj = jnp.concatenate([params["wk2"], wvz_m], axis=0).astype(f32)  # (hid+2C, C)
    b_mproj = jnp.concatenate(
        [params["bk2"], jnp.zeros((2 * C,), f32)], axis=0).reshape(-1, 1)

    wm = params["wm"].astype(f32)                       # (3C, 3C)
    w_gate_z, w_gate_h = wm[:, :2 * C], wm[:, 2 * C:]   # (3C, 2C), (3C, C)
    b_gate = params["bm"].astype(f32).reshape(3 * C, 1)

    weights = [w_hproj, b_hproj, w_mproj, b_mproj, b_z, w_gate_z, w_gate_h, b_gate]

    io_spec = pl.BlockSpec((1, C, N), lambda b: (b, 0, 0))

    def full_spec(arr):                                  # all weights are 2-D
        return pl.BlockSpec(arr.shape, lambda b: (0, 0))

    kernel = functools.partial(sam_kernel, input_dim=C, hidden_dim=hid)

    # VMEM budget: dominated by the two (N, N) f32 score matrices (+ bf16 copies
    # and softmax temporaries); everything else is thin (<=72, N) strips.
    # TODO(synk): for very large N the (N, N) scores exceed v7x's 64 MiB VMEM —
    # add a query-tile grid axis with online (flash-style) softmax and mark it
    # "parallel" so both v7x TensorCores get work even at small batch.
    score_bytes = 2 * N * N * 4
    vmem_limit = int(min(max(4 * score_bytes + (4 << 20), 16 << 20), 64 << 20))

    new_h, new_m = pl.pallas_call(
        kernel,
        out_shape=(jax.ShapeDtypeStruct((B, C, N), jnp.float32),
                   jax.ShapeDtypeStruct((B, C, N), jnp.float32)),
        grid_spec=pltpu.PrefetchScalarGridSpec(
            num_scalar_prefetch=0,
            grid=(B,),
            in_specs=[io_spec, io_spec] + [full_spec(w) for w in weights],
            out_specs=[io_spec, io_spec],
        ),
        compiler_params=pltpu.CompilerParams(
            dimension_semantics=("parallel",),
            vmem_limit_bytes=vmem_limit),
    )(h, m, *weights)

    # (B, C, N) -> NCHW: free reshape.
    return new_h.reshape(B, C, H, W), new_m.reshape(B, C, H, W)


def init_params(key, input_dim, hidden_dim):
    """Conv2d(out, in, 1, 1) weights stored as (Cout, Cin) matrices, biases (Cout,)."""
    ks = jax.random.split(key, 14)

    def w(k, cout, cin):
        bound = 1.0 / jnp.sqrt(cin)
        return jax.random.uniform(k, (cout, cin), jnp.float32, -bound, bound)

    def b(k, cout, cin):
        bound = 1.0 / jnp.sqrt(cin)
        return jax.random.uniform(k, (cout,), jnp.float32, -bound, bound)

    C, Hd = input_dim, hidden_dim
    return {
        "wq": w(ks[0], Hd, C),  "bq": b(ks[1], Hd, C),
        "wk": w(ks[2], Hd, C),  "bk": b(ks[3], Hd, C),
        "wk2": w(ks[4], Hd, C), "bk2": b(ks[5], Hd, C),
        "wv": w(ks[6], C, C),   "bv": b(ks[7], C, C),
        "wv2": w(ks[8], C, C),  "bv2": b(ks[9], C, C),
        "wz": w(ks[10], 2 * C, 2 * C), "bz": b(ks[11], 2 * C, 2 * C),
        "wm": w(ks[12], 3 * C, 3 * C), "bm": b(ks[13], 3 * C, 3 * C),
    }


def reference_forward(h, m, params):
    """Plain-JAX float32 mirror of the PyTorch forward (NCHW) for validation."""
    B, C, H, W = h.shape
    N = H * W
    hid = params["wq"].shape[0]

    def conv1x1(x, w, b):  # x: (B, Cin, H, W); w: (Cout, Cin); b: (Cout,)
        return jnp.einsum("oi,bihw->bohw", w, x) + b[None, :, None, None]

    K_h = conv1x1(h, params["wk"], params["bk"]).reshape(B, hid, N)
    Q_h = conv1x1(h, params["wq"], params["bq"]).reshape(B, hid, N)
    Q_h = jnp.transpose(Q_h, (0, 2, 1))
    A_h = jax.nn.softmax(jnp.einsum("bnk,bkm->bnm", Q_h, K_h), axis=-1)
    V_h = conv1x1(h, params["wv"], params["bv"]).reshape(B, C, N)
    Z_h = jnp.einsum("bnm,bmc->bnc", A_h, jnp.transpose(V_h, (0, 2, 1)))

    K_m = conv1x1(m, params["wk2"], params["bk2"]).reshape(B, hid, N)
    V_m = conv1x1(m, params["wv2"], params["bv2"]).reshape(B, C, N)
    A_m = jax.nn.softmax(jnp.einsum("bnk,bkm->bnm", Q_h, K_m), axis=-1)
    Z_m = jnp.einsum("bnm,bmc->bnc", A_m, jnp.transpose(V_m, (0, 2, 1)))

    Z_h = jnp.transpose(Z_h, (0, 2, 1)).reshape(B, C, H, W)
    Z_m = jnp.transpose(Z_m, (0, 2, 1)).reshape(B, C, H, W)
    W_z = jnp.concatenate([Z_h, Z_m], axis=1)
    Z = conv1x1(W_z, params["wz"], params["bz"])
    combined = conv1x1(jnp.concatenate([Z, h], axis=1), params["wm"], params["bm"])
    mo, mg, mi = combined[:, :C], combined[:, C:2 * C], combined[:, 2 * C:]
    mi = jax.nn.sigmoid(mi)
    new_m = (1 - mi) * m + mi * jnp.tanh(mg)
    new_h = jax.nn.sigmoid(mo) * new_m
    return new_h, new_m


if __name__ == "__main__":
    input_dim = 4
    hidden_dim = 32
    B, H, W = 2, 16, 16

    key = jax.random.PRNGKey(0)
    k_h, k_m, k_p = jax.random.split(key, 3)
    h = jax.random.normal(k_h, (B, input_dim, H, W), jnp.float32)
    m = jax.random.normal(k_m, (B, input_dim, H, W), jnp.float32)
    params = init_params(k_p, input_dim, hidden_dim)

    fwd = jax.jit(self_attention_memory_forward)
    new_h, new_m = fwd(h, m, params)
    jax.block_until_ready((new_h, new_m))

    ref_h, ref_m = reference_forward(h, m, params)
    # bf16 MXU inputs on the attention matmuls -> relaxed tolerance vs f32 reference.
    assert jnp.allclose(new_h, ref_h, atol=4e-2, rtol=4e-2)
    assert jnp.allclose(new_m, ref_m, atol=4e-2, rtol=4e-2)

    print("KERNEL_OK")
</pallas_src>

<mosaic_0001>
module attributes {stable_mosaic.version = 11 : i64} {
  func.func @sam_kernel(%arg0: i32, %arg1: memref<1x4x256xf32, #tpu.memory_space<vmem>>, %arg2: memref<1x4x256xf32, #tpu.memory_space<vmem>>, %arg3: memref<72x4xf32, #tpu.memory_space<vmem>>, %arg4: memref<72x1xf32, #tpu.memory_space<vmem>>, %arg5: memref<40x4xf32, #tpu.memory_space<vmem>>, %arg6: memref<40x1xf32, #tpu.memory_space<vmem>>, %arg7: memref<8x1xf32, #tpu.memory_space<vmem>>, %arg8: memref<12x8xf32, #tpu.memory_space<vmem>>, %arg9: memref<12x4xf32, #tpu.memory_space<vmem>>, %arg10: memref<12x1xf32, #tpu.memory_space<vmem>>, %arg11: memref<1x4x256xf32, #tpu.memory_space<vmem>>, %arg12: memref<1x4x256xf32, #tpu.memory_space<vmem>>) attributes {dimension_semantics = [#tpu.dimension_semantics<parallel>], iteration_bounds = array<i64: 2>, scalar_prefetch = 0 : i64, scratch_operands = 0 : i64, tpu.core_type = #tpu.core_type<tc>, window_params = [{transform_indices = @transform_0, window_bounds = array<i64: 1, 4, 256>}, {transform_indices = @transform_1, window_bounds = array<i64: 1, 4, 256>}, {pipeline_mode = #tpu.pipeline_mode<synchronous>, transform_indices = @transform_2, window_bounds = array<i64: 72, 4>}, {pipeline_mode = #tpu.pipeline_mode<synchronous>, transform_indices = @transform_3, window_bounds = array<i64: 72, 1>}, {pipeline_mode = #tpu.pipeline_mode<synchronous>, transform_indices = @transform_4, window_bounds = array<i64: 40, 4>}, {pipeline_mode = #tpu.pipeline_mode<synchronous>, transform_indices = @transform_5, window_bounds = array<i64: 40, 1>}, {pipeline_mode = #tpu.pipeline_mode<synchronous>, transform_indices = @transform_6, window_bounds = array<i64: 8, 1>}, {pipeline_mode = #tpu.pipeline_mode<synchronous>, transform_indices = @transform_7, window_bounds = array<i64: 12, 8>}, {pipeline_mode = #tpu.pipeline_mode<synchronous>, transform_indices = @transform_8, window_bounds = array<i64: 12, 4>}, {pipeline_mode = #tpu.pipeline_mode<synchronous>, transform_indices = @transform_9, window_bounds = array<i64: 12, 1>}, {transform_indices = @transform_10, window_bounds = array<i64: 1, 4, 256>}, {transform_indices = @transform_11, window_bounds = array<i64: 1, 4, 256>}]} {
    %c0 = arith.constant 0 : index
    %c0_0 = arith.constant 0 : index
    %c0_1 = arith.constant 0 : index
    %0 = vector.load %arg1[%c0, %c0_0, %c0_1] : memref<1x4x256xf32, #tpu.memory_space<vmem>>, vector<1x4x256xf32>
    %1 = vector.shape_cast %0 : vector<1x4x256xf32> to vector<4x256xf32>
    %c0_2 = arith.constant 0 : index
    %c0_3 = arith.constant 0 : index
    %c0_4 = arith.constant 0 : index
    %2 = vector.load %arg2[%c0_2, %c0_3, %c0_4] : memref<1x4x256xf32, #tpu.memory_space<vmem>>, vector<1x4x256xf32>
    %3 = vector.shape_cast %2 : vector<1x4x256xf32> to vector<4x256xf32>
    %c0_5 = arith.constant 0 : index
    %c0_6 = arith.constant 0 : index
    %4 = vector.load %arg3[%c0_5, %c0_6] : memref<72x4xf32, #tpu.memory_space<vmem>>, vector<72x4xf32>
    %cst = arith.constant dense<0.000000e+00> : vector<72x256xf32>
    %5 = tpu.matmul %4, %1, %cst {dimension_numbers = #tpu.dot_dimension_numbers<[1], [0], [0], [1], [0, 0, 1, 1], [], []>} : vector<72x4xf32>, vector<4x256xf32>, vector<72x256xf32> -> vector<72x256xf32>
    %c0_7 = arith.constant 0 : index
    %c0_8 = arith.constant 0 : index
    %6 = vector.load %arg4[%c0_7, %c0_8] : memref<72x1xf32, #tpu.memory_space<vmem>>, vector<72x1xf32>
    %7 = vector.broadcast %6 : vector<72x1xf32> to vector<72x256xf32>
    %8 = arith.addf %5, %7 : vector<72x256xf32>
    %c0_9 = arith.constant 0 : index
    %c0_10 = arith.constant 0 : index
    %9 = vector.load %arg5[%c0_9, %c0_10] : memref<40x4xf32, #tpu.memory_space<vmem>>, vector<40x4xf32>
    %cst_11 = arith.constant dense<0.000000e+00> : vector<40x256xf32>
    %10 = tpu.matmul %9, %3, %cst_11 {dimension_numbers = #tpu.dot_dimension_numbers<[1], [0], [0], [1], [0, 0, 1, 1], [], []>} : vector<40x4xf32>, vector<4x256xf32>, vector<40x256xf32> -> vector<40x256xf32>
    %c0_12 = arith.constant 0 : index
    %c0_13 = arith.constant 0 : index
    %11 = vector.load %arg6[%c0_12, %c0_13] : memref<40x1xf32, #tpu.memory_space<vmem>>, vector<40x1xf32>
    %12 = vector.broadcast %11 : vector<40x1xf32> to vector<40x256xf32>
    %13 = arith.addf %10, %12 : vector<40x256xf32>
    %14 = vector.extract_strided_slice %8 {offsets = [0, 0], sizes = [32, 256], strides = [1, 1]} : vector<72x256xf32> to vector<32x256xf32>
    %15 = vector.extract_strided_slice %8 {offsets = [32, 0], sizes = [32, 256], strides = [1, 1]} : vector<72x256xf32> to vector<32x256xf32>
    %16 = vector.extract_strided_slice %8 {offsets = [64, 0], sizes = [8, 256], strides = [1, 1]} : vector<72x256xf32> to vector<8x256xf32>
    %17 = vector.extract_strided_slice %13 {offsets = [0, 0], sizes = [32, 256], strides = [1, 1]} : vector<40x256xf32> to vector<32x256xf32>
    %18 = vector.extract_strided_slice %13 {offsets = [32, 0], sizes = [8, 256], strides = [1, 1]} : vector<40x256xf32> to vector<8x256xf32>
    %19 = arith.truncf %14 : vector<32x256xf32> to vector<32x256xbf16>
    %20 = tpu.transpose %15, [1, 0] : vector<32x256xf32> -> vector<256x32xf32>
    %21 = arith.truncf %20 : vector<256x32xf32> to vector<256x32xbf16>
    %22 = tpu.transpose %17, [1, 0] : vector<32x256xf32> -> vector<256x32xf32>
    %23 = arith.truncf %22 : vector<256x32xf32> to vector<256x32xbf16>
    %cst_14 = arith.constant dense<0.000000e+00> : vector<256x256xf32>
    %24 = tpu.matmul %21, %19, %cst_14 {dimension_numbers = #tpu.dot_dimension_numbers<[1], [0], [0], [1], [0, 0, 1, 1], [], []>} : vector<256x32xbf16>, vector<32x256xbf16>, vector<256x256xf32> -> vector<256x256xf32>
    %cst_15 = arith.constant dense<0.000000e+00> : vector<256x256xf32>
    %25 = tpu.matmul %23, %19, %cst_15 {dimension_numbers = #tpu.dot_dimension_numbers<[1], [0], [0], [1], [0, 0, 1, 1], [], []>} : vector<256x32xbf16>, vector<32x256xbf16>, vector<256x256xf32> -> vector<256x256xf32>
    %cst_16 = arith.constant dense<0xFF800000> : vector<256xf32>
    %26 = vector.multi_reduction <maximumf>, %24, %cst_16 [0] : vector<256x256xf32> to vector<256xf32>
    %27 = vector.shape_cast %26 : vector<256xf32> to vector<1x256xf32>
    %28 = vector.broadcast %27 : vector<1x256xf32> to vector<256x256xf32>
    %29 = arith.subf %24, %28 : vector<256x256xf32>
    %30 = math.exp %29 : vector<256x256xf32>
    %cst_17 = arith.constant dense<0.000000e+00> : vector<256xf32>
    %31 = vector.multi_reduction <add>, %30, %cst_17 [0] : vector<256x256xf32> to vector<256xf32>
    %32 = vector.shape_cast %31 : vector<256xf32> to vector<1x256xf32>
    %33 = tpu.reciprocal %32 {approx = true} : vector<1x256xf32> -> vector<1x256xf32>
    %34 = vector.broadcast %33 : vector<1x256xf32> to vector<256x256xf32>
    %35 = arith.mulf %30, %34 : vector<256x256xf32>
    %36 = arith.truncf %35 : vector<256x256xf32> to vector<256x256xbf16>
    %cst_18 = arith.constant dense<0xFF800000> : vector<256xf32>
    %37 = vector.multi_reduction <maximumf>, %25, %cst_18 [0] : vector<256x256xf32> to vector<256xf32>
    %38 = vector.shape_cast %37 : vector<256xf32> to vector<1x256xf32>
    %39 = vector.broadcast %38 : vector<1x256xf32> to vector<256x256xf32>
    %40 = arith.subf %25, %39 : vector<256x256xf32>
    %41 = math.exp %40 : vector<256x256xf32>
    %cst_19 = arith.constant dense<0.000000e+00> : vector<256xf32>
    %42 = vector.multi_reduction <add>, %41, %cst_19 [0] : vector<256x256xf32> to vector<256xf32>
    %43 = vector.shape_cast %42 : vector<256xf32> to vector<1x256xf32>
    %44 = tpu.reciprocal %43 {approx = true} : vector<1x256xf32> -> vector<1x256xf32>
    %45 = vector.broadcast %44 : vector<1x256xf32> to vector<256x256xf32>
    %46 = arith.mulf %41, %45 : vector<256x256xf32>
    %47 = arith.truncf %46 : vector<256x256xf32> to vector<256x256xbf16>
    %48 = arith.truncf %16 : vector<8x256xf32> to vector<8x256xbf16>
    %cst_20 = arith.constant dense<0.000000e+00> : vector<8x256xf32>
    %49 = tpu.matmul %48, %36, %cst_20 {dimension_numbers = #tpu.dot_dimension_numbers<[1], [0], [0], [1], [0, 0, 1, 1], [], []>} : vector<8x256xbf16>, vector<256x256xbf16>, vector<8x256xf32> -> vector<8x256xf32>
    %50 = arith.truncf %18 : vector<8x256xf32> to vector<8x256xbf16>
    %cst_21 = arith.constant dense<0.000000e+00> : vector<8x256xf32>
    %51 = tpu.matmul %50, %47, %cst_21 {dimension_numbers = #tpu.dot_dimension_numbers<[1], [0], [0], [1], [0, 0, 1, 1], [], []>} : vector<8x256xbf16>, vector<256x256xbf16>, vector<8x256xf32> -> vector<8x256xf32>
    %52 = arith.addf %49, %51 : vector<8x256xf32>
    %c0_22 = arith.constant 0 : index
    %c0_23 = arith.constant 0 : index
    %53 = vector.load %arg7[%c0_22, %c0_23] : memref<8x1xf32, #tpu.memory_space<vmem>>, vector<8x1xf32>
    %54 = vector.broadcast %53 : vector<8x1xf32> to vector<8x256xf32>
    %55 = arith.addf %52, %54 : vector<8x256xf32>
    %c0_24 = arith.constant 0 : index
    %c0_25 = arith.constant 0 : index
    %56 = vector.load %arg8[%c0_24, %c0_25] : memref<12x8xf32, #tpu.memory_space<vmem>>, vector<12x8xf32>
    %cst_26 = arith.constant dense<0.000000e+00> : vector<12x256xf32>
    %57 = tpu.matmul %56, %55, %cst_26 {dimension_numbers = #tpu.dot_dimension_numbers<[1], [0], [0], [1], [0, 0, 1, 1], [], []>} : vector<12x8xf32>, vector<8x256xf32>, vector<12x256xf32> -> vector<12x256xf32>
    %c0_27 = arith.constant 0 : index
    %c0_28 = arith.constant 0 : index
    %58 = vector.load %arg9[%c0_27, %c0_28] : memref<12x4xf32, #tpu.memory_space<vmem>>, vector<12x4xf32>
    %cst_29 = arith.constant dense<0.000000e+00> : vector<12x256xf32>
    %59 = tpu.matmul %58, %1, %cst_29 {dimension_numbers = #tpu.dot_dimension_numbers<[1], [0], [0], [1], [0, 0, 1, 1], [], []>} : vector<12x4xf32>, vector<4x256xf32>, vector<12x256xf32> -> vector<12x256xf32>
    %60 = arith.addf %57, %59 : vector<12x256xf32>
    %c0_30 = arith.constant 0 : index
    %c0_31 = arith.constant 0 : index
    %61 = vector.load %arg10[%c0_30, %c0_31] : memref<12x1xf32, #tpu.memory_space<vmem>>, vector<12x1xf32>
    %62 = vector.broadcast %61 : vector<12x1xf32> to vector<12x256xf32>
    %63 = arith.addf %60, %62 : vector<12x256xf32>
    %64 = vector.extract_strided_slice %63 {offsets = [0, 0], sizes = [4, 256], strides = [1, 1]} : vector<12x256xf32> to vector<4x256xf32>
    %65 = vector.extract_strided_slice %63 {offsets = [4, 0], sizes = [4, 256], strides = [1, 1]} : vector<12x256xf32> to vector<4x256xf32>
    %66 = vector.extract_strided_slice %63 {offsets = [8, 0], sizes = [4, 256], strides = [1, 1]} : vector<12x256xf32> to vector<4x256xf32>
    %67 = arith.negf %66 : vector<4x256xf32>
    %68 = math.exp %67 : vector<4x256xf32>
    %cst_32 = arith.constant 1.000000e+00 : f32
    %69 = vector.broadcast %cst_32 : f32 to vector<4x256xf32>
    %70 = arith.addf %69, %68 : vector<4x256xf32>
    %71 = arith.divf %69, %70 : vector<4x256xf32>
    %cst_33 = arith.constant 1.000000e+00 : f32
    %72 = vector.broadcast %cst_33 : f32 to vector<4x256xf32>
    %73 = arith.subf %72, %71 : vector<4x256xf32>
    %74 = arith.mulf %73, %3 : vector<4x256xf32>
    %75 = math.tanh %65 : vector<4x256xf32>
    %76 = arith.mulf %71, %75 : vector<4x256xf32>
    %77 = arith.addf %74, %76 : vector<4x256xf32>
    %78 = arith.negf %64 : vector<4x256xf32>
    %79 = math.exp %78 : vector<4x256xf32>
    %cst_34 = arith.constant 1.000000e+00 : f32
    %80 = vector.broadcast %cst_34 : f32 to vector<4x256xf32>
    %81 = arith.addf %80, %79 : vector<4x256xf32>
    %82 = arith.divf %80, %81 : vector<4x256xf32>
    %83 = arith.mulf %82, %77 : vector<4x256xf32>
    %c0_35 = arith.constant 0 : index
    %c0_36 = arith.constant 0 : index
    %c0_37 = arith.constant 0 : index
    %84 = vector.load %arg11[%c0_35, %c0_36, %c0_37] : memref<1x4x256xf32, #tpu.memory_space<vmem>>, vector<1x4x256xf32>
    %85 = vector.shape_cast %84 : vector<1x4x256xf32> to vector<4x256xf32>
    %86 = vector.shape_cast %83 : vector<4x256xf32> to vector<1x4x256xf32>
    tpu.vector_store %arg11[%c0_35, %c0_36, %c0_37], %86 {strides = array<i32>} : memref<1x4x256xf32, #tpu.memory_space<vmem>>, vector<1x4x256xf32>,
    %c0_38 = arith.constant 0 : index
    %c0_39 = arith.constant 0 : index
    %c0_40 = arith.constant 0 : index
    %87 = vector.load %arg12[%c0_38, %c0_39, %c0_40] : memref<1x4x256xf32, #tpu.memory_space<vmem>>, vector<1x4x256xf32>
    %88 = vector.shape_cast %87 : vector<1x4x256xf32> to vector<4x256xf32>
    %89 = vector.shape_cast %77 : vector<4x256xf32> to vector<1x4x256xf32>
    tpu.vector_store %arg12[%c0_38, %c0_39, %c0_40], %89 {strides = array<i32>} : memref<1x4x256xf32, #tpu.memory_space<vmem>>, vector<1x4x256xf32>,
    return
  }
  func.func @transform_0(%arg0: i32) -> (i32, i32, i32) {
    %c0_i32 = arith.constant 0 : i32
    %c0_i32_0 = arith.constant 0 : i32
    %c0_i32_1 = arith.constant 0 : i32
    return %arg0, %c0_i32, %c0_i32_0 : i32, i32, i32
  }
  func.func @transform_1(%arg0: i32) -> (i32, i32, i32) {
    %c0_i32 = arith.constant 0 : i32
    %c0_i32_0 = arith.constant 0 : i32
    %c0_i32_1 = arith.constant 0 : i32
    return %arg0, %c0_i32, %c0_i32_0 : i32, i32, i32
  }
  func.func @transform_2(%arg0: i32) -> (i32, i32) {
    %c0_i32 = arith.constant 0 : i32
    %c0_i32_0 = arith.constant 0 : i32
    %c0_i32_1 = arith.constant 0 : i32
    return %c0_i32, %c0_i32_0 : i32, i32
  }
  func.func @transform_3(%arg0: i32) -> (i32, i32) {
    %c0_i32 = arith.constant 0 : i32
    %c0_i32_0 = arith.constant 0 : i32
    %c0_i32_1 = arith.constant 0 : i32
    return %c0_i32, %c0_i32_0 : i32, i32
  }
  func.func @transform_4(%arg0: i32) -> (i32, i32) {
    %c0_i32 = arith.constant 0 : i32
    %c0_i32_0 = arith.constant 0 : i32
    %c0_i32_1 = arith.constant 0 : i32
    return %c0_i32, %c0_i32_0 : i32, i32
  }
  func.func @transform_5(%arg0: i32) -> (i32, i32) {
    %c0_i32 = arith.constant 0 : i32
    %c0_i32_0 = arith.constant 0 : i32
    %c0_i32_1 = arith.constant 0 : i32
    return %c0_i32, %c0_i32_0 : i32, i32
  }
  func.func @transform_6(%arg0: i32) -> (i32, i32) {
    %c0_i32 = arith.constant 0 : i32
    %c0_i32_0 = arith.constant 0 : i32
    %c0_i32_1 = arith.constant 0 : i32
    return %c0_i32, %c0_i32_0 : i32, i32
  }
  func.func @transform_7(%arg0: i32) -> (i32, i32) {
    %c0_i32 = arith.constant 0 : i32
    %c0_i32_0 = arith.constant 0 : i32
    %c0_i32_1 = arith.constant 0 : i32
    return %c0_i32, %c0_i32_0 : i32, i32
  }
  func.func @transform_8(%arg0: i32) -> (i32, i32) {
    %c0_i32 = arith.constant 0 : i32
    %c0_i32_0 = arith.constant 0 : i32
    %c0_i32_1 = arith.constant 0 : i32
    return %c0_i32, %c0_i32_0 : i32, i32
  }
  func.func @transform_9(%arg0: i32) -> (i32, i32) {
    %c0_i32 = arith.constant 0 : i32
    %c0_i32_0 = arith.constant 0 : i32
    %c0_i32_1 = arith.constant 0 : i32
    return %c0_i32, %c0_i32_0 : i32, i32
  }
  func.func @transform_10(%arg0: i32) -> (i32, i32, i32) {
    %c0_i32 = arith.constant 0 : i32
    %c0_i32_0 = arith.constant 0 : i32
    %c0_i32_1 = arith.constant 0 : i32
    return %arg0, %c0_i32, %c0_i32_0 : i32, i32, i32
  }
  func.func @transform_11(%arg0: i32) -> (i32, i32, i32) {
    %c0_i32 = arith.constant 0 : i32
    %c0_i32_0 = arith.constant 0 : i32
    %c0_i32_1 = arith.constant 0 : i32
    return %arg0, %c0_i32, %c0_i32_0 : i32, i32, i32
  }
}

</mosaic_0001>

<bundles_post_ra>
// kernel: self_attention_memory_forward.1
= control target key start
LH: loop header
LB: loop body
LE: loop exit
PB: predicated region body
PF: predicated region fallthrough
CT: control target
= control target key end

     0   :  { %s3373_s17 = smov 0   ;;  %s5442_s0 = inlined_call_operand.vmem [shape: f32[2,4,256], index: 0, kind: input, shape index: {}]   ;;  %s5443_s1 = inlined_call_operand.vmem [shape: f32[2,4,256], index: 1, kind: input, shape index: {}]   ;;  %s5444_s2 = inlined_call_operand.vmem [shape: f32[72,4], index: 2, kind: input, shape index: {}]   ;;  %s5445_s3 = inlined_call_operand.vmem [shape: f32[72,1], index: 3, kind: input, shape index: {}]   ;;  %s5446_s4 = inlined_call_operand.vmem [shape: f32[40,4], index: 4, kind: input, shape index: {}]   ;;  %s5447_s5 = inlined_call_operand.vmem [shape: f32[40,1], index: 5, kind: input, shape index: {}]   ;;  %s5448_s6 = inlined_call_operand.vmem [shape: f32[8,1], index: 6, kind: input, shape index: {}]   ;;  %s5449_s7 = inlined_call_operand.vmem [shape: f32[12,8], index: 7, kind: input, shape index: {}]   ;;  %s5450_s8 = inlined_call_operand.vmem [shape: f32[12,4], index: 8, kind: input, shape index: {}]   ;;  %s5451_s9 = inlined_call_operand.vmem [shape: f32[12,1], index: 9, kind: input, shape index: {}]   ;;  %s5452_s10 = inlined_call_operand.vmem [shape: f32[2,4,256], index: 10, kind: output, shape index: {0}]   ;;  %s5453_s11 = inlined_call_operand.vmem [shape: f32[2,4,256], index: 11, kind: output, shape index: {1}]  }
   0x1 LB: > { %s2748_s18 = sadd.s32 4294967295, %s3309_s17   ;;  %p2752_p0 = scmp.ge.s32.totalorder %s3309_s17, 1  ;;  %s3309_s17 = sphi %s3373_s17, %s22_s17  }
   0x2   : > { %p350_p1 = scmp.lt.s32.totalorder %s3309_s17, 3 }
   0x4   : > { %p351_p2 = pnand %p2752_p0, %p350_p1 }
   0x6   : > { %354 = sbr.rel (%p351_p2) target bundleno = 1420 (0x58c), region = 60 }
   0xb   : > { %p400_p3 = scmp.lt.s32.totalorder %s2748_s18, 1  ;;  %v5454_v0 = vmov 0.0   ;;  %v3312_v1 = vmov 0   ;;  %v436_v2 = vld [vmem:[%s5445_s3 + $0x20] sm:$0xff]  ;;  %v437_v3 = vld [vmem:[%s5445_s3 + $0x28] sm:$0xff]  ;;  %vm516_vm0 = vcmask 1043456  }
   0xc   : > { %585 = vmatprep.mubr.f32.mxu0 %v5454_v0  ;;  %760 = vmatprep.mubr.f32.mxu1 %v5454_v0  ;;  %v645_v5 = vld [vmem:[%s5447_s5] sm:$0xff]  ;;  %vm488_vm1 = vcmask 31744   ;;  %v646_v11 = vld [vmem:[%s5447_s5 + $0x8] sm:$0xff]  ;;  %v438_v12 = vld [vmem:[%s5445_s3 + $0x30] sm:$0xff]  ;;  %vm955_vm2 = vcmask 261120   ;;  %vm2495_vm3 = vcmask 64512  }
   0xd   : > { %s6109_s18 = smov (!%p400_p3, %s2748_s18), 1  ;;  %2837 = vset.pattern.permute.xlu0 %v3312_v1  ;;  %2838 = vset.pattern.permute.xlu1 %v3312_v1  ;;  %v423_v8 = vld [vmem:[%s5444_s2] sm:$0xff]  ;;  %v424_v13 = vld [vmem:[%s5444_s2 + $0x8] sm:$0xff]  ;;  %v647_v15 = vld [vmem:[%s5447_s5 + $0x10] sm:$0xff] }
   0xe   : > { %s3385_s19 = sshll.u32 %s6109_s18, 3  ;;  %463 = vperm.xlu0 %2837, %v436_v2   ;;  %468 = vperm.xlu1 %2838, %v437_v3   ;;  %v640_v10 = vld [vmem:[%s5446_s4] sm:$0xff]  ;;  %v641_v14 = vld [vmem:[%s5446_s4 + $0x8] sm:$0xff]  ;;  %v439_v16 = vld [vmem:[%s5445_s3 + $0x38] sm:$0xff] }
   0xf   : > { %s3397_s26 = scalar_lea.vmem %s5442_s0, %s3385_s19  ;;  %s3404_s29 = scalar_lea.vmem %s5443_s1, %s3385_s19  ;;  %v425_v17 = vld [vmem:[%s5444_s2 + $0x10] sm:$0xff]  ;;  %v648_v19 = vld [vmem:[%s5447_s5 + $0x18] sm:$0xff]  ;;  %v432_v24 = vld [vmem:[%s5445_s3] sm:$0xff] }
  0x10   : > { %v421_v4 = vld [vmem:[%s3397_s26] sm:$0xff]  ;;  %v642_v18 = vld [vmem:[%s5446_s4 + $0x10] sm:$0xff]  ;;  %v426_v21 = vld [vmem:[%s5444_s2 + $0x18] sm:$0xff]  ;;  %s419_s20 = scalar_lea.vmem %s5453_s11, %s3385_s19 }
  0x11   : > { %v3409_v6 = vcombine.high %v421_v4, %v421_v4  ;;  %v422_v7 = vld [vmem:[%s3404_s29] sm:$0xff]  ;;  %v434_v20 = vld [vmem:[%s5445_s3 + $0x10] sm:$0xff]  ;;  %v643_v22 = vld [vmem:[%s5446_s4 + $0x18] sm:$0xff] }
  0x12   : > { %v3415_v9 = vcombine.high %v422_v7, %v422_v7  ;;  %652 = vperm.xlu0 %2837, %v645_v5   ;;  %657 = vperm.xlu1 %2838, %v646_v11   ;;  %v435_v23 = vld [vmem:[%s5445_s3 + $0x18] sm:$0xff]  ;;  %v427_v25 = vld [vmem:[%s5444_s2 + $0x20] sm:$0xff]  ;;  %v433_v26 = vld [vmem:[%s5445_s3 + $0x8] sm:$0xff] }
  0x13   : > { %5643 = vst [vmem:[#allocation2_spill] sm:$0xff] %v3409_v6  ;;  %2761 = vmatprep.subr.msk.mxu0 %vm516_vm0, %v3409_v6  ;;  %v428_v27 = vld [vmem:[%s5444_s2 + $0x28] sm:$0xff]  ;;  %v429_v28 = vld [vmem:[%s5444_s2 + $0x30] sm:$0xff]  ;;  %v430_v29 = vld [vmem:[%s5444_s2 + $0x38] sm:$0xff] }
  0x14   : > { %5644 = vst [vmem:[#allocation3_spill] sm:$0xff] %v3415_v9  ;;  %2762 = vmatpush1.msk.msra.mxu0 %vm516_vm0, %v421_v4  ;;  %2772 = vmatprep.subr.msk.mxu1 %vm516_vm0, %v3415_v9  ;;  %v644_v30 = vld [vmem:[%s5446_s4 + $0x20] sm:$0xff] }
  0x15   : > { %2763 = vmatmul.mubr.msk.f32.vlgmr.msra.gmra.mxu0 %vm488_vm1, %v423_v8  ;;  %2773 = vmatpush1.msk.msra.mxu1 %vm516_vm0, %v422_v7  ;;  %v431_v31 = vld [vmem:[%s5444_s2 + $0x40] sm:$0xff] }
  0x16   : > { %2774 = vmatmul.mubr.msk.f32.vlgmr.msra.gmra.mxu1 %vm488_vm1, %v640_v10  ;;  %591 = vmatprep.mubr.f32.mxu0 %v5454_v0 }
  0x17   : > { %766 = vmatprep.mubr.f32.mxu1 %v5454_v0  ;;  %473 = vperm.xlu0 %2837, %v438_v12  }
  0x18   : > { %662 = vperm.xlu1 %2838, %v647_v15  }
  0x19   : > { %2764 = vmatmul.mubr.msk.f32.gmra.mxu0 %vm488_vm1, %v424_v13 }
  0x1a   : > { %2775 = vmatmul.mubr.msk.f32.gmra.mxu1 %vm488_vm1, %v641_v14  ;;  %597 = vmatprep.mubr.f32.mxu0 %v5454_v0 }
  0x1b   : > { %772 = vmatprep.mubr.f32.mxu1 %v5454_v0  ;;  %478 = vperm.xlu0 %2837, %v439_v16  }
  0x1c   : > { %667 = vperm.xlu1 %2838, %v648_v19  }
  0x1d   : > { %2765 = vmatmul.mubr.msk.f32.gmra.mxu0 %vm488_vm1, %v425_v17 }
  0x1e   : > { %2776 = vmatmul.mubr.msk.f32.gmra.mxu1 %vm488_vm1, %v642_v18  ;;  %603 = vmatprep.mubr.f32.mxu0 %v5454_v0 }
  0x1f   : > { %778 = vmatprep.mubr.f32.mxu1 %v5454_v0  ;;  %453 = vperm.xlu0 %2837, %v434_v20  }
  0x20   : > { %458 = vperm.xlu1 %2838, %v435_v23  }
  0x21   : > { %2766 = vmatmul.mubr.msk.f32.gmra.mxu0 %vm488_vm1, %v426_v21 }
  0x22   : > { %2777 = vmatmul.mubr.msk.f32.gmra.mxu1 %vm488_vm1, %v643_v22  ;;  %609 = vmatprep.mubr.f32.mxu0 %v5454_v0 }
  0x23   : > { %784 = vmatprep.mubr.f32.mxu1 %v5454_v0  ;;  %443 = vperm.xlu0 %2837, %v432_v24  }
  0x24   : > { %448 = vperm.xlu1 %2838, %v433_v26  }
  0x25   : > { %2767 = vmatmul.mubr.msk.f32.gmra.mxu0 %vm488_vm1, %v427_v25 }
  0x26   : > { %615 = vmatprep.mubr.f32.mxu0 %v5454_v0  ;;  %2778 = vmatmul.mubr.msk.f32.gmra.mxu1 %vm488_vm1, %v644_v30 }
  0x27   : > { %1036 = vmatprep.mubr.bf16.mxu1 %v3312_v1 }
  0x29   : > { %2768 = vmatmul.mubr.msk.f32.gmra.mxu0 %vm488_vm1, %v428_v27 }
  0x2a   : > { %621 = vmatprep.mubr.f32.mxu0 %v5454_v0 }
  0x2d   : > { %2769 = vmatmul.mubr.msk.f32.gmra.mxu0 %vm488_vm1, %v429_v28 }
  0x2e   : > { %627 = vmatprep.mubr.f32.mxu0 %v5454_v0 }
  0x31   : > { %2770 = vmatmul.mubr.msk.f32.gmra.mxu0 %vm488_vm1, %v430_v29 }
  0x32   : > { %633 = vmatprep.mubr.f32.mxu0 %v5454_v0 }
  0x35   : > { %2771 = vmatmul.mubr.msk.f32.gmra.mxu0 %vm488_vm1, %v431_v31 }
  0x36   : > { %1277 = vmatprep.mubr.bf16.mxu0 %v3312_v1 }
  0x89   : > { %v469_v32 = vpop.permute.xlu1 %468  ;;  %v464_v33 = vpop.permute.xlu0 %463 }
  0x8d   : > { %v658_v34 = vpop.permute.xlu1 %657  ;;  %v653_v35 = vpop.permute.xlu0 %652 }
  0x92   : > { %v3519_v37 = vpop.permute.xlu0 %473 }
  0x93   : > { %v3517_v36 = vpop.permute.xlu1 %662 }
  0x96   : > { %v3523_v42 = vpop.permute.xlu0 %478 }
  0x97   : > { %v3521_v39 = vpop.permute.xlu1 %667 }
  0x9a   : > { %v454_v49 = vpop.permute.xlu0 %453 }
  0x9b   : > { %v459_v46 = vpop.permute.xlu1 %458 }
  0x9e   : > { %v444_v56 = vpop.permute.xlu0 %443 }
  0x9f   : > { %v449_v53 = vpop.permute.xlu1 %448 }
  0xd5   : > { %v587_v38 = vpop.f32.mrf.mxu0 }
  0xd6   : > { %v762_v40 = vpop.f32.mrf.mxu1  ;;  %v588_v14 = vadd.f32 %v587_v38, %v444_v56 }
  0xd7   : > { %v589_v41 = vpop.f32.mrf.mxu0  ;;  %v763_v2 = vadd.f32 %v762_v40, %v653_v35 }
  0xd8   : > { %v764_v44 = vpop.f32.mrf.mxu1  ;;  %v590_v63 = vadd.f32 %v589_v41, %v444_v56 }
  0xd9   : > { %v593_v43 = vpop.f32.mrf.mxu0  ;;  %v765_v7 = vadd.f32 %v764_v44, %v653_v35 }
  0xda   : > { %v768_v47 = vpop.f32.mrf.mxu1  ;;  %v594_v5 = vadd.f32 %v593_v43, %v449_v53 }
  0xdb   : > { %v595_v45 = vpop.f32.mrf.mxu0  ;;  %v769_v17 = vadd.f32 %v768_v47, %v658_v34  ;;  %v2580_v47 = vld [vmem:[%s5451_s9 + $0x8] sm:$0xf] }
  0xdc   : > { %v770_v51 = vpop.f32.mrf.mxu1  ;;  %v596_v57 = vadd.f32 %v595_v45, %v449_v53  ;;  %v791_v20 = vpack.c.bf16 %v594_v5, %v588_v14 }
  0xdd   : > { %v599_v48 = vpop.f32.mrf.mxu0  ;;  %v771_v22 = vadd.f32 %v770_v51, %v658_v34 }
  0xde   : > { %v600_v60 = vadd.f32 %v599_v48, %v454_v49  ;;  %v774_v61 = vpop.f32.mrf.mxu1  ;;  %v792_v11 = vpack.c.bf16 %v596_v57, %v590_v63  ;;  %v2579_v48 = vld [vmem:[%s5451_s9] sm:$0xff] }
  0xdf   : > { %v601_v50 = vpop.f32.mrf.mxu0  ;;  %v775_v27 = vadd.f32 %v774_v61, %v3517_v36 }
  0xe0   : > { %v602_v58 = vadd.f32 %v601_v50, %v454_v49  ;;  %v776_v15 = vpop.f32.mrf.mxu1 }
  0xe1   : > { %v605_v52 = vpop.f32.mrf.mxu0  ;;  %v777_v31 = vadd.f32 %v776_v15, %v3517_v36 }
  0xe2   : > { %v606_v54 = vadd.f32 %v605_v52, %v459_v46  ;;  %v780_v25 = vpop.f32.mrf.mxu1 }
  0xe3   : > { %v607_v55 = vpop.f32.mrf.mxu0  ;;  %v781_v38 = vadd.f32 %v780_v25, %v3521_v39 }
  0xe4   : > { %v608_v59 = vadd.f32 %v607_v55, %v459_v46  ;;  %v793_v8 = vpack.c.bf16 %v606_v54, %v600_v60  ;;  %v782_v34 = vpop.f32.mrf.mxu1 }
  0xe5   : > { %v611_v62 = vpop.f32.mrf.mxu0  ;;  %v783_v44 = vadd.f32 %v782_v34, %v3521_v39  ;;  %v440_v39 = vld [vmem:[%s5445_s3 + $0x40] sm:$0xff] }
  0xe6   : > { %v794_v3 = vpack.c.bf16 %v608_v59, %v602_v58  ;;  %v612_v4 = vadd.f32 %v611_v62, %v464_v33 }
  0xe7   : > { %v613_v10 = vpop.f32.mrf.mxu0 }
  0xe8   : > { %v2839_v12 = vpack.i.bf16 %v763_v2, %v612_v4  ;;  %v614_v13 = vadd.f32 %v613_v10, %v464_v33  ;;  %1016 = vmatprep.subr.bf16.mxu1 %v794_v3  ;;  %1257 = vmatprep.subr.bf16.mxu0 %v794_v3 }
  0xe9   : > { %v617_v16 = vpop.f32.mrf.mxu0  ;;  %1017 = vmatpush1.bf16.msra.mxu1 %v793_v8  ;;  %1258 = vmatpush1.bf16.msra.mxu0 %v793_v8 }
  0xea   : > { %v2927_v18 = vpack.i.bf16 %v765_v7, %v614_v13  ;;  %v618_v19 = vadd.f32 %v617_v16, %v469_v32  ;;  %2840 = vxpose.xlu0.b32.start [1/4] (short) %v2839_v12, 128  ;;  %1018 = vmatprep.subr.bf16.mxu1 %v792_v11 }
  0xeb   : > { %1259 = vmatprep.subr.bf16.mxu0 %v792_v11  ;;  %v619_v21 = vpop.f32.mrf.mxu0 }
  0xec   : > { %v2841_v23 = vpack.i.bf16 %v769_v17, %v618_v19  ;;  %v620_v24 = vadd.f32 %v619_v21, %v469_v32  ;;  %2928 = vxpose.xlu1.b32.start [1/4] (short) %v2927_v18, 128 }
  0xed   : > { %v623_v26 = vpop.f32.mrf.mxu0  ;;  %1019 = vmatpush1.bf16.msra.mxu1 %v791_v20  ;;  %1260 = vmatpush1.bf16.msra.mxu0 %v791_v20 }
  0xee   : > { %v2929_v28 = vpack.i.bf16 %v771_v22, %v620_v24  ;;  %v624_v29 = vadd.f32 %v623_v26, %v3519_v37  ;;  %2842 = vxpose.xlu0.b32.cont [2/4] (short) %v2841_v23, 128 }
  0xef   : > { %v625_v30 = vpop.f32.mrf.mxu0 }
  0xf0   : > { %v2843_v33 = vpack.i.bf16 %v775_v27, %v624_v29  ;;  %v626_v35 = vadd.f32 %v625_v30, %v3519_v37  ;;  %2930 = vxpose.xlu1.b32.cont [2/4] (short) %v2929_v28, 128  ;;  %v649_v37 = vld [vmem:[%s5447_s5 + $0x20] sm:$0xff] }
  0xf1   : > { %v629_v32 = vpop.f32.mrf.mxu0 }
  0xf2   : > { %v2931_v40 = vpack.i.bf16 %v777_v31, %v626_v35  ;;  %v630_v41 = vadd.f32 %v629_v32, %v3523_v42  ;;  %2844 = vxpose.xlu0.b32.cont [3/4] (short) %v2843_v33, 128 }
  0xf3   : > { %v631_v43 = vpop.f32.mrf.mxu0 }
  0xf4   : > { %v2845_v45 = vpack.i.bf16 %v781_v38, %v630_v41  ;;  %v632_v46 = vadd.f32 %v631_v43, %v3523_v42  ;;  %2932 = vxpose.xlu1.b32.cont [3/4] (short) %v2931_v40, 128  ;;  %v2400_v42 = vld [vmem:[%s5448_s6] sm:$0xff] }
  0xf6   : > { %v2933_v36 = vpack.i.bf16 %v783_v44, %v632_v46  ;;  %2846 = vxpose.xlu0.b32.end [4/4] (short) %v2845_v45, 128 }
  0xf8   : > { %2934 = vxpose.xlu1.b32.end [4/4] (short) %v2933_v36, 128 }
 0x146   : > { %672 = vperm.xlu1 %2838, %v649_v37  }
 0x14a   : > { %2588 = vperm.xlu1 %2838, %v2580_v47  }
 0x14f   : > { %483 = vperm.xlu0 %2837, %v440_v39  }
 0x153   : > { %2403 = vperm.xlu0 %2837, %v2400_v42  }
 0x157   : > { %2583 = vperm.xlu0 %2837, %v2579_v48  }
 0x166   : > { %v2847_v49 = vpop.trf.xlu0 }
 0x167   : > { %v2851_v51 = vunpack.i.h.bf16 %v2847_v49  ;;  %v2848_v52 = vunpack.i.l.bf16 %v2847_v49 }
 0x168   : > { %v3548_v50 = vpop.trf.xlu1 }
 0x16a   : > { %v2852_v53 = vpop.trf.xlu0 }
 0x16b   : > { %v2856_v54 = vunpack.i.h.bf16 %v2852_v53  ;;  %v2853_v55 = vunpack.i.l.bf16 %v2852_v53 }
 0x16c   : > { %v3550_v56 = vpop.trf.xlu1 }
 0x16d   : > { %v859_v57 = vpack.c.bf16 %v2853_v55, %v2848_v52  ;;  %v939_v58 = vpack.c.bf16 %v2856_v54, %v2851_v51 }
 0x16e   : > { %v2857_v59 = vpop.trf.xlu0 }
 0x16f   : > { %2779 = vmatmul.mubr.msk.bf16.vlgmr.msra.gmra.mxu1 %vm955_vm2, %v859_v57  ;;  %2795 = vmatmul.mubr.msk.bf16.vlgmr.msra.gmra.mxu0 %vm955_vm2, %v939_v58  ;;  %v2861_v61 = vunpack.i.h.bf16 %v2857_v59  ;;  %v2858_v62 = vunpack.i.l.bf16 %v2857_v59 }
 0x170   : > { %1046 = vmatprep.mubr.bf16.mxu1 %v3312_v1  ;;  %1287 = vmatprep.mubr.bf16.mxu0 %v3312_v1  ;;  %v3556_v60 = vpop.trf.xlu1 }
 0x172   : > { %v2862_v63 = vpop.trf.xlu0 }
 0x173   : > { %v2866_v2 = vunpack.i.h.bf16 %v2862_v63  ;;  %v2863_v3 = vunpack.i.l.bf16 %v2862_v63 }
 0x174   : > { %v3558_v4 = vpop.trf.xlu1 }
 0x175   : > { %v860_v5 = vpack.c.bf16 %v2863_v3, %v2858_v62  ;;  %v940_v7 = vpack.c.bf16 %v2866_v2, %v2861_v61 }
 0x176   : > { %v2867_v8 = vpop.trf.xlu0 }
 0x177   : > { %2780 = vmatmul.mubr.msk.bf16.gmra.mxu1 %vm955_vm2, %v860_v5  ;;  %2796 = vmatmul.mubr.msk.bf16.gmra.mxu0 %vm955_vm2, %v940_v7  ;;  %v2871_v11 = vunpack.i.h.bf16 %v2867_v8  ;;  %v2868_v12 = vunpack.i.l.bf16 %v2867_v8 }
 0x178   : > { %1056 = vmatprep.mubr.bf16.mxu1 %v3312_v1  ;;  %1297 = vmatprep.mubr.bf16.mxu0 %v3312_v1  ;;  %v3564_v10 = vpop.trf.xlu1 }
 0x17a   : > { %v2872_v13 = vpop.trf.xlu0 }
 0x17b   : > { %v2876_v14 = vunpack.i.h.bf16 %v2872_v13  ;;  %v2873_v15 = vunpack.i.l.bf16 %v2872_v13 }
 0x17c   : > { %v3566_v16 = vpop.trf.xlu1 }
 0x17d   : > { %v861_v17 = vpack.c.bf16 %v2873_v15, %v2868_v12  ;;  %v941_v18 = vpack.c.bf16 %v2876_v14, %v2871_v11  ;;  %v2939_v14 = vunpack.i.h.bf16 %v3548_v50  ;;  %v2936_v15 = vunpack.i.l.bf16 %v3548_v50 }
 0x17e   : > { %v2877_v19 = vpop.trf.xlu0  ;;  %v2954_v50 = vunpack.i.h.bf16 %v3558_v4 }
 0x17f   : > { %2781 = vmatmul.mubr.msk.bf16.gmra.mxu1 %vm955_vm2, %v861_v17  ;;  %2797 = vmatmul.mubr.msk.bf16.gmra.mxu0 %vm955_vm2, %v941_v18  ;;  %v2881_v21 = vunpack.i.h.bf16 %v2877_v19  ;;  %v2878_v22 = vunpack.i.l.bf16 %v2877_v19  ;;  %v2944_v17 = vunpack.i.h.bf16 %v3550_v56  ;;  %v2941_v18 = vunpack.i.l.bf16 %v3550_v56 }
 0x180   : > { %1066 = vmatprep.mubr.bf16.mxu1 %v3312_v1  ;;  %1307 = vmatprep.mubr.bf16.mxu0 %v3312_v1  ;;  %v3572_v20 = vpop.trf.xlu1 }
 0x181   : > { %v867_v19 = vpack.c.bf16 %v2941_v18, %v2936_v15 }
 0x182   : > { %v2882_v23 = vpop.trf.xlu0 }
 0x183   : > { %v2886_v24 = vunpack.i.h.bf16 %v2882_v23  ;;  %v2883_v25 = vunpack.i.l.bf16 %v2882_v23  ;;  %v2946_v23 = vunpack.i.l.bf16 %v3556_v60 }
 0x184   : > { %v3574_v26 = vpop.trf.xlu1 }
 0x185   : > { %v862_v27 = vpack.c.bf16 %v2883_v25, %v2878_v22  ;;  %v942_v28 = vpack.c.bf16 %v2886_v24, %v2881_v21  ;;  %v947_v21 = vpack.c.bf16 %v2944_v17, %v2939_v14  ;;  %v2949_v22 = vunpack.i.h.bf16 %v3556_v60 }
 0x186   : > { %v2887_v29 = vpop.trf.xlu0  ;;  %v2951_v24 = vunpack.i.l.bf16 %v3558_v4  ;;  %v2964_v60 = vunpack.i.h.bf16 %v3566_v16 }
 0x187   : > { %2782 = vmatmul.mubr.msk.bf16.gmra.mxu1 %vm955_vm2, %v862_v27  ;;  %2798 = vmatmul.mubr.msk.bf16.gmra.mxu0 %vm955_vm2, %v942_v28  ;;  %v2891_v31 = vunpack.i.h.bf16 %v2887_v29  ;;  %v2888_v33 = vunpack.i.l.bf16 %v2887_v29  ;;  %v948_v56 = vpack.c.bf16 %v2954_v50, %v2949_v22  ;;  %v2959_v27 = vunpack.i.h.bf16 %v3564_v10 }
 0x188   : > { %1076 = vmatprep.mubr.bf16.mxu1 %v3312_v1  ;;  %1317 = vmatprep.mubr.bf16.mxu0 %v3312_v1  ;;  %v3580_v30 = vpop.trf.xlu1  ;;  %v868_v25 = vpack.c.bf16 %v2951_v24, %v2946_v23  ;;  %v2956_v28 = vunpack.i.l.bf16 %v3564_v10  ;;  %v2961_v29 = vunpack.i.l.bf16 %v3566_v16  ;;  %v2974_v10 = vunpack.i.h.bf16 %v3574_v26 }
 0x189   : > { %v949_v4 = vpack.c.bf16 %v2964_v60, %v2959_v27 }
 0x18a   : > { %v2892_v35 = vpop.trf.xlu0 }
 0x18b   : > { %v2896_v34 = vunpack.i.h.bf16 %v2892_v35  ;;  %v2893_v32 = vunpack.i.l.bf16 %v2892_v35  ;;  %v2966_v35 = vunpack.i.l.bf16 %v3572_v20 }
 0x18c   : > { %v3582_v38 = vpop.trf.xlu1 }
 0x18d   : > { %v863_v40 = vpack.c.bf16 %v2893_v32, %v2888_v33  ;;  %v943_v41 = vpack.c.bf16 %v2896_v34, %v2891_v31  ;;  %v869_v31 = vpack.c.bf16 %v2961_v29, %v2956_v28  ;;  %v2969_v33 = vunpack.i.h.bf16 %v3572_v20 }
 0x18e   : > { %v2897_v43 = vpop.trf.xlu0  ;;  %v2971_v34 = vunpack.i.l.bf16 %v3574_v26  ;;  %v2984_v20 = vunpack.i.h.bf16 %v3582_v38 }
 0x18f   : > { %2783 = vmatmul.mubr.msk.bf16.gmra.mxu1 %vm955_vm2, %v863_v40  ;;  %2799 = vmatmul.mubr.msk.bf16.gmra.mxu0 %vm955_vm2, %v943_v41  ;;  %v2901_v45 = vunpack.i.h.bf16 %v2897_v43  ;;  %v2898_v46 = vunpack.i.l.bf16 %v2897_v43  ;;  %v950_v16 = vpack.c.bf16 %v2974_v10, %v2969_v33  ;;  %v2979_v40 = vunpack.i.h.bf16 %v3580_v30 }
 0x190   : > { %1086 = vmatprep.mubr.bf16.mxu1 %v3312_v1  ;;  %1327 = vmatprep.mubr.bf16.mxu0 %v3312_v1  ;;  %v3588_v44 = vpop.trf.xlu1  ;;  %v870_v32 = vpack.c.bf16 %v2971_v34, %v2966_v35  ;;  %v2976_v41 = vunpack.i.l.bf16 %v3580_v30  ;;  %v2981_v43 = vunpack.i.l.bf16 %v3582_v38 }
 0x191   : > { %v951_v26 = vpack.c.bf16 %v2984_v20, %v2979_v40 }
 0x192   : > { %v2902_v36 = vpop.trf.xlu0 }
 0x193   : > { %v2906_v37 = vunpack.i.h.bf16 %v2902_v36  ;;  %v2903_v47 = vunpack.i.l.bf16 %v2902_v36  ;;  %v2986_v36 = vunpack.i.l.bf16 %v3588_v44 }
 0x194   : > { %v3590_v39 = vpop.trf.xlu1 }
 0x195   : > { %v864_v42 = vpack.c.bf16 %v2903_v47, %v2898_v46  ;;  %v944_v48 = vpack.c.bf16 %v2906_v37, %v2901_v45  ;;  %v871_v45 = vpack.c.bf16 %v2981_v43, %v2976_v41  ;;  %v2989_v46 = vunpack.i.h.bf16 %v3588_v44 }
 0x196   : > { %v2907_v49 = vpop.trf.xlu0  ;;  %v2994_v30 = vunpack.i.h.bf16 %v3590_v39  ;;  %v2991_v37 = vunpack.i.l.bf16 %v3590_v39  ;;  %v3666_v39 = vpop.f32.mrf.mxu0 }
 0x197   : > { %2784 = vmatmul.mubr.msk.bf16.gmra.mxu1 %vm955_vm2, %v864_v42  ;;  %2800 = vmatmul.mubr.msk.bf16.gmra.mxu0 %vm955_vm2, %v944_v48  ;;  %v2911_v52 = vunpack.i.h.bf16 %v2907_v49  ;;  %v2908_v53 = vunpack.i.l.bf16 %v2907_v49  ;;  %5646 = vst [vmem:[#allocation5_spill] sm:$0xff] %v3666_v39 }
 0x198   : > { %1096 = vmatprep.mubr.bf16.mxu1 %v3312_v1  ;;  %1337 = vmatprep.mubr.bf16.mxu0 %v3312_v1  ;;  %v3596_v51 = vpop.trf.xlu1  ;;  %v872_v47 = vpack.c.bf16 %v2991_v37, %v2986_v36  ;;  %v952_v38 = vpack.c.bf16 %v2994_v30, %v2989_v46 }
 0x199   : > { %v2999_v42 = vunpack.i.h.bf16 %v3596_v51  ;;  %v2996_v48 = vunpack.i.l.bf16 %v3596_v51 }
 0x19a   : > { %v2912_v54 = vpop.trf.xlu0 }
 0x19b   : > { %v2916_v55 = vunpack.i.h.bf16 %v2912_v54  ;;  %v2913_v57 = vunpack.i.l.bf16 %v2912_v54 }
 0x19c   : > { %v3598_v58 = vpop.trf.xlu1 }
 0x19d   : > { %v865_v59 = vpack.c.bf16 %v2913_v57, %v2908_v53  ;;  %v945_v61 = vpack.c.bf16 %v2916_v55, %v2911_v52  ;;  %v3004_v44 = vunpack.i.h.bf16 %v3598_v58  ;;  %v3001_v49 = vunpack.i.l.bf16 %v3598_v58  ;;  %v3664_v52 = vpop.f32.mrf.mxu1  ;;  %v637_v57 = vpop.f32.mrf.mxu0 }
 0x19e   : > { %v2917_v62 = vpop.trf.xlu0  ;;  %5645 = vst [vmem:[#allocation4_spill] sm:$0xff] %v3664_v52 }
 0x19f   : > { %2785 = vmatmul.mubr.msk.bf16.gmra.mxu1 %vm955_vm2, %v865_v59  ;;  %2801 = vmatmul.mubr.msk.bf16.gmra.mxu0 %vm955_vm2, %v945_v61  ;;  %v2921_v2 = vunpack.i.h.bf16 %v2917_v62  ;;  %v2918_v3 = vunpack.i.l.bf16 %v2917_v62  ;;  %v873_v53 = vpack.c.bf16 %v3001_v49, %v2996_v48  ;;  %v953_v54 = vpack.c.bf16 %v3004_v44, %v2999_v42  ;;  %v788_v55 = vpop.f32.mrf.mxu1 }
 0x1a0   : > { %1106 = vmatprep.mubr.bf16.mxu1 %v3312_v1  ;;  %1347 = vmatprep.mubr.bf16.mxu0 %v3312_v1  ;;  %v3604_v63 = vpop.trf.xlu1 }
 0x1a1   : > { %v3009_v51 = vunpack.i.h.bf16 %v3604_v63  ;;  %v3006_v58 = vunpack.i.l.bf16 %v3604_v63 }
 0x1a2   : > { %v2922_v5 = vpop.trf.xlu0 }
 0x1a3   : > { %v2926_v7 = vunpack.i.h.bf16 %v2922_v5  ;;  %v2923_v8 = vunpack.i.l.bf16 %v2922_v5 }
 0x1a4   : > { %v3606_v11 = vpop.trf.xlu1 }
 0x1a5   : > { %v866_v12 = vpack.c.bf16 %v2923_v8, %v2918_v3  ;;  %v946_v13 = vpack.c.bf16 %v2926_v7, %v2921_v2  ;;  %v3014_v62 = vunpack.i.h.bf16 %v3606_v11  ;;  %v3011_v2 = vunpack.i.l.bf16 %v3606_v11 }
 0x1a7   : > { %2786 = vmatmul.mubr.msk.bf16.gmra.mxu1 %vm955_vm2, %v866_v12  ;;  %2802 = vmatmul.mubr.msk.bf16.gmra.mxu0 %vm955_vm2, %v946_v13  ;;  %v874_v7 = vpack.c.bf16 %v3011_v2, %v3006_v58  ;;  %v954_v8 = vpack.c.bf16 %v3014_v62, %v3009_v51 }
 0x1a8   : > { %1116 = vmatprep.mubr.bf16.mxu1 %v3312_v1  ;;  %1357 = vmatprep.mubr.bf16.mxu0 %v3312_v1 }
 0x1af   : > { %2787 = vmatmul.mubr.msk.bf16.gmra.mxu1 %vm955_vm2, %v867_v19  ;;  %2803 = vmatmul.mubr.msk.bf16.gmra.mxu0 %vm955_vm2, %v947_v21 }
 0x1b0   : > { %1126 = vmatprep.mubr.bf16.mxu1 %v3312_v1  ;;  %1367 = vmatprep.mubr.bf16.mxu0 %v3312_v1 }
 0x1b7   : > { %2788 = vmatmul.mubr.msk.bf16.gmra.mxu1 %vm955_vm2, %v868_v25  ;;  %2804 = vmatmul.mubr.msk.bf16.gmra.mxu0 %vm955_vm2, %v948_v56 }
 0x1b8   : > { %1136 = vmatprep.mubr.bf16.mxu1 %v3312_v1  ;;  %1377 = vmatprep.mubr.bf16.mxu0 %v3312_v1 }
 0x1bf   : > { %2789 = vmatmul.mubr.msk.bf16.gmra.mxu1 %vm955_vm2, %v869_v31  ;;  %2805 = vmatmul.mubr.msk.bf16.gmra.mxu0 %vm955_vm2, %v949_v4 }
 0x1c0   : > { %1146 = vmatprep.mubr.bf16.mxu1 %v3312_v1  ;;  %1387 = vmatprep.mubr.bf16.mxu0 %v3312_v1 }
 0x1c1   : > { %v3668_v59 = vpop.permute.xlu1 %672 }
 0x1c2   : > { %5647 = vst [vmem:[#allocation6_spill] sm:$0xff] %v3668_v59  ;;  %v789_v3 = vadd.f32 %v788_v55, %v3668_v59 }
 0x1c4   : > { %v2317_v12 = vpack.c.bf16 %v789_v3, %v789_v3 }
 0x1c7   : > { %2790 = vmatmul.mubr.msk.bf16.gmra.mxu1 %vm955_vm2, %v870_v32  ;;  %2806 = vmatmul.mubr.msk.bf16.gmra.mxu0 %vm955_vm2, %v950_v16 }
 0x1c8   : > { %1156 = vmatprep.mubr.bf16.mxu1 %v3312_v1  ;;  %1397 = vmatprep.mubr.bf16.mxu0 %v3312_v1 }
 0x1ca   : > { %v3670_v61 = vpop.permute.xlu0 %483 }
 0x1cb   : > { %5648 = vst [vmem:[#allocation7_spill] sm:$0xff] %v3670_v61  ;;  %v638_v5 = vadd.f32 %v637_v57, %v3670_v61 }
 0x1cd   : > { %v2315_v13 = vpack.c.bf16 %v638_v5, %v638_v5 }
 0x1cf   : > { %2791 = vmatmul.mubr.msk.bf16.gmra.mxu1 %vm955_vm2, %v871_v45  ;;  %2807 = vmatmul.mubr.msk.bf16.gmra.mxu0 %vm955_vm2, %v951_v26 }
 0x1d0   : > { %1166 = vmatprep.mubr.bf16.mxu1 %v3312_v1  ;;  %1407 = vmatprep.mubr.bf16.mxu0 %v3312_v1 }
 0x1d7   : > { %2792 = vmatmul.mubr.msk.bf16.gmra.mxu1 %vm955_vm2, %v872_v47  ;;  %2808 = vmatmul.mubr.msk.bf16.gmra.mxu0 %vm955_vm2, %v952_v38 }
 0x1d8   : > { %1176 = vmatprep.mubr.bf16.mxu1 %v3312_v1  ;;  %1417 = vmatprep.mubr.bf16.mxu0 %v3312_v1 }
 0x1df   : > { %2793 = vmatmul.mubr.msk.bf16.gmra.mxu1 %vm955_vm2, %v873_v53  ;;  %2809 = vmatmul.mubr.msk.bf16.gmra.mxu0 %vm955_vm2, %v953_v54 }
 0x1e0   : > { %1186 = vmatprep.mubr.bf16.mxu1 %v3312_v1  ;;  %1427 = vmatprep.mubr.bf16.mxu0 %v3312_v1 }
 0x1e7   : > { %2794 = vmatmul.mubr.msk.bf16.gmra.mxu1 %vm955_vm2, %v874_v7  ;;  %2810 = vmatmul.mubr.msk.bf16.gmra.mxu0 %vm955_vm2, %v954_v8 }
 0x1e8   : > { %2350 = vmatprep.mubr.bf16.mxu1 %v2317_v12  ;;  %2391 = vmatprep.mubr.bf16.mxu0 %v2315_v13 }
 0x22f   : > { %v3684_v1 = vpop.f32.mrf.mxu1  ;;  %v3686_v63 = vpop.f32.mrf.mxu0 }
 0x230   : > { %5649 = vst [vmem:[#allocation8_spill] sm:$0xff] %v3684_v1  ;;  %5650 = vst [vmem:[#allocation9_spill] sm:$0xff] %v3686_v63 }
 0x231   : > { %v3688_v14 = vpop.f32.mrf.mxu1  ;;  %v3690_v11 = vpop.f32.mrf.mxu0 }
 0x232   : > { %5651 = vst [vmem:[#allocation10_spill] sm:$0xff] %v3688_v14  ;;  %5652 = vst [vmem:[#allocation11_spill] sm:$0xff] %v3690_v11 }
 0x233   : > { %v3692_v15 = vpop.f32.mrf.mxu1  ;;  %v3694_v17 = vpop.f32.mrf.mxu0 }
 0x234   : > { %5653 = vst [vmem:[#allocation12_spill] sm:$0xff] %v3692_v15  ;;  %5654 = vst [vmem:[#allocation13_spill] sm:$0xff] %v3694_v17 }
 0x235   : > { %v3696_v18 = vpop.f32.mrf.mxu1  ;;  %v3698_v19 = vpop.f32.mrf.mxu0 }
 0x236   : > { %5655 = vst [vmem:[#allocation14_spill] sm:$0xff] %v3696_v18  ;;  %5656 = vst [vmem:[#allocation15_spill] sm:$0xff] %v3698_v19 }
 0x237   : > { %v3700_v21 = vpop.f32.mrf.mxu1  ;;  %v3702_v22 = vpop.f32.mrf.mxu0 }
 0x238   : > { %5657 = vst [vmem:[#allocation16_spill] sm:$0xff] %v3700_v21  ;;  %5658 = vst [vmem:[#allocation17_spill] sm:$0xff] %v3702_v22 }
 0x239   : > { %v3704_v23 = vpop.f32.mrf.mxu1  ;;  %v3706_v50 = vpop.f32.mrf.mxu0 }
 0x23a   : > { %5659 = vst [vmem:[#allocation18_spill] sm:$0xff] %v3704_v23  ;;  %5660 = vst [vmem:[#allocation19_spill] sm:$0xff] %v3706_v50 }
 0x23b   : > { %v3708_v24 = vpop.f32.mrf.mxu1  ;;  %v3710_v25 = vpop.f32.mrf.mxu0 }
 0x23c   : > { %5661 = vst [vmem:[#allocation20_spill] sm:$0xff] %v3708_v24  ;;  %5662 = vst [vmem:[#allocation21_spill] sm:$0xff] %v3710_v25 }
 0x23d   : > { %v3712_v56 = vpop.f32.mrf.mxu1  ;;  %v3714_v27 = vpop.f32.mrf.mxu0 }
 0x23e   : > { %5663 = vst [vmem:[#allocation22_spill] sm:$0xff] %v3712_v56  ;;  %5664 = vst [vmem:[#allocation23_spill] sm:$0xff] %v3714_v27 }
 0x23f   : > { %v3716_v28 = vpop.f32.mrf.mxu1  ;;  %v3718_v60 = vpop.f32.mrf.mxu0 }
 0x240   : > { %5665 = vst [vmem:[#allocation24_spill] sm:$0xff] %v3716_v28  ;;  %5666 = vst [vmem:[#allocation25_spill] sm:$0xff] %v3718_v60 }
 0x241   : > { %v3720_v29 = vpop.f32.mrf.mxu1  ;;  %v3722_v31 = vpop.f32.mrf.mxu0 }
 0x242   : > { %5667 = vst [vmem:[#allocation26_spill] sm:$0xff] %v3720_v29  ;;  %5668 = vst [vmem:[#allocation27_spill] sm:$0xff] %v3722_v31 }
 0x243   : > { %v3724_v4 = vpop.f32.mrf.mxu1  ;;  %v3726_v33 = vpop.f32.mrf.mxu0 }
 0x244   : > { %5669 = vst [vmem:[#allocation28_spill] sm:$0xff] %v3724_v4  ;;  %5670 = vst [vmem:[#allocation29_spill] sm:$0xff] %v3726_v33 }
 0x245   : > { %v3728_v35 = vpop.f32.mrf.mxu1  ;;  %v3730_v10 = vpop.f32.mrf.mxu0 }
 0x246   : > { %5671 = vst [vmem:[#allocation30_spill] sm:$0xff] %v3728_v35  ;;  %5672 = vst [vmem:[#allocation31_spill] sm:$0xff] %v3730_v10 }
 0x247   : > { %v3732_v34 = vpop.f32.mrf.mxu1  ;;  %v3734_v32 = vpop.f32.mrf.mxu0 }
 0x248   : > { %5673 = vst [vmem:[#allocation32_spill] sm:$0xff] %v3732_v34  ;;  %5674 = vst [vmem:[#allocation33_spill] sm:$0xff] %v3734_v32 }
 0x249   : > { %v3736_v16 = vpop.f32.mrf.mxu1  ;;  %v3738_v40 = vpop.f32.mrf.mxu0 }
 0x24a   : > { %5675 = vst [vmem:[#allocation34_spill] sm:$0xff] %v3736_v16  ;;  %5676 = vst [vmem:[#allocation35_spill] sm:$0xff] %v3738_v40 }
 0x24b   : > { %v3740_v41 = vpop.f32.mrf.mxu1  ;;  %v3742_v20 = vpop.f32.mrf.mxu0 }
 0x24c   : > { %5677 = vst [vmem:[#allocation36_spill] sm:$0xff] %v3740_v41  ;;  %5678 = vst [vmem:[#allocation37_spill] sm:$0xff] %v3742_v20 }
 0x24d   : > { %v3744_v43 = vpop.f32.mrf.mxu1  ;;  %v3746_v45 = vpop.f32.mrf.mxu0 }
 0x24e   : > { %5679 = vst [vmem:[#allocation38_spill] sm:$0xff] %v3744_v43  ;;  %5680 = vst [vmem:[#allocation39_spill] sm:$0xff] %v3746_v45 }
 0x24f   : > { %v3748_v26 = vpop.f32.mrf.mxu1  ;;  %v3750_v46 = vpop.f32.mrf.mxu0 }
 0x250   : > { %5681 = vst [vmem:[#allocation40_spill] sm:$0xff] %v3748_v26  ;;  %5682 = vst [vmem:[#allocation41_spill] sm:$0xff] %v3750_v46 }
 0x251   : > { %v3752_v36 = vpop.f32.mrf.mxu1  ;;  %v3754_v30 = vpop.f32.mrf.mxu0 }
 0x252   : > { %5683 = vst [vmem:[#allocation42_spill] sm:$0xff] %v3752_v36  ;;  %5684 = vst [vmem:[#allocation43_spill] sm:$0xff] %v3754_v30 }
 0x253   : > { %v3756_v37 = vpop.f32.mrf.mxu1  ;;  %v3758_v47 = vpop.f32.mrf.mxu0 }
 0x254   : > { %5685 = vst [vmem:[#allocation44_spill] sm:$0xff] %v3756_v37  ;;  %5686 = vst [vmem:[#allocation45_spill] sm:$0xff] %v3758_v47 }
 0x255   : > { %v3760_v38 = vpop.f32.mrf.mxu1  ;;  %v3762_v42 = vpop.f32.mrf.mxu0 }
 0x256   : > { %5687 = vst [vmem:[#allocation46_spill] sm:$0xff] %v3760_v38  ;;  %5688 = vst [vmem:[#allocation47_spill] sm:$0xff] %v3762_v42 }
 0x257   : > { %v3764_v48 = vpop.f32.mrf.mxu1  ;;  %v3766_v44 = vpop.f32.mrf.mxu0 }
 0x258   : > { %5689 = vst [vmem:[#allocation48_spill] sm:$0xff] %v3766_v44 }
 0x259   : > { %v3768_v49 = vpop.f32.mrf.mxu1  ;;  %v3770_v53 = vpop.f32.mrf.mxu0 }
 0x25a   : > { %5690 = vst [vmem:[#allocation49_spill] sm:$0xff] %v3768_v49  ;;  %5691 = vst [vmem:[#allocation50_spill] sm:$0xff] %v3770_v53 }
 0x25b   : > { %v3772_v54 = vpop.f32.mrf.mxu1  ;;  %v3774_v55 = vpop.f32.mrf.mxu0 }
 0x25c   : > { %5692 = vst [vmem:[#allocation51_spill] sm:$0xff] %v3772_v54  ;;  %5693 = vst [vmem:[#allocation52_spill] sm:$0xff] %v3774_v55 }
 0x25d   : > { %v3776_v57 = vpop.f32.mrf.mxu1  ;;  %v3778_v51 = vpop.f32.mrf.mxu0 }
 0x25e   : > { %5694 = vst [vmem:[#allocation53_spill] sm:$0xff] %v3776_v57  ;;  %5695 = vst [vmem:[#allocation54_spill] sm:$0xff] %v3778_v51 }
 0x25f   : > { %v3780_v58 = vpop.f32.mrf.mxu1  ;;  %v3782_v62 = vpop.f32.mrf.mxu0 }
 0x260   : > { %5696 = vst [vmem:[#allocation55_spill] sm:$0xff] %v3780_v58  ;;  %5697 = vst [vmem:[#allocation56_spill] sm:$0xff] %v3782_v62 }
 0x261   : > { %v3784_v2 = vpop.f32.mrf.mxu1  ;;  %v3786_v3 = vpop.f32.mrf.mxu0 }
 0x262   : > { %5698 = vst [vmem:[#allocation57_spill] sm:$0xff] %v3784_v2  ;;  %5699 = vst [vmem:[#allocation58_spill] sm:$0xff] %v3786_v3 }
 0x263   : > { %v3788_v5 = vpop.f32.mrf.mxu1  ;;  %v3790_v7 = vpop.f32.mrf.mxu0 }
 0x264   : > { %5700 = vst [vmem:[#allocation59_spill] sm:$0xff] %v3788_v5  ;;  %5701 = vst [vmem:[#allocation60_spill] sm:$0xff] %v3790_v7 }
 0x265   : > { %v3792_v8 = vpop.f32.mrf.mxu1  ;;  %v3794_v12 = vpop.f32.mrf.mxu0 }
 0x266   : > { %5702 = vst [vmem:[#allocation61_spill] sm:$0xff] %v3792_v8  ;;  %5703 = vst [vmem:[#allocation62_spill] sm:$0xff] %v3794_v12 }
 0x267   : > { %v3796_v13 = vpop.f32.mrf.mxu1  ;;  %v3798_v0 = vpop.f32.mrf.mxu0 }
 0x268   : > { %5704 = vst [vmem:[#allocation63_spill] sm:$0xff] %v3796_v13  ;;  %5705 = vst [vmem:[#allocation64_spill] sm:$0xff] %v3798_v0 }
 0x269   : > { %v3800_v9 = vpop.f32.mrf.mxu1  ;;  %v3802_v6 = vpop.f32.mrf.mxu0 }
 0x26a   : > { %5706 = vst [vmem:[#allocation65_spill] sm:$0xff] %v3800_v9  ;;  %5707 = vst [vmem:[#allocation66_spill] sm:$0xff] %v3802_v6 }
 0x26b   : > { %v3804_v52 = vpop.f32.mrf.mxu1  ;;  %v3806_v59 = vpop.f32.mrf.mxu0 }
 0x26c   : > { %5708 = vst [vmem:[#allocation67_spill] sm:$0xff] %v3804_v52  ;;  %5709 = vst [vmem:[#allocation68_spill] sm:$0xff] %v3806_v59 }
 0x26d   : > { %v3808_v39 = vpop.f32.mrf.mxu1  ;;  %v3810_v61 = vpop.f32.mrf.mxu0 }
 0x26e   : > { %5710 = vst [vmem:[#allocation69_spill] sm:$0xff] %v3808_v39  ;;  %5711 = vst [vmem:[#allocation70_spill] sm:$0xff] %v3810_v61 }
 0x26f   : > { %v3812_v3 = vpop.f32.mrf.mxu1  ;;  %v3814_v2 = vpop.f32.mrf.mxu0 }
 0x270   : > { %5712 = vst [vmem:[#allocation71_spill] sm:$0xff] %v3814_v2 }
 0x271   : > { %v3816_v12 = vpop.f32.mrf.mxu1  ;;  %v3818_v8 = vpop.f32.mrf.mxu0 }
 0x272   : > { %5713 = vst [vmem:[#allocation72_spill] sm:$0xff] %v3816_v12  ;;  %5714 = vst [vmem:[#allocation73_spill] sm:$0xff] %v3818_v8 }
 0x273   : > { %v3820_v0 = vpop.f32.mrf.mxu1  ;;  %v3822_v9 = vpop.f32.mrf.mxu0 }
 0x274   : > { %5715 = vst [vmem:[#allocation74_spill] sm:$0xff] %v3822_v9 }
 0x275   : > { %v3824_v6 = vpop.f32.mrf.mxu1  ;;  %v3826_v53 = vpop.f32.mrf.mxu0 }
 0x276   : > { %5716 = vst [vmem:[#allocation75_spill] sm:$0xff] %v3824_v6  ;;  %5717 = vst [vmem:[#allocation76_spill] sm:$0xff] %v3826_v53 }
 0x277   : > { %v3828_v49 = vpop.f32.mrf.mxu1  ;;  %v3830_v39 = vpop.f32.mrf.mxu0 }
 0x278   : > { %5718 = vst [vmem:[#allocation77_spill] sm:$0xff] %v3830_v39 }
 0x279   : > { %v3832_v61 = vpop.f32.mrf.mxu1  ;;  %v3834_v51 = vpop.f32.mrf.mxu0 }
 0x27a   : > { %5719 = vst [vmem:[#allocation78_spill] sm:$0xff] %v3832_v61  ;;  %5720 = vst [vmem:[#allocation79_spill] sm:$0xff] %v3834_v51 }
 0x27b   : > { %v3836_v2 = vpop.f32.mrf.mxu1  ;;  %v3838_v12 = vpop.f32.mrf.mxu0 }
 0x27c   : > { %5721 = vst [vmem:[#allocation80_spill] sm:$0xff] %v3838_v12 }
 0x27d   : > { %v3840_v8 = vpop.f32.mrf.mxu1  ;;  %v3842_v57 = vpop.f32.mrf.mxu0 }
 0x27e   : > { %5722 = vst [vmem:[#allocation81_spill] sm:$0xff] %v3840_v8  ;;  %5723 = vst [vmem:[#allocation82_spill] sm:$0xff] %v3842_v57 }
 0x27f   : > { %v3844_v9 = vpop.f32.mrf.mxu1  ;;  %v3846_v6 = vpop.f32.mrf.mxu0 }
 0x280   : > { %5724 = vst [vmem:[#allocation83_spill] sm:$0xff] %v3846_v6 }
 0x281   : > { %v3848_v53 = vpop.f32.mrf.mxu1  ;;  %v3850_v59 = vpop.f32.mrf.mxu0 }
 0x282   : > { %5725 = vst [vmem:[#allocation84_spill] sm:$0xff] %v3848_v53  ;;  %5726 = vst [vmem:[#allocation85_spill] sm:$0xff] %v3850_v59 }
 0x283   : > { %v3852_v39 = vpop.f32.mrf.mxu1  ;;  %v3854_v61 = vpop.f32.mrf.mxu0 }
 0x284   : > { %5727 = vst [vmem:[#allocation86_spill] sm:$0xff] %v3854_v61 }
 0x285   : > { %v3856_v51 = vpop.f32.mrf.mxu1  ;;  %v3858_v62 = vpop.f32.mrf.mxu0 }
 0x286   : > { %5728 = vst [vmem:[#allocation87_spill] sm:$0xff] %v3856_v51  ;;  %5729 = vst [vmem:[#allocation88_spill] sm:$0xff] %v3858_v62  ;;  %v1438_v62 = vmax.f32 %v3684_v1, %v3700_v21 }
 0x287   : > { %v3860_v12 = vpop.f32.mrf.mxu1  ;;  %v3862_v8 = vpop.f32.mrf.mxu0 }
 0x288   : > { %5730 = vst [vmem:[#allocation89_spill] sm:$0xff] %v3862_v8 }
 0x289   : > { %v3864_v57 = vpop.f32.mrf.mxu1  ;;  %v3866_v30 = vpop.f32.mrf.mxu0 }
 0x28a   : > { %5731 = vst [vmem:[#allocation90_spill] sm:$0xff] %v3864_v57  ;;  %5732 = vst [vmem:[#allocation91_spill] sm:$0xff] %v3866_v30  ;;  %v1439_v57 = vmax.f32 %v3692_v15, %v3708_v24 }
 0x28b   : > { %v3868_v6 = vpop.f32.mrf.mxu1  ;;  %v3870_v53 = vpop.f32.mrf.mxu0 }
 0x28c   : > { %5733 = vst [vmem:[#allocation92_spill] sm:$0xff] %v3870_v53  ;;  %v1440_v53 = vmax.f32 %v1438_v62, %v3716_v28 }
 0x28d   : > { %v3872_v59 = vpop.f32.mrf.mxu1  ;;  %v3874_v36 = vpop.f32.mrf.mxu0 }
 0x28e   : > { %5734 = vst [vmem:[#allocation93_spill] sm:$0xff] %v3872_v59  ;;  %5735 = vst [vmem:[#allocation94_spill] sm:$0xff] %v3874_v36  ;;  %v1441_v59 = vmax.f32 %v1439_v57, %v3724_v4 }
 0x28f   : > { %v3876_v61 = vpop.f32.mrf.mxu1  ;;  %v3878_v51 = vpop.f32.mrf.mxu0 }
 0x290   : > { %5736 = vst [vmem:[#allocation95_spill] sm:$0xff] %v3878_v51  ;;  %v1442_v51 = vmax.f32 %v1440_v53, %v3732_v34  ;;  %v1443_v38 = vmax.f32 %v1441_v59, %v3740_v41 }
 0x291   : > { %v3884_v8 = vpop.f32.mrf.mxu1  ;;  %v3886_v30 = vpop.f32.mrf.mxu0 }
 0x292   : > { %5737 = vst [vmem:[#allocation96_spill] sm:$0xff] %v3886_v30  ;;  %v1444_v24 = vmax.f32 %v1442_v51, %v3748_v26  ;;  %v1445_v15 = vmax.f32 %v1443_v38, %v3756_v37 }
 0x293   : > { %v3890_v42 = vpop.f32.mrf.mxu1  ;;  %v3892_v36 = vpop.f32.mrf.mxu0 }
 0x294   : > { %v1446_v57 = vmax.f32 %v1444_v24, %v3764_v48  ;;  %v1447_v4 = vmax.f32 %v1445_v15, %v3772_v54 }
 0x295   : > { %v3896_v21 = vpop.f32.mrf.mxu1  ;;  %v3898_v1 = vpop.f32.mrf.mxu0 }
 0x296   : > { %5738 = vst [vmem:[#allocation97_spill] sm:$0xff] %v3898_v1  ;;  %v1448_v59 = vmax.f32 %v1446_v57, %v3780_v58  ;;  %v1449_v41 = vmax.f32 %v1447_v4, %v3788_v5  ;;  %v1877_v57 = vmax.f32 %v3694_v17, %v3710_v25 }
 0x297   : > { %v3902_v30 = vpop.f32.mrf.mxu1  ;;  %v3904_v62 = vpop.f32.mrf.mxu0 }
 0x298   : > { %v1450_v38 = vmax.f32 %v1448_v59, %v3796_v13  ;;  %v1451_v37 = vmax.f32 %v1449_v41, %v3804_v52  ;;  %v1876_v41 = vmax.f32 %v3686_v63, %v3702_v22  ;;  %v1879_v52 = vmax.f32 %v1877_v57, %v3726_v33 }
 0x299   : > { %v3908_v28 = vpop.f32.mrf.mxu1  ;;  %v3910_v53 = vpop.f32.mrf.mxu0  ;;  %v1914_v22 = vmax.f32 %v3698_v19, %v3714_v27 }
 0x29a   : > { %5739 = vst [vmem:[#allocation98_spill] sm:$0xff] %v3910_v53  ;;  %v1452_v15 = vmax.f32 %v1450_v38, %v3812_v3  ;;  %v1453_v54 = vmax.f32 %v1451_v37, %v3820_v0  ;;  %v1878_v25 = vmax.f32 %v1876_v41, %v3718_v60  ;;  %v1881_v17 = vmax.f32 %v1879_v52, %v3742_v20 }
 0x29b   : > { %v3914_v34 = vpop.f32.mrf.mxu1  ;;  %v3916_v51 = vpop.f32.mrf.mxu0  ;;  %v1913_v52 = vmax.f32 %v3690_v11, %v3706_v50 }
 0x29c   : > { %v1454_v5 = vmax.f32 %v1452_v15, %v3828_v49  ;;  %v1455_v58 = vmax.f32 %v1453_v54, %v3836_v2  ;;  %v1476_v54 = vmax.f32 %v3696_v18, %v3712_v56  ;;  %v1883_v41 = vmax.f32 %v1881_v17, %v3758_v47  ;;  %v5758_v47 = vld [vmem:[#allocation58_spill] sm:$0xff] }
 0x29d   : > { %v3920_v26 = vpop.f32.mrf.mxu1  ;;  %v3922_v24 = vpop.f32.mrf.mxu0 }
 0x29e   : > { %5740 = vst [vmem:[#allocation99_spill] sm:$0xff] %v3922_v24  ;;  %v1456_v37 = vmax.f32 %v1454_v5, %v3844_v9  ;;  %v1457_v38 = vmax.f32 %v1455_v58, %v3852_v39  ;;  %v1475_v58 = vmax.f32 %v3688_v14, %v3704_v23  ;;  %v1880_v5 = vmax.f32 %v1878_v25, %v3734_v32 }
 0x29f   : > { %v3928_v4 = vpop.f32.mrf.mxu1  ;;  %v3932_v59 = vpop.f32.mrf.mxu0  ;;  %v1478_v27 = vmax.f32 %v1476_v54, %v3728_v35  ;;  %v1915_v23 = vmax.f32 %v1913_v52, %v3722_v31  ;;  %v1885_v25 = vmax.f32 %v1883_v41, %v3774_v55  ;;  %v5742_v31 = vld [vmem:[#allocation46_spill] sm:$0xff] }
 0x2a0   : > { %v1458_v57 = vmax.f32 %v1456_v37, %v3860_v12  ;;  %v1459_v33 = vmax.f32 %v1457_v38, %v3868_v6  ;;  %v1916_v37 = vmax.f32 %v1914_v22, %v3730_v10  ;;  %v1477_v18 = vmax.f32 %v1475_v58, %v3720_v29  ;;  %v5745_v29 = vld [vmem:[#allocation43_spill] sm:$0xff]  ;;  %v5749_v55 = vld [vmem:[#allocation54_spill] sm:$0xff] }
 0x2a1   : > { %v3937_v13 = vpop.f32.mrf.mxu1  ;;  %v3951_v63 = vpop.f32.mrf.mxu0  ;;  %v1882_v50 = vmax.f32 %v1880_v5, %v3750_v46  ;;  %v1480_v17 = vmax.f32 %v1478_v27, %v3744_v43  ;;  %v1917_v58 = vmax.f32 %v1915_v23, %v3738_v40  ;;  %v1887_v5 = vmax.f32 %v1885_v25, %v3790_v7  ;;  %v5743_v43 = vld [vmem:[#allocation47_spill] sm:$0xff]  ;;  %v5747_v40 = vld [vmem:[#allocation68_spill] sm:$0xff]  ;;  %v5748_v25 = vld [vmem:[#allocation53_spill] sm:$0xff] }
 0x2a2   : > { %5741 = vst [vmem:[#allocation100_spill] sm:$0xff] %v3951_v63  ;;  %v1460_v38 = vmax.f32 %v1458_v57, %v3876_v61  ;;  %v1461_v19 = vmax.f32 %v1459_v33, %v3890_v42  ;;  %v1918_v54 = vmax.f32 %v1916_v37, %v3746_v45  ;;  %v1479_v33 = vmax.f32 %v1477_v18, %v3736_v16  ;;  %v5744_v45 = vld [vmem:[#allocation42_spill] sm:$0xff]  ;;  %v5746_v16 = vld [vmem:[#allocation56_spill] sm:$0xff] }
 0x2a3   : > { %v3943_v15 = vpop.f32.mrf.mxu1  ;;  %v3975_v10 = vpop.f32.mrf.mxu0  ;;  %v1884_v52 = vmax.f32 %v1882_v50, %v3766_v44  ;;  %v1482_v27 = vmax.f32 %v1480_v17, %v5742_v31  ;;  %v1919_v18 = vmax.f32 %v1917_v58, %v5745_v29  ;;  %v1889_v50 = vmax.f32 %v1887_v5, %v5747_v40  ;;  %v5753_v29 = vld [vmem:[#allocation64_spill] sm:$0xff]  ;;  %v5755_v40 = vld [vmem:[#allocation61_spill] sm:$0xff]  ;;  %v5756_v44 = vld [vmem:[#allocation62_spill] sm:$0xff] }
 0x2a4   : > { %v1462_v22 = vmax.f32 %v1460_v38, %v3902_v30  ;;  %v1463_v57 = vmax.f32 %v1461_v19, %v3914_v34  ;;  %v1920_v37 = vmax.f32 %v1918_v54, %v5743_v43  ;;  %v1481_v35 = vmax.f32 %v1479_v33, %v5744_v45  ;;  %v5752_v43 = vld [vmem:[#allocation50_spill] sm:$0xff] }
 0x2a5   : > { %v3959_v56 = vpop.f32.mrf.mxu1  ;;  %v1886_v23 = vmax.f32 %v1884_v52, %v5746_v16  ;;  %v1484_v7 = vmax.f32 %v1482_v27, %v5748_v25  ;;  %v3995_v31 = vpop.f32.mrf.mxu0  ;;  %v1921_v58 = vmax.f32 %v1919_v18, %v5752_v43  ;;  %v5754_v45 = vld [vmem:[#allocation74_spill] sm:$0xff] }
 0x2a6   : > { %v1464_v38 = vmax.f32 %v1462_v22, %v3928_v4  ;;  %v1465_v19 = vmax.f32 %v1463_v57, %v3943_v15  ;;  %v1922_v17 = vmax.f32 %v1920_v37, %v5749_v55  ;;  %5750 = vst [vmem:[#allocation101_spill] sm:$0xff] %v3995_v31  ;;  %v5751_v57 = vld [vmem:[#allocation49_spill] sm:$0xff]  ;;  %v1891_v5 = vmax.f32 %v1889_v50, %v5754_v45  ;;  %v5762_v18 = vld [vmem:[#allocation70_spill] sm:$0xff] }
 0x2a7   : > { %v3969_v11 = vpop.f32.mrf.mxu1  ;;  %v1483_v33 = vmax.f32 %v1481_v35, %v5751_v57  ;;  %v1888_v52 = vmax.f32 %v1886_v23, %v5753_v29  ;;  %v1486_v16 = vmax.f32 %v1484_v7, %v5755_v40  ;;  %v5757_v37 = vld [vmem:[#allocation57_spill] sm:$0xff]  ;;  %v1923_v46 = vmax.f32 %v1921_v58, %v5758_v47  ;;  %v4011_v23 = vpop.f32.mrf.mxu0  ;;  %v5764_v40 = vld [vmem:[#allocation66_spill] sm:$0xff]  ;;  %v5767_v58 = vld [vmem:[#allocation75_spill] sm:$0xff] }
 0x2a8   : > { %v1466_v54 = vmax.f32 %v1464_v38, %v3969_v11  ;;  %v1924_v27 = vmax.f32 %v1922_v17, %v5756_v44  ;;  %v5759_v38 = vld [vmem:[#allocation71_spill] sm:$0xff]  ;;  %v5761_v35 = vld [vmem:[#allocation69_spill] sm:$0xff]  ;;  %v5772_v29 = vld [vmem:[#allocation92_spill] sm:$0xff] }
 0x2a9   : > { %v3981_v41 = vpop.f32.mrf.mxu1  ;;  %v1485_v55 = vmax.f32 %v1483_v33, %v5757_v37  ;;  %v1890_v20 = vmax.f32 %v1888_v52, %v5759_v38  ;;  %v1488_v57 = vmax.f32 %v1486_v16, %v5761_v35  ;;  %v5763_v45 = vld [vmem:[#allocation65_spill] sm:$0xff]  ;;  %v1925_v17 = vmax.f32 %v1923_v46, %v5764_v40  ;;  %v5766_v33 = vld [vmem:[#allocation86_spill] sm:$0xff]  ;;  %v5768_v52 = vld [vmem:[#allocation76_spill] sm:$0xff] }
 0x2aa   : > { %v1926_v43 = vmax.f32 %v1924_v27, %v5762_v18  ;;  %v5770_v35 = vld [vmem:[#allocation73_spill] sm:$0xff]  ;;  %v5771_v18 = vld [vmem:[#allocation83_spill] sm:$0xff]  ;;  %v5774_v46 = vld [vmem:[#allocation82_spill] sm:$0xff] }
 0x2ab   : > { %v3991_v14 = vpop.f32.mrf.mxu1  ;;  %v1487_v7 = vmax.f32 %v1485_v55, %v5763_v45  ;;  %v1490_v47 = vmax.f32 %v1488_v57, %v5767_v58  ;;  %v1927_v27 = vmax.f32 %v1925_v17, %v5770_v35  ;;  %v5773_v55 = vld [vmem:[#allocation81_spill] sm:$0xff]  ;;  %v5777_v58 = vld [vmem:[#allocation79_spill] sm:$0xff] }
 0x2ac   : > { %v1467_v22 = vmax.f32 %v1465_v19, %v3991_v14  ;;  %v5760_v19 = vld [vmem:[#allocation80_spill] sm:$0xff]  ;;  %v1928_v37 = vmax.f32 %v1926_v43, %v5768_v52  ;;  %v5779_v17 = vld [vmem:[#allocation87_spill] sm:$0xff] }
 0x2ad   : > { %v1893_v32 = vmax.f32 %v1891_v5, %v5760_v19  ;;  %v5769_v19 = vld [vmem:[#allocation72_spill] sm:$0xff]  ;;  %v1492_v45 = vmax.f32 %v1490_v47, %v5773_v55  ;;  %v1929_v43 = vmax.f32 %v1927_v27, %v5777_v58  ;;  %v5782_v55 = vld [vmem:[#allocation85_spill] sm:$0xff]  ;;  %v5785_v27 = vld [vmem:[#allocation94_spill] sm:$0xff] }
 0x2ae   : > { %v1468_v25 = vmax.f32 %v1466_v54, %v1467_v22  ;;  %v5765_v54 = vld [vmem:[#allocation77_spill] sm:$0xff]  ;;  %v1489_v16 = vmax.f32 %v1487_v7, %v5769_v19  ;;  %v1930_v40 = vmax.f32 %v1928_v37, %v5774_v46  ;;  %v5781_v19 = vld [vmem:[#allocation84_spill] sm:$0xff]  ;;  %v5783_v46 = vld [vmem:[#allocation95_spill] sm:$0xff] }
 0x2af   : > { %v1892_v22 = vmax.f32 %v1890_v20, %v5765_v54  ;;  %v1895_v44 = vmax.f32 %v1893_v32, %v5766_v33  ;;  %v4025_v20 = vpop.f32.mrf.mxu0  ;;  %v5776_v33 = vld [vmem:[#allocation78_spill] sm:$0xff]  ;;  %v1494_v52 = vmax.f32 %v1492_v45, %v5779_v17  ;;  %v1931_v37 = vmax.f32 %v1929_v43, %v5782_v55  ;;  %v5787_v17 = vld [vmem:[#allocation91_spill] sm:$0xff] }
 0x2b0   : > { %v1469_v50 = vrot.slane %v1468_v25, 4  ;;  %5775 = vst [vmem:[#allocation77_spill] sm:$0xff] %v4025_v20  ;;  %v1491_v57 = vmax.f32 %v1489_v16, %v5776_v33  ;;  %v5784_v16 = vld [vmem:[#allocation93_spill] sm:$0xff] }
 0x2b1   : > { %v1894_v38 = vmax.f32 %v1892_v22, %v5771_v18  ;;  %v1897_v60 = vmax.f32 %v1895_v44, %v5772_v29  ;;  %v5780_v22 = vld [vmem:[#allocation88_spill] sm:$0xff]  ;;  %v1496_v33 = vmax.f32 %v1494_v52, %v5784_v16 }
 0x2b2   : > { %v1470_v5 = vmax.f32 %v1468_v25, %v1469_v50  ;;  %v5778_v25 = vld [vmem:[#allocation89_spill] sm:$0xff]  ;;  %v1932_v35 = vmax.f32 %v1930_v40, %v5780_v22  ;;  %v1493_v47 = vmax.f32 %v1491_v57, %v5781_v19  ;;  %v1933_v40 = vmax.f32 %v1931_v37, %v5787_v17  ;;  %v5788_v52 = vld [vmem:[#allocation96_spill] sm:$0xff] }
 0x2b3   : > { %v1896_v50 = vmax.f32 %v1894_v38, %v5778_v25  ;;  %v1899_v7 = vmax.f32 %v1897_v60, %v3892_v36  ;;  %v4039_v25 = vpop.f32.mrf.mxu0  ;;  %v5786_v60 = vld [vmem:[#allocation90_spill] sm:$0xff]  ;;  %v1498_v57 = vmax.f32 %v1496_v33, %v3896_v21 }
 0x2b4   : > { %v1471_v32 = vrot.slane %v1470_v5, 2  ;;  %v1934_v58 = vmax.f32 %v1932_v35, %v5785_v27  ;;  %v1495_v45 = vmax.f32 %v1493_v47, %v5786_v60 }
 0x2b5   : > { %v1898_v29 = vmax.f32 %v1896_v50, %v5783_v46  ;;  %v1901_v18 = vmax.f32 %v1899_v7, %v3916_v51  ;;  %v1935_v7 = vmax.f32 %v1933_v40, %v5788_v52  ;;  %v1500_v47 = vmax.f32 %v1498_v57, %v3920_v26 }
 0x2b6   : > { %v1472_v44 = vmax.f32 %v1470_v5, %v1471_v32  ;;  %v1936_v43 = vmax.f32 %v1934_v58, %v3898_v1  ;;  %v1497_v50 = vmax.f32 %v1495_v45, %v3884_v8  ;;  %v4058_v58 = vpop.f32.mrf.mxu1  ;;  %v4060_v45 = vpop.f32.mrf.mxu0 }
 0x2b7   : > { %v1900_v5 = vmax.f32 %v1898_v29, %v3904_v62  ;;  %v1903_v32 = vmax.f32 %v1901_v18, %v3975_v10  ;;  %v1937_v18 = vmax.f32 %v1935_v7, %v3910_v53  ;;  %5789 = vst [vmem:[#allocation84_spill] sm:$0xff] %v4060_v45  ;;  %v1502_v40 = vmax.f32 %v1500_v47, %v3959_v56  ;;  %v5792_v53 = vld [vmem:[#allocation16_spill] sm:$0xff] }
 0x2b8   : > { %v1473_v38 = vrot.slane %v1472_v44, 1  ;;  %v1938_v37 = vmax.f32 %v1936_v43, %v3922_v24  ;;  %v1499_v29 = vmax.f32 %v1497_v50, %v3908_v28  ;;  %v5791_v50 = vld [vmem:[#allocation12_spill] sm:$0xff] }
 0x2b9   : > { %v1902_v35 = vmax.f32 %v1900_v5, %v3932_v59  ;;  %v1905_v27 = vmax.f32 %v1903_v32, %v4039_v25  ;;  %v1939_v57 = vmax.f32 %v1937_v18, %v3951_v63  ;;  %v5793_v18 = vld [vmem:[#allocation20_spill] sm:$0xff] }
 0x2ba   : > { %v4053_v17 = vmax.f32 %v1472_v44, %v1473_v38  ;;  %v1940_v5 = vmax.f32 %v1938_v37, %v3995_v31  ;;  %v1501_v32 = vmax.f32 %v1499_v29, %v3937_v13  ;;  %v5790_v38 = vld [vmem:[#allocation8_spill] sm:$0xff] }
 0x2bb   : > { %v1904_v33 = vmax.f32 %v1902_v35, %v4011_v23  ;;  %v1504_v35 = vmax.f32 %v1502_v40, %v4058_v58  ;;  %v1941_v29 = vmax.f32 %v1939_v57, %v4025_v20 }
 0x2bc   : > { %v1512_v43 = vsub.f32 %v5790_v38, %v4053_v17  ;;  %v1514_v7 = vsub.f32 %v5791_v50, %v4053_v17  ;;  %v1942_v24 = vmax.f32 %v1940_v5, %v4060_v45  ;;  %v1516_v47 = vsub.f32 %v5792_v53, %v4053_v17  ;;  %v5794_v50 = vld [vmem:[#allocation24_spill] sm:$0xff] }
 0x2bd   : > { %v1906_v44 = vmax.f32 %v1904_v33, %v1905_v27  ;;  %v1503_v37 = vmax.f32 %v1501_v32, %v3981_v41  ;;  %v1518_v27 = vsub.f32 %v5793_v18, %v4053_v17  ;;  %v1520_v40 = vsub.f32 %v5794_v50, %v4053_v17  ;;  %v5795_v5 = vld [vmem:[#allocation28_spill] sm:$0xff] }
 0x2be   : > { %v1576_v31 = vmul.f32 1.442695, %v1512_v43  ;;  %v1580_v38 = vmul.f32 1.442695, %v1514_v7  ;;  %v1943_v1 = vmax.f32 %v1941_v29, %v1942_v24  ;;  %v1584_v52 = vmul.f32 1.442695, %v1516_v47 }
 0x2bf   : > { %v1907_v33 = vrot.slane %v1906_v44, 4  ;;  %v1505_v63 = vmax.f32 %v1503_v37, %v1504_v35  ;;  %v1522_v53 = vsub.f32 %v5795_v5, %v4053_v17  ;;  %v1588_v32 = vmul.f32 1.442695, %v1518_v27  ;;  %v5796_v18 = vld [vmem:[#allocation32_spill] sm:$0xff] }
 0x2c0   : > { %3017 = vpow2.f32 %v1576_v31  ;;  %v1944_v20 = vrot.slane %v1943_v1, 4  ;;  %v1524_v22 = vsub.f32 %v5796_v18, %v4053_v17  ;;  %v1592_v43 = vmul.f32 1.442695, %v1520_v40  ;;  %v5797_v24 = vld [vmem:[#allocation36_spill] sm:$0xff] }
 0x2c1   : > { %3019 = vpow2.f32 %v1580_v38  ;;  %v1908_v45 = vmax.f32 %v1906_v44, %v1907_v33  ;;  %v1506_v57 = vrot.slane %v1505_v63, 4  ;;  %v1526_v7 = vsub.f32 %v5797_v24, %v4053_v17  ;;  %v5798_v29 = vld [vmem:[#allocation40_spill] sm:$0xff]  ;;  %v5803_v24 = vld [vmem:[#allocation55_spill] sm:$0xff] }
 0x2c2   : > { %3021 = vpow2.f32 %v1584_v52  ;;  %v1596_v35 = vmul.f32 1.442695, %v1522_v53  ;;  %v1945_v37 = vmax.f32 %v1943_v1, %v1944_v20  ;;  %v1528_v38 = vsub.f32 %v5798_v29, %v4053_v17  ;;  %v5799_v27 = vld [vmem:[#allocation44_spill] sm:$0xff]  ;;  %v5801_v1 = vld [vmem:[#allocation51_spill] sm:$0xff] }
 0x2c3   : > { %3023 = vpow2.f32 %v1588_v32  ;;  %v1909_v47 = vrot.slane %v1908_v45, 2  ;;  %v1507_v31 = vmax.f32 %v1505_v63, %v1506_v57  ;;  %v1600_v44 = vmul.f32 1.442695, %v1524_v22  ;;  %v5805_v29 = vld [vmem:[#allocation59_spill] sm:$0xff] }
 0x2c4   : > { %3025 = vpow2.f32 %v1592_v43  ;;  %v1530_v33 = vsub.f32 %v5799_v27, %v4053_v17  ;;  %v1604_v50 = vmul.f32 1.442695, %v1526_v7  ;;  %v1946_v5 = vrot.slane %v1945_v37, 2 }
 0x2c5   : > { %3027 = vpow2.f32 %v1596_v35  ;;  %v1910_v52 = vmax.f32 %v1908_v45, %v1909_v47  ;;  %v1508_v40 = vrot.slane %v1507_v31, 2  ;;  %v1532_v32 = vsub.f32 %v3764_v48, %v4053_v17 }
 0x2c6   : > { %3029 = vpow2.f32 %v1600_v44  ;;  %v1608_v53 = vmul.f32 1.442695, %v1528_v38  ;;  %v1534_v20 = vsub.f32 %v5801_v1, %v4053_v17  ;;  %v1612_v22 = vmul.f32 1.442695, %v1530_v33 }
 0x2c7   : > { %3031 = vpow2.f32 %v1604_v50  ;;  %v1911_v18 = vrot.slane %v1910_v52, 1  ;;  %v4098_v43 = vmax.f32 %v1507_v31, %v1508_v40  ;;  %v4100_v45 = vmax.f32 %v1945_v37, %v1946_v5  ;;  %v5807_v37 = vld [vmem:[#allocation63_spill] sm:$0xff] }
 0x2c8   : > { %v1536_v7 = vsub.f32 %v5803_v24, %v4053_v17  ;;  %3033 = vpow2.f32 %v1608_v53  ;;  %v1616_v48 = vmul.f32 1.442695, %v1532_v32  ;;  %v1538_v38 = vsub.f32 %v5805_v29, %v4053_v17  ;;  %v5808_v32 = vld [vmem:[#allocation67_spill] sm:$0xff] }
 0x2c9   : > { %3035 = vpow2.f32 %v1612_v22  ;;  %v1620_v44 = vmul.f32 1.442695, %v1534_v20  ;;  %v1540_v33 = vsub.f32 %v5807_v37, %v4053_v17  ;;  %v4115_v50 = vmax.f32 %v1910_v52, %v1911_v18 }
 0x2ca   : > { %v1542_v53 = vsub.f32 %v5808_v32, %v4053_v17  ;;  %3037 = vpow2.f32 %v1616_v48  ;;  %v1624_v1 = vmul.f32 1.442695, %v1536_v7  ;;  %v1544_v24 = vsub.f32 %v3812_v3, %v4053_v17 }
 0x2cb   : > { %v1546_v52 = vsub.f32 %v3820_v0, %v4053_v17  ;;  %v1548_v18 = vsub.f32 %v3828_v49, %v4053_v17  ;;  %v1552_v48 = vsub.f32 %v3844_v9, %v4053_v17  ;;  %3039 = vpow2.f32 %v1620_v44 }
 0x2cc   : > { %v1628_v7 = vmul.f32 1.442695, %v1538_v38  ;;  %v1554_v3 = vsub.f32 %v3852_v39, %v4053_v17  ;;  %v1556_v0 = vsub.f32 %v3860_v12, %v4053_v17  ;;  %v1558_v49 = vsub.f32 %v3868_v6, %v4053_v17  ;;  %v5812_v6 = vld [vmem:[#allocation9_spill] sm:$0xff] }
 0x2cd   : > { %v4092_v63 = vpop.eup %3017  ;;  %v1562_v9 = vsub.f32 %v3890_v42, %v4053_v17  ;;  %3041 = vpow2.f32 %v1624_v1  ;;  %v1632_v38 = vmul.f32 1.442695, %v1540_v33  ;;  %v1564_v39 = vsub.f32 %v3902_v30, %v4053_v17  ;;  %v5813_v33 = vld [vmem:[#allocation13_spill] sm:$0xff] }
 0x2ce   : > { %5800 = vst [vmem:[#allocation85_spill] sm:$0xff] %v4092_v63  ;;  %v4096_v57 = vpop.eup %3019  ;;  %v1566_v12 = vsub.f32 %v3914_v34, %v4053_v17  ;;  %v1636_v32 = vmul.f32 1.442695, %v1542_v53  ;;  %3043 = vpow2.f32 %v1628_v7  ;;  %v1952_v1 = vsub.f32 %v5813_v33, %v4115_v50 }
 0x2cf   : > { %5802 = vst [vmem:[#allocation95_spill] sm:$0xff] %v4096_v57  ;;  %v1704_v35 = vadd.f32 %v4096_v57, %v4092_v63  ;;  %v4106_v47 = vpop.eup %3021  ;;  %v1568_v5 = vsub.f32 %v3928_v4, %v4053_v17  ;;  %v1570_v30 = vsub.f32 %v3943_v15, %v4053_v17  ;;  %v1572_v34 = vsub.f32 %v3969_v11, %v4053_v17  ;;  %v5817_v11 = vld [vmem:[#allocation21_spill] sm:$0xff] }
 0x2d0   : > { %5804 = vst [vmem:[#allocation93_spill] sm:$0xff] %v4106_v47  ;;  %v4111_v27 = vpop.eup %3023  ;;  %v1644_v53 = vmul.f32 1.442695, %v1546_v52  ;;  %3045 = vpow2.f32 %v1632_v38  ;;  %v1648_v7 = vmul.f32 1.442695, %v1548_v18  ;;  %v1574_v40 = vsub.f32 %v3991_v14, %v4053_v17  ;;  %v5819_v14 = vld [vmem:[#allocation25_spill] sm:$0xff] }
 0x2d1   : > { %v1705_v31 = vadd.f32 %v4106_v47, %v1704_v35  ;;  %5806 = vst [vmem:[#allocation90_spill] sm:$0xff] %v4111_v27  ;;  %v4122_v22 = vpop.eup %3025  ;;  %v1550_v35 = vsub.f32 %v3836_v2, %v4053_v17  ;;  %v1560_v2 = vsub.f32 %v3876_v61, %v4053_v17  ;;  %v1640_v61 = vmul.f32 1.442695, %v1544_v24 }
 0x2d2   : > { %5809 = vst [vmem:[#allocation8_spill] sm:$0xff] %v4122_v22  ;;  %3047 = vpow2.f32 %v1636_v32  ;;  %v1956_v52 = vsub.f32 %v5817_v11, %v4115_v50  ;;  %v2018_v18 = vmul.f32 1.442695, %v1952_v1  ;;  %v1664_v63 = vmul.f32 1.442695, %v1556_v0 }
 0x2d3   : > { %v1706_v20 = vadd.f32 %v4111_v27, %v1705_v31  ;;  %v4135_v31 = vpop.eup %3027  ;;  %v1652_v4 = vmul.f32 1.442695, %v1550_v35  ;;  %3049 = vpow2.f32 %v1640_v61  ;;  %v1958_v17 = vsub.f32 %v5819_v14, %v4115_v50 }
 0x2d4   : > { %5810 = vst [vmem:[#allocation12_spill] sm:$0xff] %v4135_v31  ;;  %v4148_v37 = vpop.eup %3029  ;;  %3051 = vpow2.f32 %v1644_v53  ;;  %v1672_v61 = vmul.f32 1.442695, %v1560_v2  ;;  %v2026_v0 = vmul.f32 1.442695, %v1956_v52 }
 0x2d5   : > { %v1707_v29 = vadd.f32 %v4122_v22, %v1706_v20  ;;  %5811 = vst [vmem:[#allocation16_spill] sm:$0xff] %v4148_v37  ;;  %v1950_v20 = vsub.f32 %v5812_v6, %v4115_v50  ;;  %3053 = vpow2.f32 %v1648_v7  ;;  %v4191_v7 = vmul.f32 1.442695, %v1564_v39 }
 0x2d6   : > { %v4202_v11 = vmul.f32 1.442695, %v1570_v30  ;;  %v4204_v52 = vmul.f32 1.442695, %v1572_v34  ;;  %v4206_v39 = vmul.f32 1.442695, %v1574_v40 }
 0x2d7   : > { %v1708_v44 = vadd.f32 %v4135_v31, %v1707_v29  ;;  %v4159_v29 = vpop.eup %3031  ;;  %v2014_v57 = vmul.f32 1.442695, %v1950_v20  ;;  %v1668_v20 = vmul.f32 1.442695, %v1558_v49  ;;  %v5828_v30 = vld [vmem:[#allocation45_spill] sm:$0xff]  ;;  %v5829_v34 = vld [vmem:[#allocation48_spill] sm:$0xff] }
 0x2d8   : > { %5814 = vst [vmem:[#allocation20_spill] sm:$0xff] %v4159_v29  ;;  %v4170_v33 = vpop.eup %3033  ;;  %v1970_v40 = vsub.f32 %v5829_v34, %v4115_v50 }
 0x2d9   : > { %v1709_v42 = vadd.f32 %v4148_v37, %v1708_v44  ;;  %v5815_v44 = vld [vmem:[#allocation17_spill] sm:$0xff]  ;;  %5816 = vst [vmem:[#allocation24_spill] sm:$0xff] %v4170_v33  ;;  %v4177_v38 = vpop.eup %3035  ;;  %3055 = vpow2.f32 %v2014_v57 }
 0x2da   : > { %v1954_v6 = vsub.f32 %v5815_v44, %v4115_v50  ;;  %5818 = vst [vmem:[#allocation28_spill] sm:$0xff] %v4177_v38  ;;  %v1660_v44 = vmul.f32 1.442695, %v1554_v3  ;;  %v4182_v32 = vpop.eup %3037  ;;  %3057 = vpow2.f32 %v2018_v18  ;;  %v5823_v57 = vld [vmem:[#allocation33_spill] sm:$0xff] }
 0x2db   : > { %v1710_v24 = vadd.f32 %v4159_v29, %v1709_v42  ;;  %v1656_v42 = vmul.f32 1.442695, %v1552_v48  ;;  %5820 = vst [vmem:[#allocation32_spill] sm:$0xff] %v4182_v32  ;;  %v5821_v48 = vld [vmem:[#allocation29_spill] sm:$0xff]  ;;  %v4189_v53 = vpop.eup %3039  ;;  %3059 = vpow2.f32 %v1652_v4  ;;  %v1962_v2 = vsub.f32 %v5823_v57, %v4115_v50 }
 0x2dc   : > { %v2022_v35 = vmul.f32 1.442695, %v1954_v6  ;;  %v1960_v3 = vsub.f32 %v5821_v48, %v4115_v50  ;;  %5822 = vst [vmem:[#allocation36_spill] sm:$0xff] %v4189_v53  ;;  %v4193_v6 = vmul.f32 1.442695, %v1566_v12  ;;  %v5830_v48 = vld [vmem:[#allocation52_spill] sm:$0xff] }
 0x2dd   : > { %v1711_v15 = vadd.f32 %v4170_v33, %v1710_v24  ;;  %v4184_v24 = vmul.f32 1.442695, %v1562_v9  ;;  %v4200_v9 = vpop.eup %3041 }
 0x2de   : > { %3061 = vpow2.f32 %v2022_v35  ;;  %5824 = vst [vmem:[#allocation40_spill] sm:$0xff] %v4200_v9  ;;  %v2034_v18 = vmul.f32 1.442695, %v1960_v3  ;;  %v4211_v14 = vpop.eup %3043 }
 0x2df   : > { %v1712_v27 = vadd.f32 %v4177_v38, %v1711_v15  ;;  %v4195_v15 = vmul.f32 1.442695, %v1568_v5  ;;  %3063 = vpow2.f32 %v1656_v42  ;;  %v5825_v5 = vld [vmem:[#allocation37_spill] sm:$0xff]  ;;  %5826 = vst [vmem:[#allocation44_spill] sm:$0xff] %v4211_v14  ;;  %v1968_v42 = vsub.f32 %v5828_v30, %v4115_v50  ;;  %v4222_v3 = vpop.eup %3045  ;;  %v5833_v30 = vld [vmem:[#allocation64_spill] sm:$0xff] }
 0x2e0   : > { %v1964_v4 = vsub.f32 %v5825_v5, %v4115_v50  ;;  %3065 = vpow2.f32 %v2026_v0  ;;  %v2038_v0 = vmul.f32 1.442695, %v1962_v2  ;;  %v5832_v5 = vld [vmem:[#allocation60_spill] sm:$0xff]  ;;  %v1978_v47 = vsub.f32 %v5833_v30, %v4115_v50  ;;  %v4230_v34 = vpop.eup %3047 }
 0x2e1   : > { %v1713_v1 = vadd.f32 %v4182_v32, %v1712_v27  ;;  %v2030_v27 = vmul.f32 1.442695, %v1958_v17  ;;  %3067 = vpow2.f32 %v1660_v44  ;;  %v5827_v17 = vld [vmem:[#allocation41_spill] sm:$0xff]  ;;  %v5831_v44 = vld [vmem:[#allocation56_spill] sm:$0xff]  ;;  %v4235_v31 = vpop.eup %3049  ;;  %v1986_v30 = vsub.f32 %v5765_v54, %v4115_v50 }
 0x2e2   : > { %v1966_v35 = vsub.f32 %v5827_v17, %v4115_v50  ;;  %v1974_v57 = vsub.f32 %v5831_v44, %v4115_v50  ;;  %v1976_v17 = vsub.f32 %v5832_v5, %v4115_v50  ;;  %v2042_v2 = vmul.f32 1.442695, %v1964_v4  ;;  %5835 = vst [vmem:[#allocation51_spill] sm:$0xff] %v4235_v31  ;;  %v5837_v5 = vld [vmem:[#allocation74_spill] sm:$0xff]  ;;  %v4243_v29 = vpop.eup %3051  ;;  %v5843_v54 = vld [vmem:[#allocation89_spill] sm:$0xff] }
 0x2e3   : > { %v1714_v49 = vadd.f32 %v4189_v53, %v1713_v1  ;;  %3069 = vpow2.f32 %v2030_v27  ;;  %v1984_v22 = vsub.f32 %v5837_v5, %v4115_v50  ;;  %5838 = vst [vmem:[#allocation55_spill] sm:$0xff] %v4243_v29  ;;  %v4248_v37 = vpop.eup %3053  ;;  %v5842_v5 = vld [vmem:[#allocation86_spill] sm:$0xff]  ;;  %v1994_v33 = vsub.f32 %v5843_v54, %v4115_v50 }
 0x2e4   : > { %3071 = vpow2.f32 %v1664_v63  ;;  %v5836_v63 = vld [vmem:[#allocation71_spill] sm:$0xff]  ;;  %v2046_v4 = vmul.f32 1.442695, %v1966_v35  ;;  %5840 = vst [vmem:[#allocation59_spill] sm:$0xff] %v4248_v37  ;;  %v1992_v38 = vsub.f32 %v5842_v5, %v4115_v50  ;;  %v2050_v35 = vmul.f32 1.442695, %v1968_v42 }
 0x2e5   : > { %v1715_v12 = vadd.f32 %v4200_v9, %v1714_v49  ;;  %v1972_v49 = vsub.f32 %v5830_v48, %v4115_v50  ;;  %v5834_v48 = vld [vmem:[#allocation68_spill] sm:$0xff]  ;;  %3073 = vpow2.f32 %v2034_v18  ;;  %v1982_v44 = vsub.f32 %v5836_v63, %v4115_v50 }
 0x2e6   : > { %v1980_v27 = vsub.f32 %v5834_v48, %v4115_v50  ;;  %3075 = vpow2.f32 %v1668_v20  ;;  %v5839_v48 = vld [vmem:[#allocation80_spill] sm:$0xff]  ;;  %v5841_v20 = vld [vmem:[#allocation83_spill] sm:$0xff]  ;;  %v4256_v53 = vpop.eup %3055 }
 0x2e7   : > { %v1716_v1 = vadd.f32 %v4211_v14, %v1715_v12  ;;  %v1988_v18 = vsub.f32 %v5839_v48, %v4115_v50  ;;  %3077 = vpow2.f32 %v2038_v0  ;;  %v1990_v63 = vsub.f32 %v5841_v20, %v4115_v50  ;;  %5844 = vst [vmem:[#allocation63_spill] sm:$0xff] %v4256_v53  ;;  %v5845_v48 = vld [vmem:[#allocation92_spill] sm:$0xff]  ;;  %v4261_v32 = vpop.eup %3057 }
 0x2e8   : > { %3079 = vpow2.f32 %v1672_v61  ;;  %5846 = vst [vmem:[#allocation67_spill] sm:$0xff] %v4261_v32  ;;  %v1998_v61 = vsub.f32 %v5783_v46, %v4115_v50  ;;  %v2000_v20 = vsub.f32 %v3892_v36, %v4115_v50  ;;  %v4270_v54 = vpop.eup %3059  ;;  %v2142_v42 = vadd.f32 %v4261_v32, %v4256_v53 }
 0x2e9   : > { %v1717_v12 = vadd.f32 %v4222_v3, %v1716_v1  ;;  %3081 = vpow2.f32 %v2042_v2  ;;  %5847 = vst [vmem:[#allocation9_spill] sm:$0xff] %v4270_v54  ;;  %v2054_v2 = vmul.f32 1.442695, %v1970_v40  ;;  %v2062_v46 = vmul.f32 1.442695, %v1974_v57 }
 0x2ea   : > { %3083 = vpow2.f32 %v4184_v24 }
 0x2eb   : > { %v1718_v1 = vadd.f32 %v4230_v34, %v1717_v12  ;;  %3085 = vpow2.f32 %v2046_v4  ;;  %v4275_v0 = vpop.eup %3061  ;;  %v2058_v4 = vmul.f32 1.442695, %v1972_v49 }
 0x2ec   : > { %5848 = vst [vmem:[#allocation13_spill] sm:$0xff] %v4275_v0  ;;  %3087 = vpow2.f32 %v4191_v7  ;;  %v4284_v5 = vpop.eup %3063  ;;  %v5853_v7 = vrot.slane %v4098_v43, 1 }
 0x2ed   : > { %v1719_v12 = vadd.f32 %v4235_v31, %v1718_v1  ;;  %5849 = vst [vmem:[#allocation17_spill] sm:$0xff] %v4284_v5  ;;  %3089 = vpow2.f32 %v2050_v35  ;;  %v2066_v35 = vmul.f32 1.442695, %v1976_v17 }
 0x2ee   : > { %3091 = vpow2.f32 %v4193_v6  ;;  %v2070_v6 = vmul.f32 1.442695, %v1978_v47  ;;  %v4305_v32 = vmax.f32 %v4098_v43, %v5853_v7  ;;  %v2086_v47 = vmul.f32 1.442695, %v1986_v30 }
 0x2ef   : > { %v1720_v1 = vadd.f32 %v4243_v29, %v1719_v12  ;;  %v2143_v12 = vadd.f32 %v4275_v0, %v2142_v42  ;;  %v4288_v29 = vpop.eup %3065  ;;  %3093 = vpow2.f32 %v2054_v2  ;;  %v2074_v42 = vmul.f32 1.442695, %v1980_v27 }
 0x2f0   : > { %5850 = vst [vmem:[#allocation21_spill] sm:$0xff] %v4288_v29  ;;  %v4295_v24 = vpop.eup %3067  ;;  %3095 = vpow2.f32 %v4195_v15  ;;  %v2078_v2 = vmul.f32 1.442695, %v1982_v44  ;;  %v2082_v15 = vmul.f32 1.442695, %v1984_v22  ;;  %v5856_v22 = vld [vmem:[#allocation10_spill] sm:$0xff] }
 0x2f1   : > { %v1721_v40 = vadd.f32 %v4248_v37, %v1720_v1  ;;  %5851 = vst [vmem:[#allocation25_spill] sm:$0xff] %v4295_v24  ;;  %v2144_v49 = vadd.f32 %v4288_v29, %v2143_v12  ;;  %v4299_v1 = vpop.eup %3069  ;;  %3097 = vpow2.f32 %v2058_v4  ;;  %v2090_v27 = vmul.f32 1.442695, %v1988_v18 }
 0x2f2   : > { %5852 = vst [vmem:[#allocation29_spill] sm:$0xff] %v4299_v1  ;;  %v4307_v57 = vpop.eup %3071  ;;  %3099 = vpow2.f32 %v4202_v11  ;;  %v2094_v7 = vmul.f32 1.442695, %v1990_v63  ;;  %v4321_v44 = vmul.f32 1.442695, %v1992_v38  ;;  %v1513_v11 = vsub.f32 %v5856_v22, %v4305_v32  ;;  %v5860_v22 = vld [vmem:[#allocation18_spill] sm:$0xff] }
 0x2f3   : > { %v1722_v31 = vadd.f32 %v4270_v54, %v1721_v40  ;;  %v2145_v17 = vadd.f32 %v4299_v1, %v2144_v49  ;;  %v4311_v40 = vpop.eup %3073  ;;  %3101 = vpow2.f32 %v2062_v46  ;;  %v4323_v4 = vmul.f32 1.442695, %v1994_v33  ;;  %v5857_v46 = vld [vmem:[#allocation14_spill] sm:$0xff] }
 0x2f4   : > { %5854 = vst [vmem:[#allocation33_spill] sm:$0xff] %v4311_v40  ;;  %v4314_v12 = vpop.eup %3075  ;;  %3103 = vpow2.f32 %v4204_v52  ;;  %v5859_v33 = vsub.f32 %v5845_v48, %v4115_v50  ;;  %v4341_v52 = vmul.f32 1.442695, %v1998_v61  ;;  %v5862_v48 = vsub.f32 %v3904_v62, %v4115_v50 }
 0x2f5   : > { %v1723_v36 = vadd.f32 %v4284_v5, %v1722_v31  ;;  %v2146_v53 = vadd.f32 %v4311_v40, %v2145_v17  ;;  %v4318_v31 = vpop.eup %3077  ;;  %3105 = vpow2.f32 %v2066_v35  ;;  %v4343_v17 = vmul.f32 1.442695, %v2000_v20  ;;  %v5863_v20 = vld [vmem:[#allocation22_spill] sm:$0xff] }
 0x2f6   : > { %5855 = vst [vmem:[#allocation37_spill] sm:$0xff] %v4318_v31  ;;  %v4327_v30 = vpop.eup %3079  ;;  %3107 = vpow2.f32 %v4206_v39  ;;  %v4339_v38 = vmul.f32 1.442695, %v5859_v33  ;;  %v4356_v61 = vmul.f32 1.442695, %v5862_v48  ;;  %v1519_v33 = vsub.f32 %v5863_v20, %v4305_v32  ;;  %v5867_v20 = vld [vmem:[#allocation26_spill] sm:$0xff] }
 0x2f7   : > { %v1724_v43 = vadd.f32 %v4295_v24, %v1723_v36  ;;  %v2147_v63 = vadd.f32 %v4318_v31, %v2146_v53  ;;  %v1515_v36 = vsub.f32 %v5857_v46, %v4305_v32  ;;  %v4333_v49 = vpop.eup %3081  ;;  %3109 = vpow2.f32 %v2070_v6  ;;  %v5890_v31 = vld [vmem:[#allocation75_spill] sm:$0xff] }
 0x2f8   : > { %5858 = vst [vmem:[#allocation41_spill] sm:$0xff] %v4333_v49  ;;  %v1517_v46 = vsub.f32 %v5860_v22, %v4305_v32  ;;  %3111 = vpow2.f32 %v2074_v42  ;;  %v1578_v54 = vmul.f32 1.442695, %v1513_v11  ;;  %v5865_v62 = vsub.f32 %v3916_v51, %v4115_v50 }
 0x2f9   : > { %v1725_v18 = vadd.f32 %v4307_v57, %v1724_v43  ;;  %v4345_v43 = vpop.eup %3083  ;;  %v2148_v35 = vadd.f32 %v4333_v49, %v2147_v63  ;;  %3113 = vpow2.f32 %v2078_v2  ;;  %v1582_v63 = vmul.f32 1.442695, %v1515_v36 }
 0x2fa   : > { %v4351_v39 = vpop.eup %3085  ;;  %3115 = vpow2.f32 %v2082_v15  ;;  %v4369_v42 = vmul.f32 1.442695, %v5865_v62  ;;  %v5866_v48 = vsub.f32 %v3932_v59, %v4115_v50  ;;  %v5869_v51 = vsub.f32 %v3975_v10, %v4115_v50 }
 0x2fb   : > { %v1726_v53 = vadd.f32 %v4314_v12, %v1725_v18  ;;  %5861 = vst [vmem:[#allocation45_spill] sm:$0xff] %v4351_v39  ;;  %v4360_v29 = vpop.eup %3087  ;;  %v2149_v18 = vadd.f32 %v4351_v39, %v2148_v35  ;;  %3117 = vpow2.f32 %v2086_v47  ;;  %v1586_v35 = vmul.f32 1.442695, %v1517_v46 }
 0x2fc   : > { %v4364_v22 = vpop.eup %3089  ;;  %v4374_v11 = vmul.f32 1.442695, %v5866_v48  ;;  %v4387_v62 = vmul.f32 1.442695, %v5869_v51  ;;  %v5870_v59 = vsub.f32 %v4011_v23, %v4115_v50  ;;  %3119 = vpow2.f32 %v1578_v54 }
 0x2fd   : > { %v1727_v6 = vadd.f32 %v4327_v30, %v1726_v53  ;;  %5864 = vst [vmem:[#allocation48_spill] sm:$0xff] %v4364_v22  ;;  %v1521_v53 = vsub.f32 %v5867_v20, %v4305_v32  ;;  %v4378_v2 = vpop.eup %3091  ;;  %v2150_v15 = vadd.f32 %v4364_v22, %v2149_v18  ;;  %v5871_v20 = vld [vmem:[#allocation30_spill] sm:$0xff]  ;;  %3121 = vpow2.f32 %v1582_v63 }
 0x2fe   : > { %v4382_v0 = vpop.eup %3093  ;;  %v4392_v48 = vmul.f32 1.442695, %v5870_v59  ;;  %v1523_v37 = vsub.f32 %v5871_v20, %v4305_v32  ;;  %v1590_v18 = vmul.f32 1.442695, %v1519_v33  ;;  %3123 = vpow2.f32 %v2090_v27  ;;  %v5874_v59 = vld [vmem:[#allocation34_spill] sm:$0xff] }
 0x2ff   : > { %v1728_v36 = vadd.f32 %v4345_v43, %v1727_v6  ;;  %5868 = vst [vmem:[#allocation52_spill] sm:$0xff] %v4382_v0  ;;  %v4396_v47 = vpop.eup %3095  ;;  %v2151_v6 = vadd.f32 %v4382_v0, %v2150_v15  ;;  %v5873_v23 = vsub.f32 %v4039_v25, %v4115_v50  ;;  %v1525_v20 = vsub.f32 %v5874_v59, %v4305_v32  ;;  %v5877_v25 = vld [vmem:[#allocation38_spill] sm:$0xff]  ;;  %v5895_v0 = vld [vmem:[#allocation87_spill] sm:$0xff] }
 0x300   : > { %v4400_v10 = vpop.eup %3097  ;;  %v5875_v54 = vrot.slane %v4100_v45, 1  ;;  %3125 = vpow2.f32 %v1586_v35  ;;  %v1594_v27 = vmul.f32 1.442695, %v1521_v53  ;;  %v1527_v50 = vsub.f32 %v5877_v25, %v4305_v32  ;;  %v5891_v22 = vld [vmem:[#allocation78_spill] sm:$0xff] }
 0x301   : > { %v1729_v46 = vadd.f32 %v4360_v29, %v1728_v36  ;;  %5872 = vst [vmem:[#allocation56_spill] sm:$0xff] %v4400_v10  ;;  %v4405_v51 = vmul.f32 1.442695, %v5873_v23  ;;  %v4414_v36 = vpop.eup %3099  ;;  %v2152_v63 = vadd.f32 %v4400_v10, %v2151_v6  ;;  %3127 = vpow2.f32 %v2094_v7  ;;  %v5878_v23 = vld [vmem:[#allocation42_spill] sm:$0xff]  ;;  %v5881_v7 = vld [vmem:[#allocation49_spill] sm:$0xff] }
 0x302   : > { %v4412_v24 = vmax.f32 %v4100_v45, %v5875_v54  ;;  %v4418_v15 = vpop.eup %3101  ;;  %v1529_v59 = vsub.f32 %v5878_v23, %v4305_v32  ;;  %v5879_v45 = vld [vmem:[#allocation46_spill] sm:$0xff]  ;;  %3129 = vpow2.f32 %v1590_v18  ;;  %v1598_v53 = vmul.f32 1.442695, %v1523_v37  ;;  %v5882_v23 = vld [vmem:[#allocation53_spill] sm:$0xff] }
 0x303   : > { %v1730_v33 = vadd.f32 %v4378_v2, %v1729_v46  ;;  %5876 = vst [vmem:[#allocation60_spill] sm:$0xff] %v4418_v15  ;;  %v1531_v54 = vsub.f32 %v5879_v45, %v4305_v32  ;;  %v4426_v5 = vpop.eup %3103  ;;  %v2153_v6 = vadd.f32 %v4418_v15, %v2152_v63  ;;  %3131 = vpow2.f32 %v4321_v44  ;;  %v5883_v45 = vld [vmem:[#allocation57_spill] sm:$0xff] }
 0x304   : > { %v4430_v35 = vpop.eup %3105  ;;  %v1533_v25 = vsub.f32 %v5881_v7, %v4305_v32  ;;  %v1535_v40 = vsub.f32 %v5882_v23, %v4305_v32  ;;  %v1537_v1 = vsub.f32 %v5883_v45, %v4305_v32  ;;  %3133 = vpow2.f32 %v1594_v27  ;;  %v5884_v44 = vld [vmem:[#allocation61_spill] sm:$0xff] }
 0x305   : > { %v1731_v46 = vadd.f32 %v4396_v47, %v1730_v33  ;;  %5880 = vst [vmem:[#allocation64_spill] sm:$0xff] %v4430_v35  ;;  %v4439_v49 = vpop.eup %3107  ;;  %v2154_v18 = vadd.f32 %v4430_v35, %v2153_v6  ;;  %v1602_v37 = vmul.f32 1.442695, %v1525_v20  ;;  %3135 = vpow2.f32 %v4323_v4  ;;  %v5885_v23 = vld [vmem:[#allocation65_spill] sm:$0xff]  ;;  %v5889_v4 = vld [vmem:[#allocation72_spill] sm:$0xff] }
 0x306   : > { %v4443_v63 = vpop.eup %3109  ;;  %v1539_v7 = vsub.f32 %v5884_v44, %v4305_v32  ;;  %v5886_v45 = vld [vmem:[#allocation69_spill] sm:$0xff]  ;;  %3137 = vpow2.f32 %v1598_v53  ;;  %v1606_v20 = vmul.f32 1.442695, %v1527_v50  ;;  %v1610_v50 = vmul.f32 1.442695, %v1529_v59 }
 0x307   : > { %v1732_v33 = vadd.f32 %v4414_v36, %v1731_v46  ;;  %v4452_v39 = vpop.eup %3111  ;;  %v2155_v27 = vadd.f32 %v4443_v63, %v2154_v18  ;;  %3139 = vpow2.f32 %v4339_v38  ;;  %v5894_v38 = vld [vmem:[#allocation81_spill] sm:$0xff]  ;;  %v1614_v59 = vmul.f32 1.442695, %v1531_v54 }
 0x308   : > { %5887 = vst [vmem:[#allocation68_spill] sm:$0xff] %v4452_v39  ;;  %v4456_v6 = vpop.eup %3113  ;;  %3141 = vpow2.f32 %v1602_v37  ;;  %v1618_v44 = vmul.f32 1.442695, %v1533_v25  ;;  %v1622_v25 = vmul.f32 1.442695, %v1535_v40 }
 0x309   : > { %v1733_v46 = vadd.f32 %v4426_v5, %v1732_v33  ;;  %5888 = vst [vmem:[#allocation71_spill] sm:$0xff] %v4456_v6  ;;  %v4465_v35 = vpop.eup %3115  ;;  %v2156_v53 = vadd.f32 %v4452_v39, %v2155_v27  ;;  %3143 = vpow2.f32 %v4341_v52 }
 0x30a   : > { %5892 = vst [vmem:[#allocation74_spill] sm:$0xff] %v4465_v35  ;;  %v4469_v18 = vpop.eup %3117  ;;  %3145 = vpow2.f32 %v1606_v20 }
 0x30b   : > { %v1734_v33 = vadd.f32 %v4439_v49, %v1733_v46  ;;  %5893 = vst [vmem:[#allocation80_spill] sm:$0xff] %v4469_v18  ;;  %v4478_v14 = vpop.eup %3119  ;;  %v2157_v27 = vadd.f32 %v4456_v6, %v2156_v53  ;;  %3147 = vpow2.f32 %v4343_v17  ;;  %v1626_v53 = vmul.f32 1.442695, %v1537_v1 }
 0x30c   : > { %5896 = vst [vmem:[#allocation83_spill] sm:$0xff] %v4478_v14  ;;  %v4481_v37 = vpop.eup %3121  ;;  %3149 = vpow2.f32 %v1610_v50  ;;  %v1630_v17 = vmul.f32 1.442695, %v1539_v7  ;;  %v5903_v7 = vsub.f32 %v5885_v23, %v4305_v32 }
 0x30d   : > { %v1735_v46 = vrot.slane %v1734_v33, 4  ;;  %5897 = vst [vmem:[#allocation86_spill] sm:$0xff] %v4481_v37  ;;  %v4488_v9 = vpop.eup %3123  ;;  %v2158_v39 = vadd.f32 %v4465_v35, %v2157_v27  ;;  %v1741_v54 = vadd.f32 %v4481_v37, %v4478_v14  ;;  %3151 = vpow2.f32 %v4356_v61 }
 0x30e   : > { %5898 = vst [vmem:[#allocation89_spill] sm:$0xff] %v4488_v9  ;;  %v4493_v20 = vpop.eup %3125  ;;  %3153 = vpow2.f32 %v1614_v59 }
 0x30f   : > { %v1736_v15 = vadd.f32 %v1735_v46, %v1734_v33  ;;  %5899 = vst [vmem:[#allocation92_spill] sm:$0xff] %v4493_v20  ;;  %v4500_v10 = vpop.eup %3127  ;;  %v2159_v46 = vadd.f32 %v4469_v18, %v2158_v39  ;;  %v1742_v50 = vadd.f32 %v4493_v20, %v1741_v54  ;;  %3155 = vpow2.f32 %v4369_v42 }
 0x310   : > { %v4504_v27 = vpop.eup %3129  ;;  %3157 = vpow2.f32 %v1618_v44 }
 0x311   : > { %v1737_v33 = vrot.slane %v1736_v15, 2  ;;  %5900 = vst [vmem:[#allocation10_spill] sm:$0xff] %v4504_v27  ;;  %v4511_v40 = vpop.eup %3131  ;;  %v2160_v35 = vadd.f32 %v4488_v9, %v2159_v46  ;;  %v1743_v39 = vadd.f32 %v4504_v27, %v1742_v50  ;;  %3159 = vpow2.f32 %v4374_v11 }
 0x312   : > { %v4515_v59 = vpop.eup %3133  ;;  %3161 = vpow2.f32 %v1622_v25  ;;  %v1634_v50 = vmul.f32 1.442695, %v5903_v7  ;;  %v5906_v46 = vsub.f32 %v5889_v4, %v4305_v32  ;;  %v5907_v7 = vsub.f32 %v5890_v31, %v4305_v32 }
 0x313   : > { %v1738_v52 = vadd.f32 %v1737_v33, %v1736_v15  ;;  %5901 = vst [vmem:[#allocation14_spill] sm:$0xff] %v4515_v59  ;;  %v4522_v1 = vpop.eup %3135  ;;  %v2161_v15 = vadd.f32 %v4500_v10, %v2160_v35  ;;  %v1744_v44 = vadd.f32 %v4515_v59, %v1743_v39  ;;  %3163 = vpow2.f32 %v4387_v62 }
 0x314   : > { %v4526_v33 = vpop.eup %3137  ;;  %3165 = vpow2.f32 %v1626_v53  ;;  %v5905_v62 = vsub.f32 %v5886_v45, %v4305_v32  ;;  %v1642_v23 = vmul.f32 1.442695, %v5906_v46  ;;  %v5910_v4 = vsub.f32 %v5891_v22, %v4305_v32 }
 0x315   : > { %v1739_v61 = vrot.slane %v1738_v52, 1  ;;  %5902 = vst [vmem:[#allocation18_spill] sm:$0xff] %v4526_v33  ;;  %v4536_v54 = vpop.eup %3139  ;;  %v2162_v25 = vadd.f32 %v4511_v40, %v2161_v15  ;;  %v1745_v39 = vadd.f32 %v4526_v33, %v1744_v44  ;;  %3167 = vpow2.f32 %v1630_v17  ;;  %v5908_v17 = vld [vmem:[#allocation11_spill] sm:$0xff] }
 0x316   : > { %v4540_v42 = vpop.eup %3141  ;;  %v1638_v11 = vmul.f32 1.442695, %v5905_v62  ;;  %v1951_v44 = vsub.f32 %v5908_v17, %v4412_v24  ;;  %v1650_v46 = vmul.f32 1.442695, %v5910_v4  ;;  %v5911_v31 = vsub.f32 %v5894_v38, %v4305_v32 }
 0x317   : > { %v1740_v35 = vadd.f32 %v1739_v61, %v1738_v52  ;;  %5904 = vst [vmem:[#allocation22_spill] sm:$0xff] %v4540_v42  ;;  %v1646_v52 = vmul.f32 1.442695, %v5907_v7  ;;  %v4551_v61 = vpop.eup %3143  ;;  %v2163_v53 = vadd.f32 %v4522_v1, %v2162_v25  ;;  %v1746_v15 = vadd.f32 %v4540_v42, %v1745_v39 }
 0x318   : > { %v4557_v45 = vpop.eup %3145  ;;  %v1654_v62 = vmul.f32 1.442695, %v5911_v31  ;;  %v5913_v17 = vsub.f32 %v5781_v19, %v4305_v32  ;;  %v5915_v38 = vsub.f32 %v5895_v0, %v4305_v32  ;;  %v5916_v31 = vsub.f32 %v5786_v60, %v4305_v32 }
 0x319   : > { %3169 = vrcp.f32 %v1740_v35  ;;  %5909 = vst [vmem:[#allocation26_spill] sm:$0xff] %v4557_v45  ;;  %v5912_v35 = vld [vmem:[#allocation15_spill] sm:$0xff]  ;;  %v4568_v7 = vpop.eup %3147  ;;  %v2164_v39 = vadd.f32 %v4536_v54, %v2163_v53  ;;  %v1747_v6 = vadd.f32 %v4557_v45, %v1746_v15  ;;  %v5919_v0 = vsub.f32 %v5784_v16, %v4305_v32 }
 0x31a   : > { %3171 = vpow2.f32 %v4392_v48  ;;  %v1953_v25 = vsub.f32 %v5912_v35, %v4412_v24  ;;  %v1658_v48 = vmul.f32 1.442695, %v5913_v17  ;;  %v4575_v22 = vpop.eup %3149  ;;  %v1662_v4 = vmul.f32 1.442695, %v5915_v38  ;;  %v5920_v38 = vld [vmem:[#allocation23_spill] sm:$0xff] }
 0x31b   : > { %3173 = vpow2.f32 %v1634_v50  ;;  %5914 = vst [vmem:[#allocation30_spill] sm:$0xff] %v4575_v22  ;;  %v4584_v35 = vmul.f32 1.442695, %v5916_v31  ;;  %v5917_v50 = vld [vmem:[#allocation19_spill] sm:$0xff]  ;;  %v4588_v19 = vpop.eup %3151  ;;  %v2165_v15 = vadd.f32 %v4551_v61, %v2164_v39  ;;  %v1748_v17 = vadd.f32 %v4575_v22, %v1747_v6  ;;  %v5947_v22 = vld [vmem:[#allocation70_spill] sm:$0xff] }
 0x31c   : > { %3175 = vpow2.f32 %v4405_v51  ;;  %v1955_v53 = vsub.f32 %v5917_v50, %v4412_v24  ;;  %v2016_v51 = vmul.f32 1.442695, %v1951_v44  ;;  %v4592_v9 = vpop.eup %3153  ;;  %v4597_v60 = vmul.f32 1.442695, %v5919_v0 }
 0x31d   : > { %3177 = vpow2.f32 %v1638_v11  ;;  %5918 = vst [vmem:[#allocation34_spill] sm:$0xff] %v4592_v9  ;;  %v1957_v31 = vsub.f32 %v5920_v38, %v4412_v24  ;;  %v2020_v50 = vmul.f32 1.442695, %v1953_v25  ;;  %v4601_v18 = vpop.eup %3155  ;;  %v2166_v39 = vadd.f32 %v4568_v7, %v2165_v15  ;;  %v5924_v25 = vld [vmem:[#allocation27_spill] sm:$0xff] }
 0x31e   : > { %3179 = vpow2.f32 %v1642_v23  ;;  %v5921_v6 = vsub.f32 %v3884_v8, %v4305_v32  ;;  %v1749_v23 = vadd.f32 %v4592_v9, %v1748_v17  ;;  %v4610_v44 = vpop.eup %3157  ;;  %v5923_v16 = vsub.f32 %v3896_v21, %v4305_v32 }
 0x31f   : > { %3181 = vpow2.f32 %v1646_v52  ;;  %5922 = vst [vmem:[#allocation38_spill] sm:$0xff] %v4610_v44  ;;  %v1959_v38 = vsub.f32 %v5924_v25, %v4412_v24  ;;  %v2024_v15 = vmul.f32 1.442695, %v1955_v53  ;;  %v4619_v52 = vpop.eup %3159  ;;  %v2167_v8 = vadd.f32 %v4588_v19, %v2166_v39  ;;  %v5928_v53 = vld [vmem:[#allocation31_spill] sm:$0xff] }
 0x320   : > { %v4607_v11 = vmul.f32 1.442695, %v5921_v6  ;;  %3183 = vpow2.f32 %v1650_v46  ;;  %v4615_v0 = vmul.f32 1.442695, %v5923_v16  ;;  %v5925_v6 = vsub.f32 %v3908_v28, %v4305_v32  ;;  %v4628_v37 = vpop.eup %3161 }
 0x321   : > { %v1750_v46 = vadd.f32 %v4610_v44, %v1749_v23  ;;  %3185 = vpow2.f32 %v2016_v51  ;;  %5926 = vst [vmem:[#allocation42_spill] sm:$0xff] %v4628_v37  ;;  %v5927_v21 = vsub.f32 %v3920_v26, %v4305_v32  ;;  %v1961_v25 = vsub.f32 %v5928_v53, %v4412_v24  ;;  %v4637_v14 = vpop.eup %3163 }
 0x322   : > { %v4625_v17 = vmul.f32 1.442695, %v5925_v6  ;;  %3187 = vpow2.f32 %v2020_v50  ;;  %v2028_v39 = vmul.f32 1.442695, %v1957_v31  ;;  %v2168_v28 = vadd.f32 %v4601_v18, %v2167_v8  ;;  %v4646_v26 = vpop.eup %3165  ;;  %v5931_v31 = vld [vmem:[#allocation35_spill] sm:$0xff] }
 0x323   : > { %v4633_v16 = vmul.f32 1.442695, %v5927_v21  ;;  %3189 = vpow2.f32 %v1654_v62  ;;  %v5929_v51 = vsub.f32 %v3937_v13, %v4305_v32  ;;  %v1751_v6 = vadd.f32 %v4628_v37, %v1750_v46  ;;  %v4655_v62 = vpop.eup %3167  ;;  %v5951_v37 = vld [vmem:[#allocation79_spill] sm:$0xff] }
 0x324   : > { %v5930_v21 = vsub.f32 %v3959_v56, %v4305_v32  ;;  %v1963_v50 = vsub.f32 %v5931_v31, %v4412_v24  ;;  %3191 = vpow2.f32 %v2024_v15  ;;  %v2032_v8 = vmul.f32 1.442695, %v1959_v38  ;;  %v5934_v38 = vld [vmem:[#allocation39_spill] sm:$0xff] }
 0x325   : > { %v4643_v23 = vmul.f32 1.442695, %v5929_v51  ;;  %v2169_v13 = vadd.f32 %v4619_v52, %v2168_v28  ;;  %3193 = vpow2.f32 %v1658_v48  ;;  %v5932_v46 = vsub.f32 %v3981_v41, %v4305_v32 }
 0x326   : > { %v4651_v53 = vmul.f32 1.442695, %v5930_v21  ;;  %v1752_v27 = vadd.f32 %v4646_v26, %v1751_v6  ;;  %v4664_v56 = vpop.eup %3169  ;;  %v5933_v21 = vsub.f32 %v4058_v58, %v4305_v32  ;;  %v1965_v15 = vsub.f32 %v5934_v38, %v4412_v24  ;;  %v5936_v58 = vld [vmem:[#allocation43_spill] sm:$0xff] }
 0x327   : > { %v4661_v51 = vmul.f32 1.442695, %v5932_v46  ;;  %3195 = vpow2.f32 %v2028_v39  ;;  %v2036_v28 = vmul.f32 1.442695, %v1961_v25  ;;  %v4673_v48 = vpop.eup %3171  ;;  %v2170_v41 = vadd.f32 %v4637_v14, %v2169_v13 }
 0x328   : > { %v4669_v31 = vmul.f32 1.442695, %v5933_v21  ;;  %3197 = vpow2.f32 %v1662_v4  ;;  %v1753_v46 = vadd.f32 %v4655_v62, %v1752_v27  ;;  %v4679_v6 = vmul.f32 %v4664_v56, %v4222_v3  ;;  %v4681_v20 = vpop.eup %3173  ;;  %v5938_v27 = vld [vmem:[#allocation47_spill] sm:$0xff] }
 0x329   : > { %v1967_v32 = vsub.f32 %v5936_v58, %v4412_v24  ;;  %3199 = vpow2.f32 %v2032_v8  ;;  %v2040_v21 = vmul.f32 1.442695, %v1963_v50  ;;  %v4687_v25 = vmul.f32 %v4664_v56, %v4230_v34  ;;  %v4689_v39 = vpop.eup %3175  ;;  %v5939_v8 = vld [vmem:[#allocation50_spill] sm:$0xff] }
 0x32a   : > { %5935 = vst [vmem:[#allocation46_spill] sm:$0xff] %v4679_v6  ;;  %v2171_v4 = vadd.f32 %v4673_v48, %v2170_v41  ;;  %3201 = vpow2.f32 %v4584_v35  ;;  %v1754_v3 = vadd.f32 %v4681_v20, %v1753_v46  ;;  %v1969_v13 = vsub.f32 %v5938_v27, %v4412_v24  ;;  %v4696_v38 = vpop.eup %3177  ;;  %v5941_v46 = vld [vmem:[#allocation54_spill] sm:$0xff]  ;;  %v5948_v6 = vld [vmem:[#allocation73_spill] sm:$0xff] }
 0x32b   : > { %5937 = vst [vmem:[#allocation49_spill] sm:$0xff] %v4687_v25  ;;  %v1971_v50 = vsub.f32 %v5939_v8, %v4412_v24  ;;  %3203 = vpow2.f32 %v2036_v28  ;;  %v2044_v58 = vmul.f32 1.442695, %v1965_v15  ;;  %v4702_v33 = vpop.eup %3179  ;;  %v1973_v27 = vsub.f32 %v5941_v46, %v4412_v24  ;;  %v5943_v8 = vld [vmem:[#allocation58_spill] sm:$0xff] }
 0x32c   : > { %5940 = vst [vmem:[#allocation53_spill] sm:$0xff] %v4702_v33  ;;  %v2172_v41 = vadd.f32 %v4689_v39, %v2171_v4  ;;  %3205 = vpow2.f32 %v4597_v60  ;;  %v1755_v35 = vadd.f32 %v4696_v38, %v1754_v3  ;;  %v4709_v59 = vpop.eup %3181  ;;  %v1975_v28 = vsub.f32 %v5943_v8, %v4412_v24  ;;  %v5944_v15 = vld [vmem:[#allocation62_spill] sm:$0xff] }
 0x32d   : > { %5942 = vst [vmem:[#allocation57_spill] sm:$0xff] %v4709_v59  ;;  %v1977_v45 = vsub.f32 %v5944_v15, %v4412_v24  ;;  %3207 = vpow2.f32 %v2040_v21  ;;  %v2048_v34 = vmul.f32 1.442695, %v1967_v32  ;;  %v4715_v42 = vpop.eup %3183  ;;  %v5945_v3 = vld [vmem:[#allocation66_spill] sm:$0xff]  ;;  %v1981_v8 = vsub.f32 %v5947_v22, %v4412_v24 }
 0x32e   : > { %v2173_v4 = vrot.slane %v2172_v41, 4  ;;  %3209 = vpow2.f32 %v4607_v11  ;;  %v1756_v60 = vadd.f32 %v4702_v33, %v1755_v35  ;;  %v1979_v46 = vsub.f32 %v5945_v3, %v4412_v24  ;;  %v4721_v9 = vpop.eup %3185  ;;  %v5950_v35 = vld [vmem:[#allocation76_spill] sm:$0xff] }
 0x32f   : > { %5946 = vst [vmem:[#allocation61_spill] sm:$0xff] %v4721_v9  ;;  %3211 = vpow2.f32 %v2044_v58  ;;  %v2052_v32 = vmul.f32 1.442695, %v1969_v13  ;;  %v4727_v21 = vpop.eup %3187  ;;  %v2056_v44 = vmul.f32 1.442695, %v1971_v50 }
 0x330   : > { %5949 = vst [vmem:[#allocation65_spill] sm:$0xff] %v4727_v21  ;;  %v2174_v25 = vadd.f32 %v2173_v4, %v2172_v41  ;;  %3213 = vpow2.f32 %v4615_v0  ;;  %v1757_v11 = vadd.f32 %v4709_v59, %v1756_v60  ;;  %v4733_v33 = vpop.eup %3189  ;;  %v2179_v13 = vadd.f32 %v4727_v21, %v4721_v9 }
 0x331   : > { %3215 = vpow2.f32 %v2048_v34  ;;  %v4739_v58 = vpop.eup %3191  ;;  %v2060_v4 = vmul.f32 1.442695, %v1973_v27  ;;  %v2064_v3 = vmul.f32 1.442695, %v1975_v28  ;;  %v2068_v15 = vmul.f32 1.442695, %v1977_v45 }
 0x332   : > { %5952 = vst [vmem:[#allocation69_spill] sm:$0xff] %v4739_v58  ;;  %v2175_v41 = vrot.slane %v2174_v25, 2  ;;  %3217 = vpow2.f32 %v4625_v17  ;;  %v1758_v0 = vadd.f32 %v4715_v42, %v1757_v11  ;;  %v4743_v60 = vpop.eup %3193  ;;  %v2180_v22 = vadd.f32 %v4739_v58, %v2179_v13 }
 0x333   : > { %3219 = vpow2.f32 %v2052_v32  ;;  %v2072_v21 = vmul.f32 1.442695, %v1979_v46  ;;  %v2076_v17 = vmul.f32 1.442695, %v1981_v8  ;;  %v4755_v28 = vmul.f32 %v4664_v56, %v4426_v5 }
 0x334   : > { %v4746_v34 = vpop.eup %3195  ;;  %v2176_v50 = vadd.f32 %v2175_v41, %v2174_v25  ;;  %3221 = vpow2.f32 %v4633_v16  ;;  %v1759_v59 = vadd.f32 %v4733_v33, %v1758_v0  ;;  %v4763_v25 = vmul.f32 %v4664_v56, %v4439_v49 }
 0x335   : > { %5953 = vst [vmem:[#allocation72_spill] sm:$0xff] %v4746_v34  ;;  %v4750_v9 = vpop.eup %3197  ;;  %3223 = vpow2.f32 %v2056_v44  ;;  %v2181_v27 = vadd.f32 %v4746_v34, %v2180_v22  ;;  %5954 = vst [vmem:[#allocation75_spill] sm:$0xff] %v4755_v28  ;;  %v4770_v5 = vmul.f32 %v4664_v56, %v4396_v47  ;;  %v4774_v8 = vmul.f32 %v4664_v56, %v4414_v36 }
 0x336   : > { %v4757_v45 = vpop.eup %3199  ;;  %v2177_v32 = vrot.slane %v2176_v50, 1  ;;  %3225 = vpow2.f32 %v4643_v23  ;;  %v1760_v16 = vadd.f32 %v4743_v60, %v1759_v59  ;;  %v4789_v36 = vmul.f32 %v4664_v56, %v4360_v29 }
 0x337   : > { %5955 = vst [vmem:[#allocation78_spill] sm:$0xff] %v4757_v45  ;;  %v4765_v46 = vpop.eup %3201  ;;  %3227 = vpow2.f32 %v2060_v4  ;;  %v2182_v44 = vadd.f32 %v4757_v45, %v2181_v27  ;;  %5956 = vst [vmem:[#allocation81_spill] sm:$0xff] %v4770_v5  ;;  %v4796_v0 = vmul.f32 %v4664_v56, %v4378_v2  ;;  %v4807_v29 = vmul.f32 %v4664_v56, %v4345_v43  ;;  %v5980_v5 = vld [vmem:[#allocation101_spill] sm:$0xff] }
 0x338   : > { %5957 = vst [vmem:[#allocation87_spill] sm:$0xff] %v4774_v8  ;;  %v4776_v23 = vpop.eup %3203  ;;  %v2178_v59 = vadd.f32 %v2177_v32, %v2176_v50  ;;  %3229 = vpow2.f32 %v4651_v53  ;;  %v1761_v49 = vadd.f32 %v4750_v9, %v1760_v16  ;;  %5959 = vst [vmem:[#allocation15_spill] sm:$0xff] %v4789_v36  ;;  %v4811_v27 = vmul.f32 %v4664_v56, %v4307_v57 }
 0x339   : > { %5958 = vst [vmem:[#allocation11_spill] sm:$0xff] %v4776_v23  ;;  %v4782_v22 = vpop.eup %3205  ;;  %3231 = vpow2.f32 %v2064_v3  ;;  %v2183_v47 = vadd.f32 %v4776_v23, %v2182_v44  ;;  %5961 = vst [vmem:[#allocation23_spill] sm:$0xff] %v4796_v0  ;;  %v4800_v3 = vmul.f32 %v4664_v56, %v4327_v30  ;;  %v5967_v57 = vsub.f32 %v5948_v6, %v4412_v24 }
 0x33a   : > { %v4791_v41 = vpop.eup %3207  ;;  %3233 = vrcp.f32 %v2178_v59  ;;  %v1762_v53 = vadd.f32 %v4765_v46, %v1761_v49  ;;  %5963 = vst [vmem:[#allocation31_spill] sm:$0xff] %v4807_v29  ;;  %5964 = vst [vmem:[#allocation35_spill] sm:$0xff] %v4811_v27 }
 0x33b   : > { %5960 = vst [vmem:[#allocation19_spill] sm:$0xff] %v4791_v41  ;;  %5962 = vst [vmem:[#allocation27_spill] sm:$0xff] %v4800_v3  ;;  %v4802_v4 = vpop.eup %3209  ;;  %3235 = vpow2.f32 %v2068_v15  ;;  %v2184_v50 = vadd.f32 %v4791_v41, %v2183_v47  ;;  %v4821_v15 = vmul.f32 %v4664_v56, %v4314_v12  ;;  %v2080_v43 = vmul.f32 1.442695, %v5967_v57 }
 0x33c   : > { %v4813_v32 = vpop.eup %3211  ;;  %3237 = vpow2.f32 %v4661_v51  ;;  %v1763_v30 = vadd.f32 %v4782_v22, %v1762_v53  ;;  %v5969_v53 = vsub.f32 %v5950_v35, %v4412_v24  ;;  %v1991_v12 = vsub.f32 %v5782_v55, %v4412_v24 }
 0x33d   : > { %5965 = vst [vmem:[#allocation39_spill] sm:$0xff] %v4813_v32  ;;  %5966 = vst [vmem:[#allocation43_spill] sm:$0xff] %v4821_v15  ;;  %v4823_v16 = vpop.eup %3213  ;;  %3239 = vpow2.f32 %v2072_v21  ;;  %v2185_v44 = vadd.f32 %v4813_v32, %v2184_v50  ;;  %v5968_v21 = vld [vmem:[#allocation82_spill] sm:$0xff] }
 0x33e   : > { %v4831_v59 = vpop.eup %3215  ;;  %3241 = vpow2.f32 %v4669_v31  ;;  %v1764_v49 = vadd.f32 %v4802_v4, %v1763_v30  ;;  %v1989_v6 = vsub.f32 %v5968_v21, %v4412_v24  ;;  %v2084_v50 = vmul.f32 1.442695, %v5969_v53 }
 0x33f   : > { %v4837_v47 = vpop.eup %3217  ;;  %3243 = vpow2.f32 %v2076_v17  ;;  %v2186_v57 = vadd.f32 %v4831_v59, %v2185_v44  ;;  %v5970_v21 = vsub.f32 %v5951_v37, %v4412_v24 }
 0x340   : > { %v4845_v51 = vpop.eup %3219  ;;  %v1765_v31 = vadd.f32 %v4823_v16, %v1764_v49  ;;  %3245 = vpow2.f32 %v2080_v43  ;;  %v5971_v49 = vld [vmem:[#allocation88_spill] sm:$0xff]  ;;  %v2092_v11 = vmul.f32 1.442695, %v1989_v6  ;;  %v5973_v6 = vld [vmem:[#allocation94_spill] sm:$0xff] }
 0x341   : > { %v4848_v30 = vpop.eup %3221  ;;  %v2088_v17 = vmul.f32 1.442695, %v5970_v21  ;;  %v2187_v2 = vadd.f32 %v4845_v51, %v2186_v57  ;;  %v1993_v13 = vsub.f32 %v5971_v49, %v4412_v24  ;;  %3247 = vpow2.f32 %v2084_v50  ;;  %v5972_v57 = vld [vmem:[#allocation91_spill] sm:$0xff] }
 0x342   : > { %v4856_v35 = vpop.eup %3223  ;;  %v1766_v44 = vadd.f32 %v4837_v47, %v1765_v31  ;;  %v1995_v27 = vsub.f32 %v5972_v57, %v4412_v24  ;;  %v2096_v31 = vmul.f32 1.442695, %v1991_v12 }
 0x343   : > { %v4859_v53 = vpop.eup %3225  ;;  %v2188_v55 = vadd.f32 %v4856_v35, %v2187_v2  ;;  %3249 = vpow2.f32 %v2088_v17  ;;  %v1997_v2 = vsub.f32 %v5973_v6, %v4412_v24  ;;  %v2100_v3 = vmul.f32 1.442695, %v1993_v13  ;;  %v5976_v6 = vld [vmem:[#allocation68_spill] sm:$0xff] }
 0x344   : > { %v4864_v43 = vpop.eup %3227  ;;  %v1767_v37 = vadd.f32 %v4848_v30, %v1766_v44  ;;  %v5974_v44 = vld [vmem:[#allocation96_spill] sm:$0xff]  ;;  %3251 = vpow2.f32 %v2092_v11  ;;  %v2104_v11 = vmul.f32 1.442695, %v1995_v27 }
 0x345   : > { %v4867_v21 = vpop.eup %3229  ;;  %v2189_v15 = vadd.f32 %v4864_v43, %v2188_v55  ;;  %v1999_v58 = vsub.f32 %v5974_v44, %v4412_v24  ;;  %v5975_v55 = vld [vmem:[#allocation97_spill] sm:$0xff]  ;;  %3253 = vpow2.f32 %v2096_v31  ;;  %v2108_v36 = vmul.f32 1.442695, %v1997_v2 }
 0x346   : > { %v4872_v34 = vpop.eup %3231  ;;  %v1768_v50 = vadd.f32 %v4859_v53, %v1767_v37  ;;  %v2001_v29 = vsub.f32 %v5975_v55, %v4412_v24  ;;  %v5977_v55 = vld [vmem:[#allocation98_spill] sm:$0xff]  ;;  %3255 = vpow2.f32 %v2100_v3 }
 0x347   : > { %v4877_v49 = vpop.eup %3233  ;;  %v2190_v57 = vadd.f32 %v4872_v34, %v2189_v15  ;;  %v2003_v45 = vsub.f32 %v5977_v55, %v4412_v24  ;;  %v2112_v27 = vmul.f32 1.442695, %v1999_v58  ;;  %v5979_v55 = vld [vmem:[#allocation100_spill] sm:$0xff]  ;;  %3257 = vpow2.f32 %v2104_v11  ;;  %v5982_v58 = vld [vmem:[#allocation77_spill] sm:$0xff] }
 0x348   : > { %v4882_v17 = vpop.eup %3235  ;;  %v1769_v12 = vadd.f32 %v4867_v21, %v1768_v50  ;;  %v4889_v37 = vmul.f32 %v4877_v49, %v4443_v63  ;;  %v4893_v23 = vmul.f32 %v4877_v49, %v5976_v6  ;;  %v5978_v6 = vld [vmem:[#allocation99_spill] sm:$0xff]  ;;  %v2116_v41 = vmul.f32 1.442695, %v2001_v29 }
 0x349   : > { %v4895_v44 = vpop.eup %3237  ;;  %v2191_v13 = vadd.f32 %v4882_v17, %v2190_v57  ;;  %v2005_v32 = vsub.f32 %v5978_v6, %v4412_v24  ;;  %v2007_v2 = vsub.f32 %v5979_v55, %v4412_v24  ;;  %v2009_v63 = vsub.f32 %v5980_v5, %v4412_v24 }
 0x34a   : > { %v4898_v15 = vpop.eup %3239  ;;  %v1770_v50 = vadd.f32 %v4895_v44, %v1769_v12  ;;  %3259 = vpow2.f32 %v2108_v36  ;;  %v2120_v6 = vmul.f32 1.442695, %v2003_v45  ;;  %v4925_v55 = vmul.f32 %v4877_v49, %v4673_v48 }
 0x34b   : > { %v4905_v0 = vpop.eup %3241  ;;  %v2192_v31 = vadd.f32 %v4898_v15, %v2191_v13  ;;  %v2011_v13 = vsub.f32 %v5982_v58, %v4412_v24  ;;  %3261 = vpow2.f32 %v2112_v27  ;;  %v4935_v36 = vmul.f32 %v4877_v49, %v4619_v52 }
 0x34c   : > { %v4910_v57 = vpop.eup %3243  ;;  %v1771_v12 = vadd.f32 %v4905_v0, %v1770_v50  ;;  %v2124_v50 = vmul.f32 1.442695, %v2005_v32  ;;  %5983 = vst [vmem:[#allocation50_spill] sm:$0xff] %v4925_v55  ;;  %3263 = vpow2.f32 %v2116_v41  ;;  %v4944_v48 = vmul.f32 %v4877_v49, %v4588_v19  ;;  %v6005_v55 = vld [vmem:[#allocation49_spill] sm:$0xff] }
 0x34d   : > { %v2193_v8 = vadd.f32 %v4910_v57, %v2192_v31  ;;  %v4918_v28 = vpop.eup %3245  ;;  %v4931_v31 = vmul.f32 %v4877_v49, %v4689_v39  ;;  %5986 = vst [vmem:[#allocation62_spill] sm:$0xff] %v4935_v36  ;;  %v4948_v41 = vmul.f32 %v4877_v49, %v4601_v18  ;;  %v4956_v27 = vmul.f32 %v4877_v49, %v4551_v61 }
 0x34e   : > { %5981 = vst [vmem:[#allocation47_spill] sm:$0xff] %v4918_v28  ;;  %v1772_v3 = vrot.slane %v1771_v12, 4  ;;  %v4927_v5 = vpop.eup %3247  ;;  %5988 = vst [vmem:[#allocation70_spill] sm:$0xff] %v4944_v48  ;;  %3265 = vpow2.f32 %v2120_v6 }
 0x34f   : > { %v2194_v29 = vadd.f32 %v4918_v28, %v2193_v8  ;;  %5984 = vst [vmem:[#allocation54_spill] sm:$0xff] %v4927_v5  ;;  %5985 = vst [vmem:[#allocation58_spill] sm:$0xff] %v4931_v31  ;;  %v4940_v8 = vmul.f32 %v4877_v49, %v4637_v14  ;;  %v4960_v14 = vmul.f32 %v4877_v49, %v4568_v7  ;;  %3267 = vpow2.f32 %v2124_v50  ;;  %v6008_v31 = vld [vmem:[#allocation30_spill] sm:$0xff] }
 0x350   : > { %v1773_v11 = vadd.f32 %v1772_v3, %v1771_v12  ;;  %5989 = vst [vmem:[#allocation73_spill] sm:$0xff] %v4948_v41  ;;  %v4950_v39 = vpop.eup %3249  ;;  %5990 = vst [vmem:[#allocation76_spill] sm:$0xff] %v4956_v27  ;;  %v4969_v3 = vmul.f32 %v4877_v49, %v4522_v1  ;;  %v4977_v7 = vmul.f32 %v4877_v49, %v4536_v54  ;;  %v2128_v12 = vmul.f32 1.442695, %v2007_v2 }
 0x351   : > { %v2195_v45 = vadd.f32 %v4927_v5, %v2194_v29  ;;  %5987 = vst [vmem:[#allocation66_spill] sm:$0xff] %v4940_v8  ;;  %5991 = vst [vmem:[#allocation79_spill] sm:$0xff] %v4960_v14  ;;  %v4971_v58 = vpop.eup %3251  ;;  %v4986_v1 = vmul.f32 %v4877_v49, %v4511_v40  ;;  %v5997_v29 = vld [vmem:[#allocation84_spill] sm:$0xff]  ;;  %v2136_v5 = vmul.f32 1.442695, %v2011_v13 }
 0x352   : > { %v1774_v32 = vrot.slane %v1773_v11, 2  ;;  %5992 = vst [vmem:[#allocation82_spill] sm:$0xff] %v4969_v3  ;;  %5993 = vst [vmem:[#allocation88_spill] sm:$0xff] %v4971_v58  ;;  %v2013_v52 = vsub.f32 %v5997_v29, %v4412_v24  ;;  %3269 = vpow2.f32 %v2128_v12 }
 0x353   : > { %v2196_v19 = vadd.f32 %v4950_v39, %v2195_v45  ;;  %5994 = vst [vmem:[#allocation91_spill] sm:$0xff] %v4977_v7  ;;  %v4981_v45 = vmul.f32 %v4877_v49, %v4500_v10  ;;  %5996 = vst [vmem:[#allocation96_spill] sm:$0xff] %v4986_v1  ;;  %v2132_v10 = vmul.f32 1.442695, %v2009_v63 }
 0x354   : > { %v1775_v61 = vadd.f32 %v1774_v32, %v1773_v11  ;;  %v4988_v11 = vpop.eup %3253  ;;  %v2140_v50 = vmul.f32 1.442695, %v2013_v52 }
 0x355   : > { %5995 = vst [vmem:[#allocation94_spill] sm:$0xff] %v4981_v45  ;;  %v2197_v18 = vadd.f32 %v4971_v58, %v2196_v19  ;;  %v4997_v19 = vpop.eup %3255  ;;  %v6009_v58 = vld [vmem:[#allocation28_spill] sm:$0xff] }
 0x356   : > { %v1776_v32 = vrot.slane %v1775_v61, 1  ;;  %v5000_v27 = vpop.eup %3257 }
 0x357   : > { %v2198_v6 = vadd.f32 %v4988_v11, %v2197_v18  ;;  %v5002_v24 = vpop.eup %3259 }
 0x358   : > { %v1777_v40 = vadd.f32 %v1776_v32, %v1775_v61  ;;  %v5005_v18 = vpop.eup %3261 }
 0x359   : > { %v2199_v28 = vadd.f32 %v4997_v19, %v2198_v6  ;;  %v5007_v29 = vpop.eup %3263 }
 0x35a   : > { %3271 = vrcp.f32 %v1777_v40 }
 0x35b   : > { %3273 = vpow2.f32 %v2132_v10  ;;  %v2200_v63 = vadd.f32 %v5000_v27, %v2199_v28  ;;  %v5012_v32 = vpop.eup %3265 }
 0x35c   : > { %3275 = vpow2.f32 %v2136_v5  ;;  %v5015_v10 = vpop.eup %3267 }
 0x35d   : > { %v2201_v61 = vadd.f32 %v5002_v24, %v2200_v63  ;;  %3277 = vpow2.f32 %v2140_v50  ;;  %v5998_v63 = vld [vmem:[#allocation40_spill] sm:$0xff] }
 0x35e   : > { %v1804_v50 = vmul.f32 %v4664_v56, %v5998_v63  ;;  %v6000_v63 = vld [vmem:[#allocation32_spill] sm:$0xff] }
 0x35f   : > { %v2202_v13 = vadd.f32 %v5005_v18, %v2201_v61  ;;  %v5018_v52 = vpop.eup %3269  ;;  %v5999_v61 = vld [vmem:[#allocation44_spill] sm:$0xff]  ;;  %v1800_v1 = vmul.f32 %v4664_v56, %v6000_v63 }
 0x360   : > { %v6004_v63 = vld [vmem:[#allocation24_spill] sm:$0xff] }
 0x361   : > { %v2203_v12 = vadd.f32 %v5007_v29, %v2202_v13  ;;  %v1806_v13 = vmul.f32 %v4664_v56, %v5999_v61  ;;  %v6001_v61 = vld [vmem:[#allocation36_spill] sm:$0xff]  ;;  %v1796_v8 = vmul.f32 %v4664_v56, %v6004_v63 }
 0x362   : > { %v1802_v3 = vmul.f32 %v4664_v56, %v6001_v61 }
 0x363   : > { %v2204_v6 = vadd.f32 %v5012_v32, %v2203_v12  ;;  %v1856_v36 = vpack.c.bf16 %v1806_v13, %v1804_v50  ;;  %v6011_v50 = vld [vmem:[#allocation22_spill] sm:$0xff] }
 0x365   : > { %v2205_v28 = vadd.f32 %v5015_v10, %v2204_v6 }
 0x367   : > { %v5020_v40 = vpop.eup %3271  ;;  %v2206_v5 = vadd.f32 %v5018_v52, %v2205_v28 }
 0x368   : > { %v5027_v2 = vpop.eup %3273  ;;  %v1809_v12 = vmul.f32 %v5020_v40, %v4681_v20  ;;  %v1811_v6 = vmul.f32 %v5020_v40, %v4696_v38  ;;  %v1805_v54 = vmul.f32 %v5020_v40, %v4646_v26  ;;  %v1807_v28 = vmul.f32 %v5020_v40, %v4655_v62  ;;  %v6002_v38 = vld [vmem:[#allocation38_spill] sm:$0xff] }
 0x369   : > { %v2207_v45 = vadd.f32 %v5027_v2, %v2206_v5  ;;  %v5042_v7 = vpop.eup %3275  ;;  %v1801_v48 = vmul.f32 %v5020_v40, %v6002_v38  ;;  %v6003_v26 = vld [vmem:[#allocation42_spill] sm:$0xff]  ;;  %v1797_v38 = vmul.f32 %v5020_v40, %v6008_v31  ;;  %v1793_v13 = vmul.f32 %v5020_v40, %v6011_v50 }
 0x36a   : > { %v1859_v20 = vpack.c.bf16 %v1811_v6, %v1809_v12  ;;  %v1803_v41 = vmul.f32 %v5020_v40, %v6003_v26  ;;  %v5049_v62 = vpop.eup %3277  ;;  %v1857_v5 = vpack.c.bf16 %v1807_v28, %v1805_v54  ;;  %v6006_v12 = vld [vmem:[#allocation46_spill] sm:$0xff]  ;;  %v1798_v26 = vmul.f32 %v4664_v56, %v6009_v58 }
 0x36b   : > { %v2208_v14 = vadd.f32 %v5042_v7, %v2207_v45  ;;  %v6007_v6 = vpack.c.bf16 %v6005_v55, %v6006_v12  ;;  %v1854_v45 = vpack.c.bf16 %v1802_v3, %v1800_v1  ;;  %v5071_v55 = vmul.f32 %v5020_v40, %v4905_v0  ;;  %v6012_v12 = vld [vmem:[#allocation26_spill] sm:$0xff] }
 0x36c   : > { %2359 = vmatprep.subr.bf16.mxu0 %v1859_v20  ;;  %v6010_v20 = vld [vmem:[#allocation34_spill] sm:$0xff]  ;;  %v1855_v31 = vpack.c.bf16 %v1803_v41, %v1801_v48  ;;  %v5075_v58 = vmul.f32 %v5020_v40, %v4859_v53  ;;  %v5079_v1 = vmul.f32 %v5020_v40, %v4867_v21  ;;  %v5089_v0 = vmul.f32 %v5020_v40, %v4848_v30 }
 0x36d   : > { %v2209_v61 = vadd.f32 %v5049_v62, %v2208_v14  ;;  %2360 = vmatpush1.bf16.msra.mxu0 %v6007_v6  ;;  %v1799_v54 = vmul.f32 %v5020_v40, %v6010_v20  ;;  %v5067_v14 = vmul.f32 %v5020_v40, %v4895_v44  ;;  %v5085_v44 = vmul.f32 %v5020_v40, %v4837_v47  ;;  %v6016_v30 = vld [vmem:[#allocation18_spill] sm:$0xff] }
 0x36e   : > { %2361 = vmatprep.subr.bf16.mxu0 %v1857_v5  ;;  %v5093_v48 = vmul.f32 %v5020_v40, %v4802_v4  ;;  %v1873_v21 = vpack.c.bf16 %v5079_v1, %v5075_v58  ;;  %v5099_v41 = vmul.f32 %v5020_v40, %v4823_v16  ;;  %v5103_v47 = vmul.f32 %v5020_v40, %v4765_v46  ;;  %v6015_v46 = vld [vmem:[#allocation14_spill] sm:$0xff]  ;;  %v6035_v1 = vld [vmem:[#allocation87_spill] sm:$0xff] }
 0x36f   : > { %v2210_v3 = vrot.slane %v2209_v61, 4  ;;  %v1875_v28 = vpack.c.bf16 %v5071_v55, %v5067_v14  ;;  %v5109_v4 = vmul.f32 %v5020_v40, %v4782_v22  ;;  %v5117_v16 = vmul.f32 %v5020_v40, %v4750_v9 }
 0x370   : > { %v5123_v63 = vmul.f32 %v5020_v40, %v4715_v42  ;;  %v5127_v22 = vmul.f32 %v5020_v40, %v4733_v33  ;;  %v6013_v33 = vld [vmem:[#allocation16_spill] sm:$0xff]  ;;  %v1789_v9 = vmul.f32 %v5020_v40, %v6015_v46  ;;  %v6032_v14 = vpack.c.bf16 %v4893_v23, %v4889_v37 }
 0x371   : > { %v2211_v53 = vadd.f32 %v2210_v3, %v2209_v61  ;;  %2362 = vmatpush1.bf16.msra.mxu0 %v1856_v36  ;;  %v5113_v36 = vmul.f32 %v5020_v40, %v4743_v60  ;;  %v1853_v61 = vpack.c.bf16 %v1799_v54, %v1797_v38  ;;  %v1795_v60 = vmul.f32 %v5020_v40, %v6012_v12  ;;  %v6014_v54 = vld [vmem:[#allocation20_spill] sm:$0xff] }
 0x372   : > { %2363 = vmatprep.subr.bf16.mxu0 %v1855_v31  ;;  %v1852_v3 = vpack.c.bf16 %v1798_v26, %v1796_v8  ;;  %v1792_v38 = vmul.f32 %v4664_v56, %v6013_v33  ;;  %v1794_v31 = vmul.f32 %v4664_v56, %v6014_v54  ;;  %v6018_v26 = vld [vmem:[#allocation12_spill] sm:$0xff] }
 0x373   : > { %v2212_v5 = vrot.slane %v2211_v53, 2  ;;  %v1865_v6 = vpack.c.bf16 %v5117_v16, %v5113_v36  ;;  %v1851_v12 = vpack.c.bf16 %v1795_v60, %v1793_v13  ;;  %v1790_v33 = vmul.f32 %v4664_v56, %v6018_v26  ;;  %v6019_v54 = vld [vmem:[#allocation92_spill] sm:$0xff]  ;;  %v6020_v60 = vld [vmem:[#allocation10_spill] sm:$0xff]  ;;  %v6025_v26 = vld [vmem:[#allocation85_spill] sm:$0xff] }
 0x374   : > { %v1785_v13 = vmul.f32 %v5020_v40, %v6019_v54  ;;  %v1787_v46 = vmul.f32 %v5020_v40, %v6020_v60  ;;  %v6072_v16 = vld [vmem:[#allocation63_spill] sm:$0xff] }
 0x375   : > { %v2213_v20 = vadd.f32 %v2212_v5, %v2211_v53  ;;  %2364 = vmatpush1.bf16.msra.mxu0 %v1854_v45  ;;  %v1791_v53 = vmul.f32 %v5020_v40, %v6016_v30  ;;  %v1850_v5 = vpack.c.bf16 %v1794_v31, %v1792_v38 }
 0x376   : > { %2365 = vmatprep.subr.bf16.mxu0 %v1853_v61  ;;  %v6017_v61 = vld [vmem:[#allocation8_spill] sm:$0xff]  ;;  %v1847_v31 = vpack.c.bf16 %v1787_v46, %v1785_v13 }
 0x377   : > { %v2214_v50 = vrot.slane %v2213_v20, 1  ;;  %v1788_v8 = vmul.f32 %v4664_v56, %v6017_v61  ;;  %v1849_v42 = vpack.c.bf16 %v1791_v53, %v1789_v9  ;;  %v6024_v9 = vld [vmem:[#allocation86_spill] sm:$0xff] }
 0x378   : > { %v1783_v53 = vmul.f32 %v5020_v40, %v6024_v9  ;;  %v6030_v9 = vld [vmem:[#allocation56_spill] sm:$0xff] }
 0x379   : > { %v2215_v45 = vadd.f32 %v2214_v50, %v2213_v20  ;;  %2366 = vmatpush1.bf16.msra.mxu0 %v1852_v3  ;;  %v1848_v30 = vpack.c.bf16 %v1790_v33, %v1788_v8  ;;  %v6021_v20 = vld [vmem:[#allocation93_spill] sm:$0xff]  ;;  %v6022_v3 = vld [vmem:[#allocation90_spill] sm:$0xff] }
 0x37a   : > { %2367 = vmatprep.subr.bf16.mxu0 %v1851_v12  ;;  %v1784_v50 = vmul.f32 %v4664_v56, %v6021_v20  ;;  %v1786_v38 = vmul.f32 %v4664_v56, %v6022_v3  ;;  %v6023_v12 = vld [vmem:[#allocation83_spill] sm:$0xff] }
 0x37b   : > { %3279 = vrcp.f32 %v2215_v45  ;;  %v1781_v45 = vmul.f32 %v5020_v40, %v6023_v12  ;;  %v6029_v12 = vld [vmem:[#allocation52_spill] sm:$0xff] }
 0x37c   : > { %v1846_v61 = vpack.c.bf16 %v1786_v38, %v1784_v50  ;;  %v6027_v50 = vld [vmem:[#allocation60_spill] sm:$0xff] }
 0x37d   : > { %2368 = vmatpush1.bf16.msra.mxu0 %v1850_v5  ;;  %v6026_v5 = vld [vmem:[#allocation95_spill] sm:$0xff]  ;;  %v1845_v33 = vpack.c.bf16 %v1783_v53, %v1781_v45  ;;  %v2242_v3 = vmul.f32 %v4877_v49, %v6027_v50  ;;  %v6028_v38 = vld [vmem:[#allocation64_spill] sm:$0xff]  ;;  %v2238_v45 = vmul.f32 %v4877_v49, %v6029_v12  ;;  %v2240_v53 = vmul.f32 %v4877_v49, %v6030_v9  ;;  %v6046_v12 = vld [vmem:[#allocation37_spill] sm:$0xff] }
 0x37e   : > { %2369 = vmatprep.subr.bf16.mxu0 %v1849_v42  ;;  %v1780_v42 = vmul.f32 %v4664_v56, %v6025_v26  ;;  %v1782_v8 = vmul.f32 %v4664_v56, %v6026_v5  ;;  %v6033_v5 = vld [vmem:[#allocation75_spill] sm:$0xff]  ;;  %v6047_v9 = vld [vmem:[#allocation41_spill] sm:$0xff] }
 0x37f   : > { %v6034_v23 = vpack.c.bf16 %v4763_v25, %v6033_v5 }
 0x380   : > { %v1844_v54 = vpack.c.bf16 %v1782_v8, %v1780_v42 }
 0x381   : > { %2370 = vmatpush1.bf16.msra.mxu0 %v1848_v30 }
 0x382   : > { %2371 = vmatprep.subr.bf16.mxu0 %v1847_v31  ;;  %v2244_v31 = vmul.f32 %v4877_v49, %v6028_v38 }
 0x384   : > { %v2294_v55 = vpack.c.bf16 %v2244_v31, %v2242_v3  ;;  %v6041_v3 = vld [vmem:[#allocation19_spill] sm:$0xff] }
 0x385   : > { %2372 = vmatpush1.bf16.msra.mxu0 %v1846_v61  ;;  %v6031_v61 = vld [vmem:[#allocation45_spill] sm:$0xff]  ;;  %v6042_v31 = vld [vmem:[#allocation39_spill] sm:$0xff] }
 0x386   : > { %2373 = vmatprep.subr.bf16.mxu0 %v1845_v33  ;;  %v2234_v26 = vmul.f32 %v4877_v49, %v6031_v61  ;;  %v6048_v61 = vpack.c.bf16 %v5099_v41, %v5093_v48  ;;  %v6056_v41 = vpack.c.bf16 %v5109_v4, %v5103_v47  ;;  %v6064_v47 = vld [vmem:[#allocation59_spill] sm:$0xff] }
 0x387   : > { %v1816_v4 = vmul.f32 %v4664_v56, %v6064_v47  ;;  %v6082_v47 = vld [vmem:[#allocation66_spill] sm:$0xff] }
 0x388   : > { %v5165_v13 = vpop.eup %3279 }
 0x389   : > { %v2247_v60 = vmul.f32 %v5165_v13, %v4898_v15  ;;  %v2249_v46 = vmul.f32 %v5165_v13, %v4910_v57  ;;  %v2243_v30 = vmul.f32 %v5165_v13, %v4872_v34  ;;  %v2245_v20 = vmul.f32 %v5165_v13, %v4882_v17  ;;  %2374 = vmatpush1.bf16.msra.mxu0 %v1844_v54  ;;  %v6038_v54 = vld [vmem:[#allocation88_spill] sm:$0xff] }
 0x38a   : > { %2375 = vmatprep.subr.bf16.mxu0 %v1875_v28  ;;  %v2239_v57 = vmul.f32 %v5165_v13, %v4856_v35  ;;  %v2241_v34 = vmul.f32 %v5165_v13, %v4864_v43  ;;  %v2235_v35 = vmul.f32 %v5165_v13, %v4831_v59  ;;  %v5199_v43 = vmul.f32 %v5165_v13, %v5042_v7 }
 0x38b   : > { %v2297_v15 = vpack.c.bf16 %v2249_v46, %v2247_v60  ;;  %v2295_v17 = vpack.c.bf16 %v2245_v20, %v2243_v30  ;;  %v5203_v28 = vmul.f32 %v5165_v13, %v5049_v62  ;;  %v2237_v42 = vmul.f32 %v5165_v13, %v4845_v51  ;;  %v6039_v46 = vld [vmem:[#allocation48_spill] sm:$0xff] }
 0x38c   : > { %v5212_v37 = vmul.f32 %v5165_v13, %v5018_v52  ;;  %v5216_v59 = vmul.f32 %v5165_v13, %v5027_v2  ;;  %v2293_v7 = vpack.c.bf16 %v2241_v34, %v2239_v57  ;;  %v5225_v25 = vmul.f32 %v5165_v13, %v5012_v32 }
 0x38d   : > { %2318 = vmatprep.subr.bf16.mxu1 %v2297_v15  ;;  %2376 = vmatpush2.bf16.msra.mxu0 %v6034_v23  ;;  %v2313_v62 = vpack.c.bf16 %v5203_v28, %v5199_v43  ;;  %v5229_v51 = vmul.f32 %v5165_v13, %v5015_v10  ;;  %v5235_v52 = vmul.f32 %v5165_v13, %v5005_v18  ;;  %v6052_v23 = vld [vmem:[#allocation27_spill] sm:$0xff]  ;;  %v6085_v43 = vld [vmem:[#allocation73_spill] sm:$0xff]  ;;  %v6086_v28 = vld [vmem:[#allocation70_spill] sm:$0xff] }
 0x38e   : > { %2319 = vmatpush1.bf16.msra.mxu1 %v6032_v14  ;;  %2377 = vmatprep.subr.bf16.mxu0 %v1873_v21  ;;  %v2311_v2 = vpack.c.bf16 %v5216_v59, %v5212_v37  ;;  %v5239_v8 = vmul.f32 %v5165_v13, %v5007_v29  ;;  %v5243_v58 = vmul.f32 %v5165_v13, %v5000_v27  ;;  %v6036_v27 = vld [vmem:[#allocation81_spill] sm:$0xff]  ;;  %v6091_v59 = vld [vmem:[#allocation91_spill] sm:$0xff] }
 0x38f   : > { %2320 = vmatprep.subr.bf16.mxu1 %v2295_v17  ;;  %v2309_v32 = vpack.c.bf16 %v5229_v51, %v5225_v25  ;;  %v5249_v10 = vmul.f32 %v5165_v13, %v5002_v24  ;;  %v5253_v18 = vmul.f32 %v5165_v13, %v4988_v11  ;;  %v5257_v29 = vmul.f32 %v5165_v13, %v4997_v19  ;;  %v6094_v51 = vld [vmem:[#allocation80_spill] sm:$0xff] }
 0x390   : > { %v6037_v21 = vpack.c.bf16 %v6035_v1, %v6036_v27  ;;  %v2307_v33 = vpack.c.bf16 %v5239_v8, %v5235_v52  ;;  %v5266_v24 = vmul.f32 %v5165_v13, %v4950_v39  ;;  %v5270_v11 = vmul.f32 %v5165_v13, %v6038_v54  ;;  %v6054_v27 = vld [vmem:[#allocation29_spill] sm:$0xff] }
 0x391   : > { %v2292_v60 = vpack.c.bf16 %v2240_v53, %v2238_v45  ;;  %v2236_v19 = vmul.f32 %v4877_v49, %v6039_v46  ;;  %v6040_v30 = vpack.c.bf16 %v5089_v0, %v5085_v44  ;;  %v2305_v20 = vpack.c.bf16 %v5249_v10, %v5243_v58  ;;  %v6043_v44 = vld [vmem:[#allocation23_spill] sm:$0xff]  ;;  %v6055_v54 = vld [vmem:[#allocation33_spill] sm:$0xff]  ;;  %v6098_v10 = vld [vmem:[#allocation96_spill] sm:$0xff] }
 0x392   : > { %2321 = vmatpush1.bf16.msra.mxu1 %v2294_v55  ;;  %2378 = vmatpush2.bf16.msra.mxu0 %v6037_v21  ;;  %v2303_v50 = vpack.c.bf16 %v5257_v29, %v5253_v18  ;;  %v2291_v39 = vpack.c.bf16 %v2237_v42, %v2235_v35  ;;  %v2231_v38 = vmul.f32 %v5165_v13, %v6041_v3  ;;  %v6044_v0 = vld [vmem:[#allocation15_spill] sm:$0xff]  ;;  %v6049_v55 = vld [vmem:[#allocation78_spill] sm:$0xff]  ;;  %v6059_v3 = vld [vmem:[#allocation72_spill] sm:$0xff] }
 0x393   : > { %2322 = vmatprep.subr.bf16.mxu1 %v2293_v7  ;;  %2379 = vmatprep.subr.bf16.mxu0 %v6040_v30  ;;  %v2233_v15 = vmul.f32 %v5165_v13, %v6042_v31  ;;  %v2301_v57 = vpack.c.bf16 %v5270_v11, %v5266_v24  ;;  %v6045_v34 = vpack.c.bf16 %v6043_v44, %v6044_v0  ;;  %v6050_v42 = vld [vmem:[#allocation11_spill] sm:$0xff]  ;;  %v6058_v30 = vld [vmem:[#allocation69_spill] sm:$0xff]  ;;  %v3301_v24 = vld [vmem:[%s3397_s26] sm:$0xff]  ;;  %v6106_v11 = vmov 0.0  }
 0x394   : > { %v2290_v17 = vpack.c.bf16 %v2236_v19, %v2234_v26  ;;  %v2230_v45 = vmul.f32 %v4877_v49, %v6046_v12  ;;  %v2232_v53 = vmul.f32 %v4877_v49, %v6047_v9  ;;  %v2227_v35 = vmul.f32 %v5165_v13, %v6049_v55  ;;  %v6051_v26 = vld [vmem:[#allocation31_spill] sm:$0xff]  ;;  %v6060_v31 = vld [vmem:[#allocation25_spill] sm:$0xff] }
 0x395   : > { %v2289_v14 = vpack.c.bf16 %v2233_v15, %v2231_v38  ;;  %v2229_v5 = vmul.f32 %v5165_v13, %v6050_v42  ;;  %v6053_v7 = vpack.c.bf16 %v6051_v26, %v6052_v23  ;;  %v2226_v21 = vmul.f32 %v4877_v49, %v6054_v27  ;;  %v6061_v44 = vld [vmem:[#allocation43_spill] sm:$0xff]  ;;  %v6065_v12 = vld [vmem:[#allocation13_spill] sm:$0xff] }
 0x396   : > { %2323 = vmatpush1.bf16.msra.mxu1 %v2292_v60  ;;  %2380 = vmatpush2.bf16.msra.mxu0 %v6045_v34  ;;  %v2288_v1 = vpack.c.bf16 %v2232_v53, %v2230_v45  ;;  %v2228_v48 = vmul.f32 %v4877_v49, %v6055_v54  ;;  %v6057_v60 = vld [vmem:[#allocation17_spill] sm:$0xff]  ;;  %v2225_v38 = vmul.f32 %v5165_v13, %v6059_v3  ;;  %v6062_v0 = vld [vmem:[#allocation35_spill] sm:$0xff] }
 0x397   : > { %2324 = vmatprep.subr.bf16.mxu1 %v2291_v39  ;;  %2381 = vmatprep.subr.bf16.mxu0 %v6048_v61  ;;  %v1820_v46 = vmul.f32 %v4664_v56, %v6057_v60  ;;  %v2287_v19 = vpack.c.bf16 %v2229_v5, %v2227_v35  ;;  %v2223_v39 = vmul.f32 %v5165_v13, %v6058_v30  ;;  %v6066_v9 = vld [vmem:[#allocation21_spill] sm:$0xff]  ;;  %v6073_v54 = vld [vmem:[#allocation67_spill] sm:$0xff] }
 0x398   : > { %v1822_v15 = vmul.f32 %v4664_v56, %v6060_v31  ;;  %v6063_v34 = vpack.c.bf16 %v6061_v44, %v6062_v0  ;;  %v2222_v45 = vmul.f32 %v4877_v49, %v6065_v12  ;;  %v2224_v53 = vmul.f32 %v4877_v49, %v6066_v9  ;;  %v6067_v61 = vld [vmem:[#allocation9_spill] sm:$0xff]  ;;  %v6088_v12 = vld [vmem:[#allocation79_spill] sm:$0xff] }
 0x399   : > { %v2285_v55 = vpack.c.bf16 %v2225_v38, %v2223_v39  ;;  %v6068_v35 = vld [vmem:[#allocation61_spill] sm:$0xff]  ;;  %v6076_v39 = vld [vmem:[#allocation55_spill] sm:$0xff]  ;;  %v2254_v52 = vmul.f32 %v4877_v49, %v6094_v51 }
 0x39a   : > { %2325 = vmatpush1.bf16.msra.mxu1 %v2290_v17  ;;  %2382 = vmatpush2.bf16.msra.mxu0 %v6053_v7  ;;  %v2286_v17 = vpack.c.bf16 %v2228_v48, %v2226_v21  ;;  %v2219_v42 = vmul.f32 %v5165_v13, %v6068_v35  ;;  %v6069_v5 = vld [vmem:[#allocation65_spill] sm:$0xff]  ;;  %v1864_v23 = vpack.c.bf16 %v1822_v15, %v1820_v46  ;;  %v6077_v38 = vld [vmem:[#allocation7_spill] sm:$0xff] }
 0x39b   : > { %2326 = vmatprep.subr.bf16.mxu1 %v2289_v14  ;;  %2383 = vmatprep.subr.bf16.mxu0 %v6056_v41  ;;  %v1818_v14 = vmul.f32 %v4664_v56, %v6067_v61  ;;  %v2221_v26 = vmul.f32 %v5165_v13, %v6069_v5  ;;  %v6070_v7 = vld [vmem:[#allocation53_spill] sm:$0xff]  ;;  %v2284_v36 = vpack.c.bf16 %v2224_v53, %v2222_v45  ;;  %v6089_v45 = vld [vmem:[#allocation76_spill] sm:$0xff]  ;;  %v6097_v53 = vld [vmem:[#allocation54_spill] sm:$0xff] }
 0x39c   : > { %v6071_v27 = vld [vmem:[#allocation57_spill] sm:$0xff]  ;;  %v2220_v48 = vmul.f32 %v4877_v49, %v6073_v54  ;;  %v6074_v41 = vpack.c.bf16 %v5127_v22, %v5123_v63  ;;  %v6079_v22 = vld [vmem:[#allocation58_spill] sm:$0xff]  ;;  %v6090_v37 = vpack.c.bf16 %v6088_v12, %v6089_v45  ;;  %v2253_v58 = vmul.f32 %v5165_v13, %v6097_v53  ;;  %v6101_v29 = vld [vmem:[#allocation71_spill] sm:$0xff] }
 0x39d   : > { %v1815_v21 = vmul.f32 %v5020_v40, %v6071_v27  ;;  %v2283_v60 = vpack.c.bf16 %v2221_v26, %v2219_v42  ;;  %v1862_v46 = vpack.c.bf16 %v1818_v14, %v1816_v4  ;;  %v6078_v31 = vld [vmem:[#allocation5_spill] sm:$0xff]  ;;  %v6083_v4 = vld [vmem:[#allocation62_spill] sm:$0xff]  ;;  %v6104_v5 = vld [vmem:[#allocation4_spill] sm:$0xff] }
 0x39e   : > { %2327 = vmatpush1.bf16.msra.mxu1 %v2288_v1  ;;  %2384 = vmatpush2.bf16.msra.mxu0 %v6063_v34  ;;  %v1813_v1 = vmul.f32 %v5020_v40, %v6070_v7  ;;  %v1814_v40 = vmul.f32 %v4664_v56, %v6076_v39  ;;  %v636_v15 = vadd.f32 %v6078_v31, %v6077_v38  ;;  %v6080_v34 = vld [vmem:[#allocation50_spill] sm:$0xff]  ;;  %v6095_v8 = vld [vmem:[#allocation89_spill] sm:$0xff] }
 0x39f   : > { %2328 = vmatprep.subr.bf16.mxu1 %v2287_v19  ;;  %2385 = vmatprep.subr.bf16.mxu0 %v1865_v6  ;;  %v2218_v6 = vmul.f32 %v4877_v49, %v6072_v16  ;;  %v6075_v19 = vld [vmem:[#allocation51_spill] sm:$0xff]  ;;  %v6102_v14 = vld [vmem:[#allocation74_spill] sm:$0xff] }
 0x3a0   : > { %v1812_v30 = vmul.f32 %v4664_v56, %v6075_v19  ;;  %v1861_v3 = vpack.c.bf16 %v1815_v21, %v1813_v1  ;;  %v2314_v63 = vpack.c.bf16 %v636_v15, %v636_v15  ;;  %v6081_v56 = vpack.c.bf16 %v6079_v22, %v6080_v34  ;;  %v6103_v42 = vld [vmem:[#allocation6_spill] sm:$0xff] }
 0x3a1   : > { %v2282_v44 = vpack.c.bf16 %v2220_v48, %v2218_v6  ;;  %v6105_v7 = vld [vmem:[#allocation2_spill] sm:$0xff] }
 0x3a2   : > { %2329 = vmatpush1.bf16.msra.mxu1 %v2286_v17  ;;  %2386 = vmatpush2.bf16.msra.mxu0 %v1864_v23  ;;  %v1860_v0 = vpack.c.bf16 %v1814_v40, %v1812_v30  ;;  %v6084_v17 = vpack.c.bf16 %v6082_v47, %v6083_v4  ;;  %v2408_v39 = vld [vmem:[%s5449_s7] sm:$0xff]  ;;  %v2409_v40 = vld [vmem:[%s5449_s7 + $0x8] sm:$0xf]  ;;  %v2589_v4 = vpop.permute.xlu1 %2588 }
 0x3a3   : > { %2330 = vmatprep.subr.bf16.mxu1 %v2285_v55  ;;  %2387 = vmatprep.subr.bf16.mxu0 %v6074_v41  ;;  %v2252_v55 = vmul.f32 %v4877_v49, %v6102_v14  ;;  %v2404_v41 = vpop.permute.xlu0 %2403 }
 0x3a6   : > { %2331 = vmatpush1.bf16.msra.mxu1 %v2284_v36  ;;  %2388 = vmatpush2.bf16.msra.mxu0 %v1862_v46 }
 0x3a7   : > { %2332 = vmatprep.subr.bf16.mxu1 %v2283_v60  ;;  %2389 = vmatprep.subr.bf16.mxu0 %v1861_v3 }
 0x3aa   : > { %2333 = vmatpush1.bf16.msra.mxu1 %v2282_v44  ;;  %2390 = vmatpush2.bf16.msra.mxu0 %v1860_v0 }
 0x3ab   : > { %2334 = vmatprep.subr.bf16.mxu1 %v2313_v62  ;;  %v6087_v62 = vpack.c.bf16 %v6085_v43, %v6086_v28 }
 0x3ad   : > { %2392 = vmatmul.mubr.bf16.vlgmr.msra.gmra.mxu0 %v2314_v63 }
 0x3ae   : > { %2335 = vmatpush2.bf16.msra.mxu1 %v6081_v56  ;;  %v2584_v56 = vpop.permute.xlu0 %2583 }
 0x3af   : > { %2336 = vmatprep.subr.bf16.mxu1 %v2311_v2  ;;  %v6092_v2 = vld [vmem:[#allocation82_spill] sm:$0xff] }
 0x3b0   : > { %v6093_v25 = vpack.c.bf16 %v6091_v59, %v6092_v2 }
 0x3b2   : > { %2337 = vmatpush2.bf16.msra.mxu1 %v6084_v17 }
 0x3b3   : > { %2338 = vmatprep.subr.bf16.mxu1 %v2309_v32  ;;  %v2256_v32 = vmul.f32 %v4877_v49, %v6095_v8 }
 0x3b5   : > { %v2300_v18 = vpack.c.bf16 %v2256_v32, %v2254_v52 }
 0x3b6   : > { %2339 = vmatpush2.bf16.msra.mxu1 %v6087_v62 }
 0x3b7   : > { %2340 = vmatprep.subr.bf16.mxu1 %v2307_v33  ;;  %v6096_v33 = vld [vmem:[#allocation47_spill] sm:$0xff] }
 0x3b8   : > { %v2251_v9 = vmul.f32 %v5165_v13, %v6096_v33  ;;  %v787_v13 = vadd.f32 %v6104_v5, %v6103_v42 }
 0x3ba   : > { %2341 = vmatpush2.bf16.msra.mxu1 %v6090_v37  ;;  %v2299_v35 = vpack.c.bf16 %v2253_v58, %v2251_v9  ;;  %v2316_v23 = vpack.c.bf16 %v787_v13, %v787_v13 }
 0x3bb   : > { %2342 = vmatprep.subr.bf16.mxu1 %v2305_v20  ;;  %v6099_v20 = vld [vmem:[#allocation94_spill] sm:$0xff] }
 0x3bc   : > { %v6100_v61 = vpack.c.bf16 %v6098_v10, %v6099_v20 }
 0x3be   : > { %2343 = vmatpush2.bf16.msra.mxu1 %v6093_v25 }
 0x3bf   : > { %2344 = vmatprep.subr.bf16.mxu1 %v2303_v50  ;;  %v2250_v50 = vmul.f32 %v4877_v49, %v6101_v29  ;;  %v2410_v49 = vld [vmem:[%s5450_s8] sm:$0xff] }
 0x3c1   : > { %v2298_v26 = vpack.c.bf16 %v2252_v55, %v2250_v50  ;;  %v3302_v55 = vld [vmem:[%s3404_s29] sm:$0xff]  ;;  %s414_s29 = scalar_lea.vmem %s5452_s10, %s3385_s19 }
 0x3c2   : > { %2345 = vmatpush2.bf16.msra.mxu1 %v6100_v61 }
 0x3c3   : > { %2346 = vmatprep.subr.bf16.mxu1 %v2301_v57  ;;  %v2411_v57 = vld [vmem:[%s5450_s8 + $0x8] sm:$0xf] }
 0x3c6   : > { %2347 = vmatpush2.bf16.msra.mxu1 %v2300_v18 }
 0x3c7   : > { %2348 = vmatprep.subr.bf16.mxu1 %v2299_v35 }
 0x3ca   : > { %2349 = vmatpush2.bf16.msra.mxu1 %v2298_v26  ;;  %v6107_v26 = vld [vmem:[#allocation3_spill] sm:$0xff] }
 0x3cb   : > { %2811 = vmatprep.subr.msk.mxu1 %vm516_vm0, %v6105_v7 }
 0x3cd   : > { %2351 = vmatmul.mubr.bf16.vlgmr.msra.gmra.mxu1 %v2316_v23 }
 0x3ce   : > { %2812 = vmatpush1.msk.msra.mxu1 %vm516_vm0, %v3301_v24  ;;  %2482 = vmatprep.mubr.f32.mxu1 %v6106_v11 }
 0x3d5   : > { %2813 = vmatmul.mubr.msk.f32.vlgmr.msra.gmra.mxu1 %vm488_vm1, %v2410_v49 }
 0x3d6   : > { %2488 = vmatprep.mubr.f32.mxu1 %v6106_v11 }
 0x3d9   : > { %2814 = vmatmul.mubr.msk.f32.gmra.mxu1 %vm488_vm1, %v2411_v57 }
 0x3da   : > { %2566 = vmatprep.mubr.f32.mxu1 %v6106_v11 }
 0x46d   : > { %v2393_v1 = vpop.f32.mrf.mxu0 }
 0x46f   : > { %v2395_v27 = vpop.f32.mrf.mxu0 }
 0x471   : > { %v2397_v21 = vpop.f32.mrf.mxu0 }
 0x473   : > { %v2398_v36 = vpop.f32.mrf.mxu0 }
 0x48d   : > { %v2352_v16 = vpop.f32.mrf.mxu1 }
 0x48e   : > { %v2394_v6 = vadd.f32 %v2393_v1, %v2352_v16 }
 0x48f   : > { %v2354_v54 = vpop.f32.mrf.mxu1 }
 0x490   : > { %v2396_v48 = vadd.f32 %v2395_v27, %v2354_v54  ;;  %v2406_v19 = vadd.f32 %v2404_v41, %v2394_v6 }
 0x491   : > { %v2356_v60 = vpop.f32.mrf.mxu1 }
 0x492   : > { %v2407_v46 = vadd.f32 %v2404_v41, %v2396_v48 }
 0x493   : > { %v2357_v30 = vpop.f32.mrf.mxu1 }
 0x494   : > { %2532 = vmatprep.subr.mxu1 %v2407_v46 }
 0x495   : > { %2533 = vmatpush1.msra.mxu1 %v2406_v19  ;;  %v2484_v3 = vpop.f32.mrf.mxu1 }
 0x496   : > { %2815 = vmatmul.mubr.msk.f32.vlgmr.msra.gmra.mxu1 %vm2495_vm3, %v2408_v39 }
 0x497   : > { %2572 = vmatprep.mubr.f32.mxu1 %v6106_v11  ;;  %v2486_v38 = vpop.f32.mrf.mxu1 }
 0x499   : > { %v2490_v31 = vpop.f32.mrf.mxu1 }
 0x49a   : > { %2816 = vmatmul.mubr.msk.f32.gmra.mxu1 %vm2495_vm3, %v2409_v40 }
 0x49b   : > { %v2492_v15 = vpop.f32.mrf.mxu1 }
 0x556   : > { %v2568_v44 = vpop.f32.mrf.mxu1 }
 0x557   : > { %v2569_v0 = vadd.f32 %v2568_v44, %v2484_v3 }
 0x558   : > { %v2570_v63 = vpop.f32.mrf.mxu1 }
 0x559   : > { %v2571_v22 = vadd.f32 %v2570_v63, %v2486_v38  ;;  %v2591_v17 = vadd.f32 %v2584_v56, %v2569_v0 }
 0x55a   : > { %v2574_v34 = vpop.f32.mrf.mxu1 }
 0x55b   : > { %v2575_v47 = vadd.f32 %v2574_v34, %v2490_v31  ;;  %v2592_v28 = vadd.f32 %v2584_v56, %v2571_v22  ;;  %v2819_v59 = vmul.f32 -1.442695, %v2591_v17 }
 0x55c   : > { %v2576_v43 = vpop.f32.mrf.mxu1 }
 0x55d   : > { %v2593_v62 = vadd.f32 %v2589_v4, %v2575_v47  ;;  %v2577_v12 = vadd.f32 %v2576_v43, %v2492_v15  ;;  %v2820_v2 = vmul.f32 -1.442695, %v2592_v28 }
 0x55f   : > { %v2817_v45 = vmul.f32 -1.442695, %v2593_v62  ;;  %v2594_v37 = vadd.f32 %v2589_v4, %v2577_v12 }
 0x561   : > { %3281 = vpow2.f32 %v2817_v45  ;;  %v2818_v25 = vmul.f32 -1.442695, %v2594_v37 }
 0x563   : > { %3283 = vpow2.f32 %v2818_v25 }
 0x564   : > { %3285 = vpow2.f32 %v2819_v59 }
 0x565   : > { %3287 = vpow2.f32 %v2820_v2 }
 0x566   : > { %3289 = vtanh.f32 %v2591_v17 }
 0x567   : > { %3291 = vtanh.f32 %v2592_v28 }
 0x56e   : > { %v3282_v51 = vpop.eup %3281 }
 0x56f   : > { %v2601_v52 = vadd.f32 1.0, %v3282_v51 }
 0x570   : > { %v3284_v8 = vpop.eup %3283 }
 0x571   : > { %v3286_v32 = vpop.eup %3285  ;;  %3293 = vrcp.f32 %v2601_v52  ;;  %v2602_v33 = vadd.f32 1.0, %v3284_v8 }
 0x572   : > { %v3288_v9 = vpop.eup %3287  ;;  %v2630_v53 = vadd.f32 1.0, %v3286_v32 }
 0x573   : > { %3295 = vrcp.f32 %v2602_v33  ;;  %v2631_v58 = vadd.f32 1.0, %v3288_v9  ;;  %v3290_v10 = vpop.eup %3289 }
 0x574   : > { %3297 = vrcp.f32 %v2630_v53  ;;  %v3292_v20 = vpop.eup %3291  ;;  %v2616_v18 = vrot.slane %v3290_v10, 4 }
 0x575   : > { %3299 = vrcp.f32 %v2631_v58  ;;  %v2617_v14 = vrot.slane %v3292_v20, 4 }
 0x57e   : > { %v3294_v61 = vpop.eup %3293 }
 0x57f   : > { %v2607_v29 = vsub.f32 1.0, %v3294_v61  ;;  %v2620_v42 = vmul.f32 %v3294_v61, %v2616_v18 }
 0x580   : > { %v3296_v50 = vpop.eup %3295 }
 0x581   : > { %v2610_v35 = vmul.f32 %v3302_v55, %v2607_v29  ;;  %v2608_v5 = vsub.f32 1.0, %v3296_v50  ;;  %v2621_v7 = vmul.f32 %v3296_v50, %v2617_v14  ;;  %v3298_v24 = vpop.eup %3297 }
 0x582   : > { %v3300_v49 = vpop.eup %3299 }
 0x583   : > { %v2622_v13 = vadd.f32 %v2620_v42, %v2610_v35  ;;  %v2611_v23 = vmul.f32 %v2608_v5, %v6107_v26 }
 0x585   : > { %v2623_v11 = vadd.f32 %v2621_v7, %v2611_v23  ;;  %v2636_v57 = vmul.f32 %v3298_v24, %v2622_v13 }
 0x587   : > { %v2637_v1 = vmul.f32 %v3300_v49, %v2623_v11  ;;  %v2645_v27 = vcombine.low %v2622_v13, %v2623_v11 }
 0x589   : > { %v2640_v21 = vcombine.low %v2636_v57, %v2637_v1  ;;  %2647 = vst [vmem:[%s419_s20] sm:$0xff] %v2645_v27 }
 0x58b   : > { %2642 = vst [vmem:[%s414_s29] sm:$0xff] %v2640_v21 }
 0x58c PF: > { %s22_s17 = sadd.s32 1, %s3309_s17  }
 0x58d   : > { %p19_p4 = scmp.ge.s32.totalorder %s22_s17, 4  }
 0x58f   :  { %21 = sbr.rel (!%p19_p4) target bundleno = 1 (0x1), region = 105 }

</bundles_post_ra>
